<compile_context>
chip_gen: v7x
topology: tpu7x:2x2x1
jax: 0.10.0
libtpu: 0.0.40
codegen_flags: <defaults>
</compile_context>

<pallas_src>
import functools

import jax
import jax.numpy as jnp
from jax.experimental import pallas as pl
from jax.experimental.pallas import tpu as pltpu


# ----------------------------------------------------------------------------
# Pallas kernels
# ----------------------------------------------------------------------------

def _conv_mm_kernel(a_ref, w_ref, scale_ref, shift_ref, o_ref):
    """o = relu((A @ W) * scale + shift); A cast to bf16, W pre-cast bf16."""
    acc = jnp.dot(a_ref[...].astype(jnp.bfloat16), w_ref[...],
                  preferred_element_type=jnp.float32)
    o_ref[...] = jnp.maximum(acc * scale_ref[...] + shift_ref[...], 0.0)


def conv_mm(a, w_bf16, scale_row, shift_row, tile_m=256):
    M, K = a.shape
    _, N = w_bf16.shape
    tm = tile_m if (M >= tile_m and M % tile_m == 0) else M
    return pl.pallas_call(
        _conv_mm_kernel,
        out_shape=jax.ShapeDtypeStruct((M, N), jnp.float32),
        grid=(M // tm,),
        in_specs=[pl.BlockSpec((tm, K), lambda i: (i, 0)),
                  pl.BlockSpec((K, N), lambda i: (0, 0)),
                  pl.BlockSpec((1, N), lambda i: (0, 0)),
                  pl.BlockSpec((1, N), lambda i: (0, 0))],
        out_specs=pl.BlockSpec((tm, N), lambda i: (i, 0)),
        compiler_params=pltpu.CompilerParams(dimension_semantics=("parallel",)),
    )(a, w_bf16, scale_row, shift_row)


def _linear_kernel(a_ref, w_ref, b_ref, o_ref):
    """o = A @ W + b (bias only; W pre-transposed + bf16)."""
    o_ref[...] = jnp.dot(a_ref[...].astype(jnp.bfloat16), w_ref[...],
                         preferred_element_type=jnp.float32) + b_ref[...]


def linear_bias(a, w_bf16, b_row):
    M, K = a.shape
    _, N = w_bf16.shape
    return pl.pallas_call(
        _linear_kernel,
        out_shape=jax.ShapeDtypeStruct((M, N), jnp.float32),
        grid=(1,),
        in_specs=[pl.BlockSpec((M, K), lambda i: (0, 0)),
                  pl.BlockSpec((K, N), lambda i: (0, 0)),
                  pl.BlockSpec((1, N), lambda i: (0, 0))],
        out_specs=pl.BlockSpec((M, N), lambda i: (0, 0)),
    )(a, w_bf16, b_row)


def _bigru_step_kernel(gx_ref, whh_ref, bhh_ref, o_ref, h_ref, *, H):
    """One time step of both GRU directions.

    Packed layouts (per step):
      h_ref  : (B, 2H)   = [h_fwd | h_bwd]
      gx_ref : (1, B, 6H) input-gate pre-activations ordered
               [r_f, r_b, z_f, z_b, n_f, n_b]   (b_ih already folded in)
      whh    : (2H, 6H)  block-diagonal packing of W_hh for both directions
      bhh    : (1, 6H)
    Single MXU push per step; full-width (B, 2H) elementwise math in f32.
    """
    t = pl.program_id(0)

    @pl.when(t == 0)
    def _():
        h_ref[...] = jnp.zeros_like(h_ref)

    h = h_ref[...]
    hh = jnp.dot(h.astype(jnp.bfloat16), whh_ref[...],
                 preferred_element_type=jnp.float32) + bhh_ref[...]
    gx = gx_ref[0]
    rz = jax.nn.sigmoid(gx[:, :4 * H] + hh[:, :4 * H])
    r = rz[:, :2 * H]
    z = rz[:, 2 * H:]
    n = jnp.tanh(gx[:, 4 * H:] + r * hh[:, 4 * H:])
    h_new = (1.0 - z) * n + z * h
    h_ref[...] = h_new
    o_ref[t] = h_new               # output block is VMEM-resident; one HBM writeback


def bigru_recurrence(gxp, w_hh, b_hh, H):
    """gxp: (T, B, 6H) packed gate inputs; returns (T, B, 2H) = [h_fwd | h_bwd]."""
    T, B, H6 = gxp.shape
    H2 = 2 * H
    return pl.pallas_call(
        functools.partial(_bigru_step_kernel, H=H),
        out_shape=jax.ShapeDtypeStruct((T, B, H2), jnp.float32),
        grid=(T,),
        in_specs=[pl.BlockSpec((1, B, H6), lambda t: (t, 0, 0)),
                  pl.BlockSpec((H2, H6), lambda t: (0, 0)),
                  pl.BlockSpec((1, H6), lambda t: (0, 0))],
        out_specs=pl.BlockSpec((T, B, H2), lambda t: (0, 0, 0)),
        scratch_shapes=[pltpu.VMEM((B, H2), jnp.float32)],
        compiler_params=pltpu.CompilerParams(dimension_semantics=("arbitrary",)),
    )(gxp, w_hh, b_hh)


def _mhsa_kernel(*refs, B, T, nh, dh, eps, gate):
    """Fused MHSA block: (optional tanh-gate) -> QKV -> attention -> out-proj
    -> residual -> LayerNorm, all in one kernel."""
    if gate:
        xf_ref, xb_ref = refs[0], refs[1]
        w_refs = refs[2:-2]
        x = jnp.tanh(xb_ref[...]) * jnp.tanh(xf_ref[...])   # x[:, H:] * x[:, :H]
    else:
        x_ref = refs[0]
        w_refs = refs[1:-2]
        x = x_ref[...]
    o_ref = refs[-2]
    attn_ref = refs[-1]
    wqkv_ref, bqkv_ref, wo_ref, bo_ref, g_ref, bln_ref = w_refs

    H = nh * dh
    qkv = jnp.dot(x.astype(jnp.bfloat16), wqkv_ref[...],
                  preferred_element_type=jnp.float32) + bqkv_ref[...]   # (B*T, 3H)
    scale = 1.0 / (dh ** 0.5)

    # per (batch, head) attention, statically unrolled (everything is tiny & in VMEM)
    for b in range(B):
        r0 = b * T
        for hd in range(nh):
            c0 = hd * dh
            q = qkv[r0:r0 + T, c0:c0 + dh]
            k = qkv[r0:r0 + T, H + c0:H + c0 + dh]
            v = qkv[r0:r0 + T, 2 * H + c0:2 * H + c0 + dh]
            s = jax.lax.dot_general(q, k, (((1,), (1,)), ((), ())),
                                    preferred_element_type=jnp.float32) * scale
            s = s - jnp.max(s, axis=-1, keepdims=True)
            p = jnp.exp(s)
            p = p / jnp.sum(p, axis=-1, keepdims=True)
            attn_ref[r0:r0 + T, c0:c0 + dh] = jnp.dot(
                p, v, preferred_element_type=jnp.float32)

    a = attn_ref[...]
    out = jnp.dot(a.astype(jnp.bfloat16), wo_ref[...],
                  preferred_element_type=jnp.float32) + bo_ref[...]
    res = out + x
    mu = jnp.mean(res, axis=-1, keepdims=True)
    xc = res - mu
    var = jnp.mean(xc * xc, axis=-1, keepdims=True)
    o_ref[...] = xc * jax.lax.rsqrt(var + eps) * g_ref[...] + bln_ref[...]


def mhsa_block(xs, m, B, T, nh, dh, gate=False, eps=1e-5):
    H = nh * dh
    M = B * T
    x_list = list(xs) if gate else [xs]
    args = x_list + [m["wqkv"], m["bqkv"], m["wo"], m["bo"], m["ln_g"], m["ln_b"]]
    in_specs = ([pl.BlockSpec((M, H), lambda i: (0, 0))] * len(x_list) +
                [pl.BlockSpec((H, 3 * H), lambda i: (0, 0)),
                 pl.BlockSpec((1, 3 * H), lambda i: (0, 0)),
                 pl.BlockSpec((H, H), lambda i: (0, 0)),
                 pl.BlockSpec((1, H), lambda i: (0, 0)),
                 pl.BlockSpec((1, H), lambda i: (0, 0)),
                 pl.BlockSpec((1, H), lambda i: (0, 0))])
    return pl.pallas_call(
        functools.partial(_mhsa_kernel, B=B, T=T, nh=nh, dh=dh, eps=eps, gate=gate),
        out_shape=jax.ShapeDtypeStruct((M, H), jnp.float32),
        grid=(1,),
        in_specs=in_specs,
        out_specs=pl.BlockSpec((M, H), lambda i: (0, 0)),
        scratch_shapes=[pltpu.VMEM((M, H), jnp.float32)],
    )(*args)


def _fnn_chain_kernel(*refs, n):
    """Chained linears: h = (...((x@W0+b0)@W1+b1)...), no activations (per spec)."""
    x_ref = refs[0]
    o_ref = refs[-1]
    wb = refs[1:-1]
    h = x_ref[...]
    for i in range(n):
        w = wb[2 * i]
        b = wb[2 * i + 1]
        h = jnp.dot(h.astype(jnp.bfloat16), w[...],
                    preferred_element_type=jnp.float32) + b[...]
    o_ref[...] = h


def fnn_chain(x2, ws, bs, out_dim):
    M, K0 = x2.shape
    n = len(ws)
    Nout = ws[-1].shape[1]               # already padded to a multiple of 128
    in_specs = [pl.BlockSpec((M, K0), lambda i: (0, 0))]
    args = [x2]
    for w, b in zip(ws, bs):
        in_specs.append(pl.BlockSpec(w.shape, lambda i: (0, 0)))
        in_specs.append(pl.BlockSpec(b.shape, lambda i: (0, 0)))
        args += [w, b]
    out = pl.pallas_call(
        functools.partial(_fnn_chain_kernel, n=n),
        out_shape=jax.ShapeDtypeStruct((M, Nout), jnp.float32),
        grid=(1,),
        in_specs=in_specs,
        out_specs=pl.BlockSpec((M, Nout), lambda i: (0, 0)),
    )(*args)
    return out[:, :out_dim]


# ----------------------------------------------------------------------------
# JAX glue (im2col / pooling / layout plumbing)
# ----------------------------------------------------------------------------

def im2col_3x3_nhwc(x):
    """x: (B, H, W, C) -> (B*H*W, 9*C) with patch column order (kh, kw, c)."""
    B, H, W, C = x.shape
    xp = jnp.pad(x, ((0, 0), (1, 1), (1, 1), (0, 0)))
    cols = [xp[:, kh:kh + H, kw:kw + W, :] for kh in range(3) for kw in range(3)]
    return jnp.concatenate(cols, axis=-1).reshape(B * H * W, 9 * C)


def maxpool_nhwc(x, tp, fp):
    B, H, W, C = x.shape
    Ho, Wo = H // tp, W // fp
    x = x[:, :Ho * tp, :Wo * fp, :].reshape(B, Ho, tp, Wo, fp, C)
    return jnp.max(x, axis=(2, 4))


# ----------------------------------------------------------------------------
# SeldModel forward (inference)
# ----------------------------------------------------------------------------

def seld_forward(x, prep, hp):
    H = hp["rnn_size"]
    nh = hp["nb_heads"]
    dh = H // nh

    # --- conv_block_list (NHWC kept throughout the conv stack)
    x = x.transpose(0, 2, 3, 1)                               # NCHW -> NHWC
    for i, blk in enumerate(prep["conv_blocks"]):
        B, Ht, Wt, _ = x.shape
        A = im2col_3x3_nhwc(x)                                # (B*Ht*Wt, 9*Cin)
        y = conv_mm(A, blk["w"], blk["scale"], blk["shift"])  # conv+BN+ReLU fused
        x = y.reshape(B, Ht, Wt, -1)
        x = maxpool_nhwc(x, hp["t_pool_size"][i], hp["f_pool_size"][i])
        # Dropout2d: identity at inference.

    # --- x.transpose(1, 2).view(B, T, -1): feature order is (channel, mel)
    B, T, Fm, C = x.shape
    x = x.transpose(0, 1, 3, 2).reshape(B, T, C * Fm)

    # --- bidirectional multi-layer GRU (both directions in one recurrence call)
    h_in = x
    for layer in prep["gru_layers"]:
        Bh, Th, Din = h_in.shape
        gx = linear_bias(h_in.reshape(Bh * Th, Din), layer["w_ih"], layer["b_ih"])
        gx = gx.reshape(Bh, Th, 6 * H)
        gxf = gx[..., :3 * H]                       # fwd gates [r,z,n] at time t
        gxb = gx[..., 3 * H:][:, ::-1, :]           # bwd gates, time-reversed
        packed = jnp.concatenate(
            [gxf[..., 0:H], gxb[..., 0:H],
             gxf[..., H:2 * H], gxb[..., H:2 * H],
             gxf[..., 2 * H:], gxb[..., 2 * H:]], axis=-1)    # (B, T, 6H)
        gxp = packed.transpose(1, 0, 2)                       # (T, B, 6H)
        o = bigru_recurrence(gxp, layer["w_hh"], layer["b_hh"], H)   # (T, B, 2H)
        fwd = o[..., :H].transpose(1, 0, 2)                   # (B, T, H)
        bwd = o[::-1, :, H:].transpose(1, 0, 2)               # undo time reversal
        h_in = jnp.concatenate([fwd, bwd], axis=-1)           # (B, T, 2H)
        # inter-layer GRU dropout: identity at inference.

    fwd2 = h_in[..., :H].reshape(B * T, H)
    bwd2 = h_in[..., H:].reshape(B * T, H)

    # --- tanh gate fused into the first MHSA kernel; each MHSA block is one kernel
    if prep["mhsa"]:
        x2 = mhsa_block((fwd2, bwd2), prep["mhsa"][0], B, T, nh, dh, gate=True)
        for m in prep["mhsa"][1:]:
            x2 = mhsa_block(x2, m, B, T, nh, dh, gate=False)
    else:
        x2 = jnp.tanh(bwd2) * jnp.tanh(fwd2)    # config without MHSA (unused here)

    # TODO(synk): visual branch (visual_embed_to_d_model + TransformerDecoder) is
    # only active when vid_feat is not None; not exercised here.

    # --- FNN layers + final DOA linear fused into one chained-matmul kernel
    doa = fnn_chain(x2, prep["fnn_w"], prep["fnn_b"], hp["out_dim"])
    return doa.reshape(B, T, -1)


# ----------------------------------------------------------------------------
# Parameter init (PyTorch layout) + one-time kernel-friendly preparation
# ----------------------------------------------------------------------------

def init_params(key, hp, in_feat_shape, out_dim):
    keys = iter(jax.random.split(key, 256))

    def nrm(shape, s=0.1):
        return jax.random.normal(next(keys), shape, jnp.float32) * s

    H = hp["rnn_size"]
    nf = hp["nb_cnn2d_filt"]
    params = {}

    conv_blocks = []
    for i in range(len(hp["f_pool_size"])):
        c_in = in_feat_shape[1] if i == 0 else nf
        conv_blocks.append(dict(
            w=nrm((nf, c_in, 3, 3)), b=nrm((nf,)),
            gamma=1.0 + nrm((nf,), 0.05), beta=nrm((nf,), 0.05),
            mean=nrm((nf,), 0.05), var=jnp.abs(nrm((nf,), 0.05)) + 1.0))
    params["conv_blocks"] = conv_blocks

    gru_input_dim = nf * (in_feat_shape[-1] //
                          int(jnp.prod(jnp.array(hp["f_pool_size"]))))
    gru_layers = []
    for l in range(hp["nb_rnn_layers"]):
        din = gru_input_dim if l == 0 else 2 * H
        layer = []
        for _ in range(2):  # fwd, bwd
            layer.append(dict(w_ih=nrm((3 * H, din)), w_hh=nrm((3 * H, H)),
                              b_ih=nrm((3 * H,)), b_hh=nrm((3 * H,))))
        gru_layers.append(layer)
    params["gru_layers"] = gru_layers

    mhsa = []
    for _ in range(hp["nb_self_attn_layers"]):
        mhsa.append(dict(in_w=nrm((3 * H, H)), in_b=nrm((3 * H,)),
                         out_w=nrm((H, H)), out_b=nrm((H,)),
                         ln_g=1.0 + nrm((H,), 0.05), ln_b=nrm((H,), 0.05)))
    params["mhsa"] = mhsa

    fnn = []
    for fc in range(hp["nb_fnn_layers"]):
        din = hp["fnn_size"] if fc else H
        fnn.append(dict(w=nrm((hp["fnn_size"], din)), b=nrm((hp["fnn_size"],))))
    din = hp["fnn_size"] if hp["nb_fnn_layers"] else H
    fnn.append(dict(w=nrm((out_dim, din)), b=nrm((out_dim,))))
    params["fnn"] = fnn
    return params


def prepare_params(params, hp):
    """Fold BN, pre-transpose / pre-pack weights, cast matmul weights to bf16."""
    H = hp["rnn_size"]
    bf16 = jnp.bfloat16
    prep = {}

    convs = []
    for blk in params["conv_blocks"]:
        w = blk["w"]                                      # (Cout, Cin, 3, 3)
        cout, cin = w.shape[0], w.shape[1]
        wm = w.transpose(2, 3, 1, 0).reshape(9 * cin, cout).astype(bf16)
        scale = blk["gamma"] / jnp.sqrt(blk["var"] + 1e-5)
        shift = blk["beta"] + scale * (blk["b"] - blk["mean"])
        convs.append(dict(w=wm,
                          scale=scale.reshape(1, cout).astype(jnp.float32),
                          shift=shift.reshape(1, cout).astype(jnp.float32)))
    prep["conv_blocks"] = convs

    grus = []
    for layer in params["gru_layers"]:
        fw, bw = layer
        w_ih = jnp.concatenate([fw["w_ih"], bw["w_ih"]], axis=0).T.astype(bf16)
        b_ih = jnp.concatenate([fw["b_ih"], bw["b_ih"]]).reshape(1, 6 * H)
        zH = jnp.zeros((H, H), jnp.float32)
        Wf, Wb = fw["w_hh"], bw["w_hh"]                   # (3H, H), rows [r; z; n]
        top = jnp.concatenate([Wf[0:H].T, zH, Wf[H:2 * H].T, zH, Wf[2 * H:].T, zH],
                              axis=1)
        bot = jnp.concatenate([zH, Wb[0:H].T, zH, Wb[H:2 * H].T, zH, Wb[2 * H:].T],
                              axis=1)
        w_hh = jnp.concatenate([top, bot], axis=0).astype(bf16)   # (2H, 6H)
        bfh, bbh = fw["b_hh"], bw["b_hh"]
        b_hh = jnp.concatenate([bfh[0:H], bbh[0:H], bfh[H:2 * H], bbh[H:2 * H],
                                bfh[2 * H:], bbh[2 * H:]]).reshape(1, 6 * H)
        grus.append(dict(w_ih=w_ih, b_ih=b_ih, w_hh=w_hh, b_hh=b_hh))
    prep["gru_layers"] = grus

    mh = []
    for m in params["mhsa"]:
        mh.append(dict(wqkv=m["in_w"].T.astype(bf16),
                       bqkv=m["in_b"].reshape(1, 3 * H),
                       wo=m["out_w"].T.astype(bf16),
                       bo=m["out_b"].reshape(1, H),
                       ln_g=m["ln_g"].reshape(1, H),
                       ln_b=m["ln_b"].reshape(1, H)))
    prep["mhsa"] = mh

    ws, bs = [], []
    for fl in params["fnn"]:
        ws.append(fl["w"].T)
        bs.append(fl["b"])
    pad = (-ws[-1].shape[1]) % 128                 # lane-dense final output slab
    if pad:
        ws[-1] = jnp.pad(ws[-1], ((0, 0), (0, pad)))
        bs[-1] = jnp.pad(bs[-1], ((0, pad),))
    prep["fnn_w"] = [w.astype(bf16) for w in ws]
    prep["fnn_b"] = [b.reshape(1, -1).astype(jnp.float32) for b in bs]
    return prep


# ----------------------------------------------------------------------------

if __name__ == "__main__":
    hp = dict(
        unique_classes=8,
        nb_cnn2d_filt=8,
        t_pool_size=[2, 2],
        f_pool_size=[2, 2],
        dropout_rate=0.05,       # identity at inference
        rnn_size=32,
        nb_rnn_layers=2,
        nb_self_attn_layers=2,
        nb_heads=4,
        nb_fnn_layers=1,
        fnn_size=32,
    )
    in_feat_shape = (2, 4, 16, 16)   # (batch, mic_channels, time_steps, mel_bins)
    out_dim = 24                     # out_shape[-1]
    hp["out_dim"] = out_dim

    key = jax.random.PRNGKey(0)
    k_x, k_p = jax.random.split(key)
    x = jax.random.normal(k_x, in_feat_shape, jnp.float32)
    params = init_params(k_p, hp, in_feat_shape, out_dim)
    prep = prepare_params(params, hp)

    fwd_fn = jax.jit(lambda xx, pp: seld_forward(xx, pp, hp))
    doa = jax.block_until_ready(fwd_fn(x, prep))

    expected_T = in_feat_shape[2] // (hp["t_pool_size"][0] * hp["t_pool_size"][1])
    assert doa.shape == (in_feat_shape[0], expected_T, out_dim), doa.shape
    assert jnp.all(jnp.isfinite(doa))
    print("KERNEL_OK")
</pallas_src>

<mosaic_0001>
module attributes {stable_mosaic.version = 11 : i64} {
  func.func @_conv_mm_kernel(%arg0: i32, %arg1: memref<256x36xf32, #tpu.memory_space<vmem>>, %arg2: memref<36x8xbf16, #tpu.memory_space<vmem>>, %arg3: memref<1x8xf32, #tpu.memory_space<vmem>>, %arg4: memref<1x8xf32, #tpu.memory_space<vmem>>, %arg5: memref<256x8xf32, #tpu.memory_space<vmem>>) attributes {dimension_semantics = [#tpu.dimension_semantics<parallel>], iteration_bounds = array<i64: 2>, scalar_prefetch = 0 : i64, scratch_operands = 0 : i64, tpu.core_type = #tpu.core_type<tc>, window_params = [{transform_indices = @transform_0, window_bounds = array<i64: 256, 36>}, {pipeline_mode = #tpu.pipeline_mode<synchronous>, transform_indices = @transform_1, window_bounds = array<i64: 36, 8>}, {pipeline_mode = #tpu.pipeline_mode<synchronous>, transform_indices = @transform_2, window_bounds = array<i64: 1, 8>}, {pipeline_mode = #tpu.pipeline_mode<synchronous>, transform_indices = @transform_3, window_bounds = array<i64: 1, 8>}, {transform_indices = @transform_4, window_bounds = array<i64: 256, 8>}]} {
    %c0 = arith.constant 0 : index
    %c0_0 = arith.constant 0 : index
    %0 = vector.load %arg1[%c0, %c0_0] : memref<256x36xf32, #tpu.memory_space<vmem>>, vector<256x36xf32>
    %1 = arith.truncf %0 : vector<256x36xf32> to vector<256x36xbf16>
    %c0_1 = arith.constant 0 : index
    %c0_2 = arith.constant 0 : index
    %2 = vector.load %arg2[%c0_1, %c0_2] : memref<36x8xbf16, #tpu.memory_space<vmem>>, vector<36x8xbf16>
    %cst = arith.constant dense<0.000000e+00> : vector<256x8xf32>
    %3 = tpu.matmul %1, %2, %cst {dimension_numbers = #tpu.dot_dimension_numbers<[1], [0], [0], [1], [0, 0, 1, 1], [], []>} : vector<256x36xbf16>, vector<36x8xbf16>, vector<256x8xf32> -> vector<256x8xf32>
    %c0_3 = arith.constant 0 : index
    %c0_4 = arith.constant 0 : index
    %4 = vector.load %arg3[%c0_3, %c0_4] : memref<1x8xf32, #tpu.memory_space<vmem>>, vector<1x8xf32>
    %5 = vector.broadcast %4 : vector<1x8xf32> to vector<256x8xf32>
    %6 = arith.mulf %3, %5 : vector<256x8xf32>
    %c0_5 = arith.constant 0 : index
    %c0_6 = arith.constant 0 : index
    %7 = vector.load %arg4[%c0_5, %c0_6] : memref<1x8xf32, #tpu.memory_space<vmem>>, vector<1x8xf32>
    %8 = vector.broadcast %7 : vector<1x8xf32> to vector<256x8xf32>
    %9 = arith.addf %6, %8 : vector<256x8xf32>
    %cst_7 = arith.constant 0.000000e+00 : f32
    %10 = vector.broadcast %cst_7 : f32 to vector<256x8xf32>
    %11 = arith.maximumf %9, %10 : vector<256x8xf32>
    %c0_8 = arith.constant 0 : index
    %c0_9 = arith.constant 0 : index
    %12 = vector.load %arg5[%c0_8, %c0_9] : memref<256x8xf32, #tpu.memory_space<vmem>>, vector<256x8xf32>
    tpu.vector_store %arg5[%c0_8, %c0_9], %11 {strides = array<i32>} : memref<256x8xf32, #tpu.memory_space<vmem>>, vector<256x8xf32>,
    return
  }
  func.func @transform_0(%arg0: i32) -> (i32, i32) {
    %c0_i32 = arith.constant 0 : i32
    %c0_i32_0 = arith.constant 0 : i32
    return %arg0, %c0_i32 : i32, i32
  }
  func.func @transform_1(%arg0: i32) -> (i32, i32) {
    %c0_i32 = arith.constant 0 : i32
    %c0_i32_0 = arith.constant 0 : i32
    %c0_i32_1 = arith.constant 0 : i32
    return %c0_i32, %c0_i32_0 : i32, i32
  }
  func.func @transform_2(%arg0: i32) -> (i32, i32) {
    %c0_i32 = arith.constant 0 : i32
    %c0_i32_0 = arith.constant 0 : i32
    %c0_i32_1 = arith.constant 0 : i32
    return %c0_i32, %c0_i32_0 : i32, i32
  }
  func.func @transform_3(%arg0: i32) -> (i32, i32) {
    %c0_i32 = arith.constant 0 : i32
    %c0_i32_0 = arith.constant 0 : i32
    %c0_i32_1 = arith.constant 0 : i32
    return %c0_i32, %c0_i32_0 : i32, i32
  }
  func.func @transform_4(%arg0: i32) -> (i32, i32) {
    %c0_i32 = arith.constant 0 : i32
    %c0_i32_0 = arith.constant 0 : i32
    return %arg0, %c0_i32 : i32, i32
  }
}

module attributes {stable_mosaic.version = 11 : i64} {
  func.func @_conv_mm_kernel(%arg0: i32, %arg1: memref<128x72xf32, #tpu.memory_space<vmem>>, %arg2: memref<72x8xbf16, #tpu.memory_space<vmem>>, %arg3: memref<1x8xf32, #tpu.memory_space<vmem>>, %arg4: memref<1x8xf32, #tpu.memory_space<vmem>>, %arg5: memref<128x8xf32, #tpu.memory_space<vmem>>) attributes {dimension_semantics = [#tpu.dimension_semantics<parallel>], iteration_bounds = array<i64: 1>, scalar_prefetch = 0 : i64, scratch_operands = 0 : i64, tpu.core_type = #tpu.core_type<tc>, window_params = [{transform_indices = @transform_0, window_bounds = array<i64: 128, 72>}, {pipeline_mode = #tpu.pipeline_mode<synchronous>, transform_indices = @transform_1, window_bounds = array<i64: 72, 8>}, {pipeline_mode = #tpu.pipeline_mode<synchronous>, transform_indices = @transform_2, window_bounds = array<i64: 1, 8>}, {pipeline_mode = #tpu.pipeline_mode<synchronous>, transform_indices = @transform_3, window_bounds = array<i64: 1, 8>}, {transform_indices = @transform_4, window_bounds = array<i64: 128, 8>}]} {
    %c0 = arith.constant 0 : index
    %c0_0 = arith.constant 0 : index
    %0 = vector.load %arg1[%c0, %c0_0] : memref<128x72xf32, #tpu.memory_space<vmem>>, vector<128x72xf32>
    %1 = arith.truncf %0 : vector<128x72xf32> to vector<128x72xbf16>
    %c0_1 = arith.constant 0 : index
    %c0_2 = arith.constant 0 : index
    %2 = vector.load %arg2[%c0_1, %c0_2] : memref<72x8xbf16, #tpu.memory_space<vmem>>, vector<72x8xbf16>
    %cst = arith.constant dense<0.000000e+00> : vector<128x8xf32>
    %3 = tpu.matmul %1, %2, %cst {dimension_numbers = #tpu.dot_dimension_numbers<[1], [0], [0], [1], [0, 0, 1, 1], [], []>} : vector<128x72xbf16>, vector<72x8xbf16>, vector<128x8xf32> -> vector<128x8xf32>
    %c0_3 = arith.constant 0 : index
    %c0_4 = arith.constant 0 : index
    %4 = vector.load %arg3[%c0_3, %c0_4] : memref<1x8xf32, #tpu.memory_space<vmem>>, vector<1x8xf32>
    %5 = vector.broadcast %4 : vector<1x8xf32> to vector<128x8xf32>
    %6 = arith.mulf %3, %5 : vector<128x8xf32>
    %c0_5 = arith.constant 0 : index
    %c0_6 = arith.constant 0 : index
    %7 = vector.load %arg4[%c0_5, %c0_6] : memref<1x8xf32, #tpu.memory_space<vmem>>, vector<1x8xf32>
    %8 = vector.broadcast %7 : vector<1x8xf32> to vector<128x8xf32>
    %9 = arith.addf %6, %8 : vector<128x8xf32>
    %cst_7 = arith.constant 0.000000e+00 : f32
    %10 = vector.broadcast %cst_7 : f32 to vector<128x8xf32>
    %11 = arith.maximumf %9, %10 : vector<128x8xf32>
    %c0_8 = arith.constant 0 : index
    %c0_9 = arith.constant 0 : index
    %12 = vector.load %arg5[%c0_8, %c0_9] : memref<128x8xf32, #tpu.memory_space<vmem>>, vector<128x8xf32>
    tpu.vector_store %arg5[%c0_8, %c0_9], %11 {strides = array<i32>} : memref<128x8xf32, #tpu.memory_space<vmem>>, vector<128x8xf32>,
    return
  }
  func.func @transform_0(%arg0: i32) -> (i32, i32) {
    %c0_i32 = arith.constant 0 : i32
    %c0_i32_0 = arith.constant 0 : i32
    return %arg0, %c0_i32 : i32, i32
  }
  func.func @transform_1(%arg0: i32) -> (i32, i32) {
    %c0_i32 = arith.constant 0 : i32
    %c0_i32_0 = arith.constant 0 : i32
    %c0_i32_1 = arith.constant 0 : i32
    return %c0_i32, %c0_i32_0 : i32, i32
  }
  func.func @transform_2(%arg0: i32) -> (i32, i32) {
    %c0_i32 = arith.constant 0 : i32
    %c0_i32_0 = arith.constant 0 : i32
    %c0_i32_1 = arith.constant 0 : i32
    return %c0_i32, %c0_i32_0 : i32, i32
  }
  func.func @transform_3(%arg0: i32) -> (i32, i32) {
    %c0_i32 = arith.constant 0 : i32
    %c0_i32_0 = arith.constant 0 : i32
    %c0_i32_1 = arith.constant 0 : i32
    return %c0_i32, %c0_i32_0 : i32, i32
  }
  func.func @transform_4(%arg0: i32) -> (i32, i32) {
    %c0_i32 = arith.constant 0 : i32
    %c0_i32_0 = arith.constant 0 : i32
    return %arg0, %c0_i32 : i32, i32
  }
}

module attributes {stable_mosaic.version = 11 : i64} {
  func.func @_linear_kernel(%arg0: i32, %arg1: memref<8x32xf32, #tpu.memory_space<vmem>>, %arg2: memref<32x192xbf16, #tpu.memory_space<vmem>>, %arg3: memref<1x192xf32, #tpu.memory_space<vmem>>, %arg4: memref<8x192xf32, #tpu.memory_space<vmem>>) attributes {dimension_semantics = [#tpu.dimension_semantics<arbitrary>], iteration_bounds = array<i64: 1>, scalar_prefetch = 0 : i64, scratch_operands = 0 : i64, tpu.core_type = #tpu.core_type<tc>, window_params = [{pipeline_mode = #tpu.pipeline_mode<synchronous>, transform_indices = @transform_0, window_bounds = array<i64: 8, 32>}, {pipeline_mode = #tpu.pipeline_mode<synchronous>, transform_indices = @transform_1, window_bounds = array<i64: 32, 192>}, {pipeline_mode = #tpu.pipeline_mode<synchronous>, transform_indices = @transform_2, window_bounds = array<i64: 1, 192>}, {pipeline_mode = #tpu.pipeline_mode<synchronous>, transform_indices = @transform_3, window_bounds = array<i64: 8, 192>}]} {
    %c0 = arith.constant 0 : index
    %c0_0 = arith.constant 0 : index
    %0 = vector.load %arg1[%c0, %c0_0] : memref<8x32xf32, #tpu.memory_space<vmem>>, vector<8x32xf32>
    %1 = arith.truncf %0 : vector<8x32xf32> to vector<8x32xbf16>
    %c0_1 = arith.constant 0 : index
    %c0_2 = arith.constant 0 : index
    %2 = vector.load %arg2[%c0_1, %c0_2] : memref<32x192xbf16, #tpu.memory_space<vmem>>, vector<32x192xbf16>
    %cst = arith.constant dense<0.000000e+00> : vector<8x192xf32>
    %3 = tpu.matmul %1, %2, %cst {dimension_numbers = #tpu.dot_dimension_numbers<[1], [0], [0], [1], [0, 0, 1, 1], [], []>} : vector<8x32xbf16>, vector<32x192xbf16>, vector<8x192xf32> -> vector<8x192xf32>
    %c0_3 = arith.constant 0 : index
    %c0_4 = arith.constant 0 : index
    %4 = vector.load %arg3[%c0_3, %c0_4] : memref<1x192xf32, #tpu.memory_space<vmem>>, vector<1x192xf32>
    %5 = vector.broadcast %4 : vector<1x192xf32> to vector<8x192xf32>
    %6 = arith.addf %3, %5 : vector<8x192xf32>
    %c0_5 = arith.constant 0 : index
    %c0_6 = arith.constant 0 : index
    %7 = vector.load %arg4[%c0_5, %c0_6] : memref<8x192xf32, #tpu.memory_space<vmem>>, vector<8x192xf32>
    tpu.vector_store %arg4[%c0_5, %c0_6], %6 {strides = array<i32>} : memref<8x192xf32, #tpu.memory_space<vmem>>, vector<8x192xf32>,
    return
  }
  func.func @transform_0(%arg0: i32) -> (i32, i32) {
    %c0_i32 = arith.constant 0 : i32
    %c0_i32_0 = arith.constant 0 : i32
    %c0_i32_1 = arith.constant 0 : i32
    return %c0_i32, %c0_i32_0 : i32, i32
  }
  func.func @transform_1(%arg0: i32) -> (i32, i32) {
    %c0_i32 = arith.constant 0 : i32
    %c0_i32_0 = arith.constant 0 : i32
    %c0_i32_1 = arith.constant 0 : i32
    return %c0_i32, %c0_i32_0 : i32, i32
  }
  func.func @transform_2(%arg0: i32) -> (i32, i32) {
    %c0_i32 = arith.constant 0 : i32
    %c0_i32_0 = arith.constant 0 : i32
    %c0_i32_1 = arith.constant 0 : i32
    return %c0_i32, %c0_i32_0 : i32, i32
  }
  func.func @transform_3(%arg0: i32) -> (i32, i32) {
    %c0_i32 = arith.constant 0 : i32
    %c0_i32_0 = arith.constant 0 : i32
    %c0_i32_1 = arith.constant 0 : i32
    return %c0_i32, %c0_i32_0 : i32, i32
  }
}

module attributes {stable_mosaic.version = 11 : i64} {
  func.func @_linear_kernel(%arg0: i32, %arg1: memref<8x64xf32, #tpu.memory_space<vmem>>, %arg2: memref<64x192xbf16, #tpu.memory_space<vmem>>, %arg3: memref<1x192xf32, #tpu.memory_space<vmem>>, %arg4: memref<8x192xf32, #tpu.memory_space<vmem>>) attributes {dimension_semantics = [#tpu.dimension_semantics<arbitrary>], iteration_bounds = array<i64: 1>, scalar_prefetch = 0 : i64, scratch_operands = 0 : i64, tpu.core_type = #tpu.core_type<tc>, window_params = [{pipeline_mode = #tpu.pipeline_mode<synchronous>, transform_indices = @transform_0, window_bounds = array<i64: 8, 64>}, {pipeline_mode = #tpu.pipeline_mode<synchronous>, transform_indices = @transform_1, window_bounds = array<i64: 64, 192>}, {pipeline_mode = #tpu.pipeline_mode<synchronous>, transform_indices = @transform_2, window_bounds = array<i64: 1, 192>}, {pipeline_mode = #tpu.pipeline_mode<synchronous>, transform_indices = @transform_3, window_bounds = array<i64: 8, 192>}]} {
    %c0 = arith.constant 0 : index
    %c0_0 = arith.constant 0 : index
    %0 = vector.load %arg1[%c0, %c0_0] : memref<8x64xf32, #tpu.memory_space<vmem>>, vector<8x64xf32>
    %1 = arith.truncf %0 : vector<8x64xf32> to vector<8x64xbf16>
    %c0_1 = arith.constant 0 : index
    %c0_2 = arith.constant 0 : index
    %2 = vector.load %arg2[%c0_1, %c0_2] : memref<64x192xbf16, #tpu.memory_space<vmem>>, vector<64x192xbf16>
    %cst = arith.constant dense<0.000000e+00> : vector<8x192xf32>
    %3 = tpu.matmul %1, %2, %cst {dimension_numbers = #tpu.dot_dimension_numbers<[1], [0], [0], [1], [0, 0, 1, 1], [], []>} : vector<8x64xbf16>, vector<64x192xbf16>, vector<8x192xf32> -> vector<8x192xf32>
    %c0_3 = arith.constant 0 : index
    %c0_4 = arith.constant 0 : index
    %4 = vector.load %arg3[%c0_3, %c0_4] : memref<1x192xf32, #tpu.memory_space<vmem>>, vector<1x192xf32>
    %5 = vector.broadcast %4 : vector<1x192xf32> to vector<8x192xf32>
    %6 = arith.addf %3, %5 : vector<8x192xf32>
    %c0_5 = arith.constant 0 : index
    %c0_6 = arith.constant 0 : index
    %7 = vector.load %arg4[%c0_5, %c0_6] : memref<8x192xf32, #tpu.memory_space<vmem>>, vector<8x192xf32>
    tpu.vector_store %arg4[%c0_5, %c0_6], %6 {strides = array<i32>} : memref<8x192xf32, #tpu.memory_space<vmem>>, vector<8x192xf32>,
    return
  }
  func.func @transform_0(%arg0: i32) -> (i32, i32) {
    %c0_i32 = arith.constant 0 : i32
    %c0_i32_0 = arith.constant 0 : i32
    %c0_i32_1 = arith.constant 0 : i32
    return %c0_i32, %c0_i32_0 : i32, i32
  }
  func.func @transform_1(%arg0: i32) -> (i32, i32) {
    %c0_i32 = arith.constant 0 : i32
    %c0_i32_0 = arith.constant 0 : i32
    %c0_i32_1 = arith.constant 0 : i32
    return %c0_i32, %c0_i32_0 : i32, i32
  }
  func.func @transform_2(%arg0: i32) -> (i32, i32) {
    %c0_i32 = arith.constant 0 : i32
    %c0_i32_0 = arith.constant 0 : i32
    %c0_i32_1 = arith.constant 0 : i32
    return %c0_i32, %c0_i32_0 : i32, i32
  }
  func.func @transform_3(%arg0: i32) -> (i32, i32) {
    %c0_i32 = arith.constant 0 : i32
    %c0_i32_0 = arith.constant 0 : i32
    %c0_i32_1 = arith.constant 0 : i32
    return %c0_i32, %c0_i32_0 : i32, i32
  }
}

module attributes {stable_mosaic.version = 11 : i64} {
  func.func @_bigru_step_kernel(%arg0: i32, %arg1: memref<1x2x192xf32, #tpu.memory_space<vmem>>, %arg2: memref<64x192xbf16, #tpu.memory_space<vmem>>, %arg3: memref<1x192xf32, #tpu.memory_space<vmem>>, %arg4: memref<4x2x64xf32, #tpu.memory_space<vmem>>, %arg5: memref<2x64xf32, #tpu.memory_space<vmem>>) attributes {dimension_semantics = [#tpu.dimension_semantics<arbitrary>], iteration_bounds = array<i64: 4>, scalar_prefetch = 0 : i64, scratch_operands = 1 : i64, tpu.core_type = #tpu.core_type<tc>, window_params = [{transform_indices = @transform_0, window_bounds = array<i64: 1, 2, 192>}, {pipeline_mode = #tpu.pipeline_mode<synchronous>, transform_indices = @transform_1, window_bounds = array<i64: 64, 192>}, {pipeline_mode = #tpu.pipeline_mode<synchronous>, transform_indices = @transform_2, window_bounds = array<i64: 1, 192>}, {pipeline_mode = #tpu.pipeline_mode<synchronous>, transform_indices = @transform_3, window_bounds = array<i64: 4, 2, 64>}]} {
    %c0_i32 = arith.constant 0 : i32
    %0 = arith.cmpi eq, %arg0, %c0_i32 : i32
    %1 = arith.extui %0 : i1 to i32
    %c0_i32_0 = arith.constant 0 : i32
    %2 = arith.cmpi ne, %1, %c0_i32_0 : i32
    scf.if %2 {
      %cst_15 = arith.constant 0.000000e+00 : f32
      %37 = vector.broadcast %cst_15 : f32 to vector<2x64xf32>
      %c0_16 = arith.constant 0 : index
      %c0_17 = arith.constant 0 : index
      %38 = vector.load %arg5[%c0_16, %c0_17] : memref<2x64xf32, #tpu.memory_space<vmem>>, vector<2x64xf32>
      tpu.vector_store %arg5[%c0_16, %c0_17], %37 {strides = array<i32>} : memref<2x64xf32, #tpu.memory_space<vmem>>, vector<2x64xf32>,
    } else {
    }
    %c0 = arith.constant 0 : index
    %c0_1 = arith.constant 0 : index
    %3 = vector.load %arg5[%c0, %c0_1] : memref<2x64xf32, #tpu.memory_space<vmem>>, vector<2x64xf32>
    %4 = arith.truncf %3 : vector<2x64xf32> to vector<2x64xbf16>
    %c0_2 = arith.constant 0 : index
    %c0_3 = arith.constant 0 : index
    %5 = vector.load %arg2[%c0_2, %c0_3] : memref<64x192xbf16, #tpu.memory_space<vmem>>, vector<64x192xbf16>
    %cst = arith.constant dense<0.000000e+00> : vector<2x192xf32>
    %6 = tpu.matmul %4, %5, %cst {dimension_numbers = #tpu.dot_dimension_numbers<[1], [0], [0], [1], [0, 0, 1, 1], [], []>} : vector<2x64xbf16>, vector<64x192xbf16>, vector<2x192xf32> -> vector<2x192xf32>
    %c0_4 = arith.constant 0 : index
    %c0_5 = arith.constant 0 : index
    %7 = vector.load %arg3[%c0_4, %c0_5] : memref<1x192xf32, #tpu.memory_space<vmem>>, vector<1x192xf32>
    %8 = vector.broadcast %7 : vector<1x192xf32> to vector<2x192xf32>
    %9 = arith.addf %6, %8 : vector<2x192xf32>
    %c0_6 = arith.constant 0 : index
    %c0_7 = arith.constant 0 : index
    %c0_8 = arith.constant 0 : index
    %10 = vector.load %arg1[%c0_6, %c0_7, %c0_8] : memref<1x2x192xf32, #tpu.memory_space<vmem>>, vector<1x2x192xf32>
    %11 = vector.shape_cast %10 : vector<1x2x192xf32> to vector<2x192xf32>
    %12 = vector.extract_strided_slice %11 {offsets = [0, 0], sizes = [2, 128], strides = [1, 1]} : vector<2x192xf32> to vector<2x128xf32>
    %13 = vector.extract_strided_slice %9 {offsets = [0, 0], sizes = [2, 128], strides = [1, 1]} : vector<2x192xf32> to vector<2x128xf32>
    %14 = arith.addf %12, %13 : vector<2x128xf32>
    %15 = arith.negf %14 : vector<2x128xf32>
    %16 = math.exp %15 : vector<2x128xf32>
    %cst_9 = arith.constant 1.000000e+00 : f32
    %17 = vector.broadcast %cst_9 : f32 to vector<2x128xf32>
    %18 = arith.addf %17, %16 : vector<2x128xf32>
    %19 = arith.divf %17, %18 : vector<2x128xf32>
    %20 = vector.extract_strided_slice %19 {offsets = [0, 0], sizes = [2, 64], strides = [1, 1]} : vector<2x128xf32> to vector<2x64xf32>
    %21 = vector.extract_strided_slice %19 {offsets = [0, 64], sizes = [2, 64], strides = [1, 1]} : vector<2x128xf32> to vector<2x64xf32>
    %22 = vector.extract_strided_slice %11 {offsets = [0, 128], sizes = [2, 64], strides = [1, 1]} : vector<2x192xf32> to vector<2x64xf32>
    %23 = vector.extract_strided_slice %9 {offsets = [0, 128], sizes = [2, 64], strides = [1, 1]} : vector<2x192xf32> to vector<2x64xf32>
    %24 = arith.mulf %20, %23 : vector<2x64xf32>
    %25 = arith.addf %22, %24 : vector<2x64xf32>
    %26 = math.tanh %25 : vector<2x64xf32>
    %cst_10 = arith.constant 1.000000e+00 : f32
    %27 = vector.broadcast %cst_10 : f32 to vector<2x64xf32>
    %28 = arith.subf %27, %21 : vector<2x64xf32>
    %29 = arith.mulf %28, %26 : vector<2x64xf32>
    %30 = arith.mulf %21, %3 : vector<2x64xf32>
    %31 = arith.addf %29, %30 : vector<2x64xf32>
    %c0_11 = arith.constant 0 : index
    %c0_12 = arith.constant 0 : index
    %32 = vector.load %arg5[%c0_11, %c0_12] : memref<2x64xf32, #tpu.memory_space<vmem>>, vector<2x64xf32>
    tpu.vector_store %arg5[%c0_11, %c0_12], %31 {strides = array<i32>} : memref<2x64xf32, #tpu.memory_space<vmem>>, vector<2x64xf32>,
    %33 = arith.index_cast %arg0 : i32 to index
    %c0_13 = arith.constant 0 : index
    %c0_14 = arith.constant 0 : index
    %34 = vector.load %arg4[%33, %c0_13, %c0_14] : memref<4x2x64xf32, #tpu.memory_space<vmem>>, vector<1x2x64xf32>
    %35 = vector.shape_cast %34 : vector<1x2x64xf32> to vector<2x64xf32>
    %36 = vector.shape_cast %31 : vector<2x64xf32> to vector<1x2x64xf32>
    tpu.vector_store %arg4[%33, %c0_13, %c0_14], %36 {strides = array<i32>} : memref<4x2x64xf32, #tpu.memory_space<vmem>>, vector<1x2x64xf32>,
    return
  }
  func.func @transform_0(%arg0: i32) -> (i32, i32, i32) {
    %c0_i32 = arith.constant 0 : i32
    %c0_i32_0 = arith.constant 0 : i32
    %c0_i32_1 = arith.constant 0 : i32
    return %arg0, %c0_i32, %c0_i32_0 : i32, i32, i32
  }
  func.func @transform_1(%arg0: i32) -> (i32, i32) {
    %c0_i32 = arith.constant 0 : i32
    %c0_i32_0 = arith.constant 0 : i32
    %c0_i32_1 = arith.constant 0 : i32
    return %c0_i32, %c0_i32_0 : i32, i32
  }
  func.func @transform_2(%arg0: i32) -> (i32, i32) {
    %c0_i32 = arith.constant 0 : i32
    %c0_i32_0 = arith.constant 0 : i32
    %c0_i32_1 = arith.constant 0 : i32
    return %c0_i32, %c0_i32_0 : i32, i32
  }
  func.func @transform_3(%arg0: i32) -> (i32, i32, i32) {
    %c0_i32 = arith.constant 0 : i32
    %c0_i32_0 = arith.constant 0 : i32
    %c0_i32_1 = arith.constant 0 : i32
    %c0_i32_2 = arith.constant 0 : i32
    return %c0_i32, %c0_i32_0, %c0_i32_1 : i32, i32, i32
  }
}

module attributes {stable_mosaic.version = 11 : i64} {
  func.func @_mhsa_kernel(%arg0: i32, %arg1: memref<8x32xf32, #tpu.memory_space<vmem>>, %arg2: memref<8x32xf32, #tpu.memory_space<vmem>>, %arg3: memref<32x96xbf16, #tpu.memory_space<vmem>>, %arg4: memref<1x96xf32, #tpu.memory_space<vmem>>, %arg5: memref<32x32xbf16, #tpu.memory_space<vmem>>, %arg6: memref<1x32xf32, #tpu.memory_space<vmem>>, %arg7: memref<1x32xf32, #tpu.memory_space<vmem>>, %arg8: memref<1x32xf32, #tpu.memory_space<vmem>>, %arg9: memref<8x32xf32, #tpu.memory_space<vmem>>, %arg10: memref<8x32xf32, #tpu.memory_space<vmem>>) attributes {dimension_semantics = [#tpu.dimension_semantics<arbitrary>], iteration_bounds = array<i64: 1>, scalar_prefetch = 0 : i64, scratch_operands = 1 : i64, tpu.core_type = #tpu.core_type<tc>, window_params = [{pipeline_mode = #tpu.pipeline_mode<synchronous>, transform_indices = @transform_0, window_bounds = array<i64: 8, 32>}, {pipeline_mode = #tpu.pipeline_mode<synchronous>, transform_indices = @transform_1, window_bounds = array<i64: 8, 32>}, {pipeline_mode = #tpu.pipeline_mode<synchronous>, transform_indices = @transform_2, window_bounds = array<i64: 32, 96>}, {pipeline_mode = #tpu.pipeline_mode<synchronous>, transform_indices = @transform_3, window_bounds = array<i64: 1, 96>}, {pipeline_mode = #tpu.pipeline_mode<synchronous>, transform_indices = @transform_4, window_bounds = array<i64: 32, 32>}, {pipeline_mode = #tpu.pipeline_mode<synchronous>, transform_indices = @transform_5, window_bounds = array<i64: 1, 32>}, {pipeline_mode = #tpu.pipeline_mode<synchronous>, transform_indices = @transform_6, window_bounds = array<i64: 1, 32>}, {pipeline_mode = #tpu.pipeline_mode<synchronous>, transform_indices = @transform_7, window_bounds = array<i64: 1, 32>}, {pipeline_mode = #tpu.pipeline_mode<synchronous>, transform_indices = @transform_8, window_bounds = array<i64: 8, 32>}]} {
    %c0 = arith.constant 0 : index
    %c0_0 = arith.constant 0 : index
    %0 = vector.load %arg2[%c0, %c0_0] : memref<8x32xf32, #tpu.memory_space<vmem>>, vector<8x32xf32>
    %1 = math.tanh %0 : vector<8x32xf32>
    %c0_1 = arith.constant 0 : index
    %c0_2 = arith.constant 0 : index
    %2 = vector.load %arg1[%c0_1, %c0_2] : memref<8x32xf32, #tpu.memory_space<vmem>>, vector<8x32xf32>
    %3 = math.tanh %2 : vector<8x32xf32>
    %4 = arith.mulf %1, %3 : vector<8x32xf32>
    %5 = arith.truncf %4 : vector<8x32xf32> to vector<8x32xbf16>
    %c0_3 = arith.constant 0 : index
    %c0_4 = arith.constant 0 : index
    %6 = vector.load %arg3[%c0_3, %c0_4] : memref<32x96xbf16, #tpu.memory_space<vmem>>, vector<32x96xbf16>
    %cst = arith.constant dense<0.000000e+00> : vector<8x96xf32>
    %7 = tpu.matmul %5, %6, %cst {dimension_numbers = #tpu.dot_dimension_numbers<[1], [0], [0], [1], [0, 0, 1, 1], [], []>} : vector<8x32xbf16>, vector<32x96xbf16>, vector<8x96xf32> -> vector<8x96xf32>
    %c0_5 = arith.constant 0 : index
    %c0_6 = arith.constant 0 : index
    %8 = vector.load %arg4[%c0_5, %c0_6] : memref<1x96xf32, #tpu.memory_space<vmem>>, vector<1x96xf32>
    %9 = vector.broadcast %8 : vector<1x96xf32> to vector<8x96xf32>
    %10 = arith.addf %7, %9 : vector<8x96xf32>
    %11 = vector.extract_strided_slice %10 {offsets = [0, 0], sizes = [4, 8], strides = [1, 1]} : vector<8x96xf32> to vector<4x8xf32>
    %12 = vector.extract_strided_slice %10 {offsets = [0, 32], sizes = [4, 8], strides = [1, 1]} : vector<8x96xf32> to vector<4x8xf32>
    %13 = vector.extract_strided_slice %10 {offsets = [0, 64], sizes = [4, 8], strides = [1, 1]} : vector<8x96xf32> to vector<4x8xf32>
    %cst_7 = arith.constant dense<0.000000e+00> : vector<4x4xf32>
    %14 = tpu.matmul %11, %12, %cst_7 {dimension_numbers = #tpu.dot_dimension_numbers<[1], [1], [0], [0], [0, 0, 1, 0], [], []>} : vector<4x8xf32>, vector<4x8xf32>, vector<4x4xf32> -> vector<4x4xf32>
    %cst_8 = arith.constant 0.353553385 : f32
    %15 = vector.broadcast %cst_8 : f32 to vector<4x4xf32>
    %16 = arith.mulf %14, %15 : vector<4x4xf32>
    %cst_9 = arith.constant dense<0xFF800000> : vector<4xf32>
    %17 = vector.multi_reduction <maximumf>, %16, %cst_9 [1] : vector<4x4xf32> to vector<4xf32>
    %18 = vector.shape_cast %17 : vector<4xf32> to vector<4x1xf32>
    %19 = vector.broadcast %18 : vector<4x1xf32> to vector<4x4xf32>
    %20 = arith.subf %16, %19 : vector<4x4xf32>
    %21 = math.exp %20 : vector<4x4xf32>
    %cst_10 = arith.constant dense<0.000000e+00> : vector<4xf32>
    %22 = vector.multi_reduction <add>, %21, %cst_10 [1] : vector<4x4xf32> to vector<4xf32>
    %23 = vector.shape_cast %22 : vector<4xf32> to vector<4x1xf32>
    %24 = vector.broadcast %23 : vector<4x1xf32> to vector<4x4xf32>
    %25 = arith.divf %21, %24 : vector<4x4xf32>
    %cst_11 = arith.constant dense<0.000000e+00> : vector<4x8xf32>
    %26 = tpu.matmul %25, %13, %cst_11 {dimension_numbers = #tpu.dot_dimension_numbers<[1], [0], [0], [1], [0, 0, 1, 1], [], []>} : vector<4x4xf32>, vector<4x8xf32>, vector<4x8xf32> -> vector<4x8xf32>
    %c0_12 = arith.constant 0 : index
    %c0_13 = arith.constant 0 : index
    %27 = vector.load %arg10[%c0_12, %c0_13] : memref<8x32xf32, #tpu.memory_space<vmem>>, vector<4x8xf32>
    tpu.vector_store %arg10[%c0_12, %c0_13], %26 {strides = array<i32>} : memref<8x32xf32, #tpu.memory_space<vmem>>, vector<4x8xf32>,
    %28 = vector.extract_strided_slice %10 {offsets = [0, 8], sizes = [4, 8], strides = [1, 1]} : vector<8x96xf32> to vector<4x8xf32>
    %29 = vector.extract_strided_slice %10 {offsets = [0, 40], sizes = [4, 8], strides = [1, 1]} : vector<8x96xf32> to vector<4x8xf32>
    %30 = vector.extract_strided_slice %10 {offsets = [0, 72], sizes = [4, 8], strides = [1, 1]} : vector<8x96xf32> to vector<4x8xf32>
    %cst_14 = arith.constant dense<0.000000e+00> : vector<4x4xf32>
    %31 = tpu.matmul %28, %29, %cst_14 {dimension_numbers = #tpu.dot_dimension_numbers<[1], [1], [0], [0], [0, 0, 1, 0], [], []>} : vector<4x8xf32>, vector<4x8xf32>, vector<4x4xf32> -> vector<4x4xf32>
    %cst_15 = arith.constant 0.353553385 : f32
    %32 = vector.broadcast %cst_15 : f32 to vector<4x4xf32>
    %33 = arith.mulf %31, %32 : vector<4x4xf32>
    %cst_16 = arith.constant dense<0xFF800000> : vector<4xf32>
    %34 = vector.multi_reduction <maximumf>, %33, %cst_16 [1] : vector<4x4xf32> to vector<4xf32>
    %35 = vector.shape_cast %34 : vector<4xf32> to vector<4x1xf32>
    %36 = vector.broadcast %35 : vector<4x1xf32> to vector<4x4xf32>
    %37 = arith.subf %33, %36 : vector<4x4xf32>
    %38 = math.exp %37 : vector<4x4xf32>
    %cst_17 = arith.constant dense<0.000000e+00> : vector<4xf32>
    %39 = vector.multi_reduction <add>, %38, %cst_17 [1] : vector<4x4xf32> to vector<4xf32>
    %40 = vector.shape_cast %39 : vector<4xf32> to vector<4x1xf32>
    %41 = vector.broadcast %40 : vector<4x1xf32> to vector<4x4xf32>
    %42 = arith.divf %38, %41 : vector<4x4xf32>
    %cst_18 = arith.constant dense<0.000000e+00> : vector<4x8xf32>
    %43 = tpu.matmul %42, %30, %cst_18 {dimension_numbers = #tpu.dot_dimension_numbers<[1], [0], [0], [1], [0, 0, 1, 1], [], []>} : vector<4x4xf32>, vector<4x8xf32>, vector<4x8xf32> -> vector<4x8xf32>
    %c0_19 = arith.constant 0 : index
    %c8 = arith.constant 8 : index
    %44 = vector.load %arg10[%c0_19, %c8] : memref<8x32xf32, #tpu.memory_space<vmem>>, vector<4x8xf32>
    tpu.vector_store %arg10[%c0_19, %c8], %43 {strides = array<i32>} : memref<8x32xf32, #tpu.memory_space<vmem>>, vector<4x8xf32>,
    %45 = vector.extract_strided_slice %10 {offsets = [0, 16], sizes = [4, 8], strides = [1, 1]} : vector<8x96xf32> to vector<4x8xf32>
    %46 = vector.extract_strided_slice %10 {offsets = [0, 48], sizes = [4, 8], strides = [1, 1]} : vector<8x96xf32> to vector<4x8xf32>
    %47 = vector.extract_strided_slice %10 {offsets = [0, 80], sizes = [4, 8], strides = [1, 1]} : vector<8x96xf32> to vector<4x8xf32>
    %cst_20 = arith.constant dense<0.000000e+00> : vector<4x4xf32>
    %48 = tpu.matmul %45, %46, %cst_20 {dimension_numbers = #tpu.dot_dimension_numbers<[1], [1], [0], [0], [0, 0, 1, 0], [], []>} : vector<4x8xf32>, vector<4x8xf32>, vector<4x4xf32> -> vector<4x4xf32>
    %cst_21 = arith.constant 0.353553385 : f32
    %49 = vector.broadcast %cst_21 : f32 to vector<4x4xf32>
    %50 = arith.mulf %48, %49 : vector<4x4xf32>
    %cst_22 = arith.constant dense<0xFF800000> : vector<4xf32>
    %51 = vector.multi_reduction <maximumf>, %50, %cst_22 [1] : vector<4x4xf32> to vector<4xf32>
    %52 = vector.shape_cast %51 : vector<4xf32> to vector<4x1xf32>
    %53 = vector.broadcast %52 : vector<4x1xf32> to vector<4x4xf32>
    %54 = arith.subf %50, %53 : vector<4x4xf32>
    %55 = math.exp %54 : vector<4x4xf32>
    %cst_23 = arith.constant dense<0.000000e+00> : vector<4xf32>
    %56 = vector.multi_reduction <add>, %55, %cst_23 [1] : vector<4x4xf32> to vector<4xf32>
    %57 = vector.shape_cast %56 : vector<4xf32> to vector<4x1xf32>
    %58 = vector.broadcast %57 : vector<4x1xf32> to vector<4x4xf32>
    %59 = arith.divf %55, %58 : vector<4x4xf32>
    %cst_24 = arith.constant dense<0.000000e+00> : vector<4x8xf32>
    %60 = tpu.matmul %59, %47, %cst_24 {dimension_numbers = #tpu.dot_dimension_numbers<[1], [0], [0], [1], [0, 0, 1, 1], [], []>} : vector<4x4xf32>, vector<4x8xf32>, vector<4x8xf32> -> vector<4x8xf32>
    %c0_25 = arith.constant 0 : index
    %c16 = arith.constant 16 : index
    %61 = vector.load %arg10[%c0_25, %c16] : memref<8x32xf32, #tpu.memory_space<vmem>>, vector<4x8xf32>
    tpu.vector_store %arg10[%c0_25, %c16], %60 {strides = array<i32>} : memref<8x32xf32, #tpu.memory_space<vmem>>, vector<4x8xf32>,
    %62 = vector.extract_strided_slice %10 {offsets = [0, 24], sizes = [4, 8], strides = [1, 1]} : vector<8x96xf32> to vector<4x8xf32>
    %63 = vector.extract_strided_slice %10 {offsets = [0, 56], sizes = [4, 8], strides = [1, 1]} : vector<8x96xf32> to vector<4x8xf32>
    %64 = vector.extract_strided_slice %10 {offsets = [0, 88], sizes = [4, 8], strides = [1, 1]} : vector<8x96xf32> to vector<4x8xf32>
    %cst_26 = arith.constant dense<0.000000e+00> : vector<4x4xf32>
    %65 = tpu.matmul %62, %63, %cst_26 {dimension_numbers = #tpu.dot_dimension_numbers<[1], [1], [0], [0], [0, 0, 1, 0], [], []>} : vector<4x8xf32>, vector<4x8xf32>, vector<4x4xf32> -> vector<4x4xf32>
    %cst_27 = arith.constant 0.353553385 : f32
    %66 = vector.broadcast %cst_27 : f32 to vector<4x4xf32>
    %67 = arith.mulf %65, %66 : vector<4x4xf32>
    %cst_28 = arith.constant dense<0xFF800000> : vector<4xf32>
    %68 = vector.multi_reduction <maximumf>, %67, %cst_28 [1] : vector<4x4xf32> to vector<4xf32>
    %69 = vector.shape_cast %68 : vector<4xf32> to vector<4x1xf32>
    %70 = vector.broadcast %69 : vector<4x1xf32> to vector<4x4xf32>
    %71 = arith.subf %67, %70 : vector<4x4xf32>
    %72 = math.exp %71 : vector<4x4xf32>
    %cst_29 = arith.constant dense<0.000000e+00> : vector<4xf32>
    %73 = vector.multi_reduction <add>, %72, %cst_29 [1] : vector<4x4xf32> to vector<4xf32>
    %74 = vector.shape_cast %73 : vector<4xf32> to vector<4x1xf32>
    %75 = vector.broadcast %74 : vector<4x1xf32> to vector<4x4xf32>
    %76 = arith.divf %72, %75 : vector<4x4xf32>
    %cst_30 = arith.constant dense<0.000000e+00> : vector<4x8xf32>
    %77 = tpu.matmul %76, %64, %cst_30 {dimension_numbers = #tpu.dot_dimension_numbers<[1], [0], [0], [1], [0, 0, 1, 1], [], []>} : vector<4x4xf32>, vector<4x8xf32>, vector<4x8xf32> -> vector<4x8xf32>
    %c0_31 = arith.constant 0 : index
    %c24 = arith.constant 24 : index
    %78 = vector.load %arg10[%c0_31, %c24] : memref<8x32xf32, #tpu.memory_space<vmem>>, vector<4x8xf32>
    tpu.vector_store %arg10[%c0_31, %c24], %77 {strides = array<i32>} : memref<8x32xf32, #tpu.memory_space<vmem>>, vector<4x8xf32>,
    %79 = vector.extract_strided_slice %10 {offsets = [4, 0], sizes = [4, 8], strides = [1, 1]} : vector<8x96xf32> to vector<4x8xf32>
    %80 = vector.extract_strided_slice %10 {offsets = [4, 32], sizes = [4, 8], strides = [1, 1]} : vector<8x96xf32> to vector<4x8xf32>
    %81 = vector.extract_strided_slice %10 {offsets = [4, 64], sizes = [4, 8], strides = [1, 1]} : vector<8x96xf32> to vector<4x8xf32>
    %cst_32 = arith.constant dense<0.000000e+00> : vector<4x4xf32>
    %82 = tpu.matmul %79, %80, %cst_32 {dimension_numbers = #tpu.dot_dimension_numbers<[1], [1], [0], [0], [0, 0, 1, 0], [], []>} : vector<4x8xf32>, vector<4x8xf32>, vector<4x4xf32> -> vector<4x4xf32>
    %cst_33 = arith.constant 0.353553385 : f32
    %83 = vector.broadcast %cst_33 : f32 to vector<4x4xf32>
    %84 = arith.mulf %82, %83 : vector<4x4xf32>
    %cst_34 = arith.constant dense<0xFF800000> : vector<4xf32>
    %85 = vector.multi_reduction <maximumf>, %84, %cst_34 [1] : vector<4x4xf32> to vector<4xf32>
    %86 = vector.shape_cast %85 : vector<4xf32> to vector<4x1xf32>
    %87 = vector.broadcast %86 : vector<4x1xf32> to vector<4x4xf32>
    %88 = arith.subf %84, %87 : vector<4x4xf32>
    %89 = math.exp %88 : vector<4x4xf32>
    %cst_35 = arith.constant dense<0.000000e+00> : vector<4xf32>
    %90 = vector.multi_reduction <add>, %89, %cst_35 [1] : vector<4x4xf32> to vector<4xf32>
    %91 = vector.shape_cast %90 : vector<4xf32> to vector<4x1xf32>
    %92 = vector.broadcast %91 : vector<4x1xf32> to vector<4x4xf32>
    %93 = arith.divf %89, %92 : vector<4x4xf32>
    %cst_36 = arith.constant dense<0.000000e+00> : vector<4x8xf32>
    %94 = tpu.matmul %93, %81, %cst_36 {dimension_numbers = #tpu.dot_dimension_numbers<[1], [0], [0], [1], [0, 0, 1, 1], [], []>} : vector<4x4xf32>, vector<4x8xf32>, vector<4x8xf32> -> vector<4x8xf32>
    %c4 = arith.constant 4 : index
    %c0_37 = arith.constant 0 : index
    %95 = vector.load %arg10[%c4, %c0_37] : memref<8x32xf32, #tpu.memory_space<vmem>>, vector<4x8xf32>
    tpu.vector_store %arg10[%c4, %c0_37], %94 {strides = array<i32>} : memref<8x32xf32, #tpu.memory_space<vmem>>, vector<4x8xf32>,
    %96 = vector.extract_strided_slice %10 {offsets = [4, 8], sizes = [4, 8], strides = [1, 1]} : vector<8x96xf32> to vector<4x8xf32>
    %97 = vector.extract_strided_slice %10 {offsets = [4, 40], sizes = [4, 8], strides = [1, 1]} : vector<8x96xf32> to vector<4x8xf32>
    %98 = vector.extract_strided_slice %10 {offsets = [4, 72], sizes = [4, 8], strides = [1, 1]} : vector<8x96xf32> to vector<4x8xf32>
    %cst_38 = arith.constant dense<0.000000e+00> : vector<4x4xf32>
    %99 = tpu.matmul %96, %97, %cst_38 {dimension_numbers = #tpu.dot_dimension_numbers<[1], [1], [0], [0], [0, 0, 1, 0], [], []>} : vector<4x8xf32>, vector<4x8xf32>, vector<4x4xf32> -> vector<4x4xf32>
    %cst_39 = arith.constant 0.353553385 : f32
    %100 = vector.broadcast %cst_39 : f32 to vector<4x4xf32>
    %101 = arith.mulf %99, %100 : vector<4x4xf32>
    %cst_40 = arith.constant dense<0xFF800000> : vector<4xf32>
    %102 = vector.multi_reduction <maximumf>, %101, %cst_40 [1] : vector<4x4xf32> to vector<4xf32>
    %103 = vector.shape_cast %102 : vector<4xf32> to vector<4x1xf32>
    %104 = vector.broadcast %103 : vector<4x1xf32> to vector<4x4xf32>
    %105 = arith.subf %101, %104 : vector<4x4xf32>
    %106 = math.exp %105 : vector<4x4xf32>
    %cst_41 = arith.constant dense<0.000000e+00> : vector<4xf32>
    %107 = vector.multi_reduction <add>, %106, %cst_41 [1] : vector<4x4xf32> to vector<4xf32>
    %108 = vector.shape_cast %107 : vector<4xf32> to vector<4x1xf32>
    %109 = vector.broadcast %108 : vector<4x1xf32> to vector<4x4xf32>
    %110 = arith.divf %106, %109 : vector<4x4xf32>
    %cst_42 = arith.constant dense<0.000000e+00> : vector<4x8xf32>
    %111 = tpu.matmul %110, %98, %cst_42 {dimension_numbers = #tpu.dot_dimension_numbers<[1], [0], [0], [1], [0, 0, 1, 1], [], []>} : vector<4x4xf32>, vector<4x8xf32>, vector<4x8xf32> -> vector<4x8xf32>
    %c4_43 = arith.constant 4 : index
    %c8_44 = arith.constant 8 : index
    %112 = vector.load %arg10[%c4_43, %c8_44] : memref<8x32xf32, #tpu.memory_space<vmem>>, vector<4x8xf32>
    tpu.vector_store %arg10[%c4_43, %c8_44], %111 {strides = array<i32>} : memref<8x32xf32, #tpu.memory_space<vmem>>, vector<4x8xf32>,
    %113 = vector.extract_strided_slice %10 {offsets = [4, 16], sizes = [4, 8], strides = [1, 1]} : vector<8x96xf32> to vector<4x8xf32>
    %114 = vector.extract_strided_slice %10 {offsets = [4, 48], sizes = [4, 8], strides = [1, 1]} : vector<8x96xf32> to vector<4x8xf32>
    %115 = vector.extract_strided_slice %10 {offsets = [4, 80], sizes = [4, 8], strides = [1, 1]} : vector<8x96xf32> to vector<4x8xf32>
    %cst_45 = arith.constant dense<0.000000e+00> : vector<4x4xf32>
    %116 = tpu.matmul %113, %114, %cst_45 {dimension_numbers = #tpu.dot_dimension_numbers<[1], [1], [0], [0], [0, 0, 1, 0], [], []>} : vector<4x8xf32>, vector<4x8xf32>, vector<4x4xf32> -> vector<4x4xf32>
    %cst_46 = arith.constant 0.353553385 : f32
    %117 = vector.broadcast %cst_46 : f32 to vector<4x4xf32>
    %118 = arith.mulf %116, %117 : vector<4x4xf32>
    %cst_47 = arith.constant dense<0xFF800000> : vector<4xf32>
    %119 = vector.multi_reduction <maximumf>, %118, %cst_47 [1] : vector<4x4xf32> to vector<4xf32>
    %120 = vector.shape_cast %119 : vector<4xf32> to vector<4x1xf32>
    %121 = vector.broadcast %120 : vector<4x1xf32> to vector<4x4xf32>
    %122 = arith.subf %118, %121 : vector<4x4xf32>
    %123 = math.exp %122 : vector<4x4xf32>
    %cst_48 = arith.constant dense<0.000000e+00> : vector<4xf32>
    %124 = vector.multi_reduction <add>, %123, %cst_48 [1] : vector<4x4xf32> to vector<4xf32>
    %125 = vector.shape_cast %124 : vector<4xf32> to vector<4x1xf32>
    %126 = vector.broadcast %125 : vector<4x1xf32> to vector<4x4xf32>
    %127 = arith.divf %123, %126 : vector<4x4xf32>
    %cst_49 = arith.constant dense<0.000000e+00> : vector<4x8xf32>
    %128 = tpu.matmul %127, %115, %cst_49 {dimension_numbers = #tpu.dot_dimension_numbers<[1], [0], [0], [1], [0, 0, 1, 1], [], []>} : vector<4x4xf32>, vector<4x8xf32>, vector<4x8xf32> -> vector<4x8xf32>
    %c4_50 = arith.constant 4 : index
    %c16_51 = arith.constant 16 : index
    %129 = vector.load %arg10[%c4_50, %c16_51] : memref<8x32xf32, #tpu.memory_space<vmem>>, vector<4x8xf32>
    tpu.vector_store %arg10[%c4_50, %c16_51], %128 {strides = array<i32>} : memref<8x32xf32, #tpu.memory_space<vmem>>, vector<4x8xf32>,
    %130 = vector.extract_strided_slice %10 {offsets = [4, 24], sizes = [4, 8], strides = [1, 1]} : vector<8x96xf32> to vector<4x8xf32>
    %131 = vector.extract_strided_slice %10 {offsets = [4, 56], sizes = [4, 8], strides = [1, 1]} : vector<8x96xf32> to vector<4x8xf32>
    %132 = vector.extract_strided_slice %10 {offsets = [4, 88], sizes = [4, 8], strides = [1, 1]} : vector<8x96xf32> to vector<4x8xf32>
    %cst_52 = arith.constant dense<0.000000e+00> : vector<4x4xf32>
    %133 = tpu.matmul %130, %131, %cst_52 {dimension_numbers = #tpu.dot_dimension_numbers<[1], [1], [0], [0], [0, 0, 1, 0], [], []>} : vector<4x8xf32>, vector<4x8xf32>, vector<4x4xf32> -> vector<4x4xf32>
    %cst_53 = arith.constant 0.353553385 : f32
    %134 = vector.broadcast %cst_53 : f32 to vector<4x4xf32>
    %135 = arith.mulf %133, %134 : vector<4x4xf32>
    %cst_54 = arith.constant dense<0xFF800000> : vector<4xf32>
    %136 = vector.multi_reduction <maximumf>, %135, %cst_54 [1] : vector<4x4xf32> to vector<4xf32>
    %137 = vector.shape_cast %136 : vector<4xf32> to vector<4x1xf32>
    %138 = vector.broadcast %137 : vector<4x1xf32> to vector<4x4xf32>
    %139 = arith.subf %135, %138 : vector<4x4xf32>
    %140 = math.exp %139 : vector<4x4xf32>
    %cst_55 = arith.constant dense<0.000000e+00> : vector<4xf32>
    %141 = vector.multi_reduction <add>, %140, %cst_55 [1] : vector<4x4xf32> to vector<4xf32>
    %142 = vector.shape_cast %141 : vector<4xf32> to vector<4x1xf32>
    %143 = vector.broadcast %142 : vector<4x1xf32> to vector<4x4xf32>
    %144 = arith.divf %140, %143 : vector<4x4xf32>
    %cst_56 = arith.constant dense<0.000000e+00> : vector<4x8xf32>
    %145 = tpu.matmul %144, %132, %cst_56 {dimension_numbers = #tpu.dot_dimension_numbers<[1], [0], [0], [1], [0, 0, 1, 1], [], []>} : vector<4x4xf32>, vector<4x8xf32>, vector<4x8xf32> -> vector<4x8xf32>
    %c4_57 = arith.constant 4 : index
    %c24_58 = arith.constant 24 : index
    %146 = vector.load %arg10[%c4_57, %c24_58] : memref<8x32xf32, #tpu.memory_space<vmem>>, vector<4x8xf32>
    tpu.vector_store %arg10[%c4_57, %c24_58], %145 {strides = array<i32>} : memref<8x32xf32, #tpu.memory_space<vmem>>, vector<4x8xf32>,
    %c0_59 = arith.constant 0 : index
    %c0_60 = arith.constant 0 : index
    %147 = vector.load %arg10[%c0_59, %c0_60] : memref<8x32xf32, #tpu.memory_space<vmem>>, vector<8x32xf32>
    %148 = arith.truncf %147 : vector<8x32xf32> to vector<8x32xbf16>
    %c0_61 = arith.constant 0 : index
    %c0_62 = arith.constant 0 : index
    %149 = vector.load %arg5[%c0_61, %c0_62] : memref<32x32xbf16, #tpu.memory_space<vmem>>, vector<32x32xbf16>
    %cst_63 = arith.constant dense<0.000000e+00> : vector<8x32xf32>
    %150 = tpu.matmul %148, %149, %cst_63 {dimension_numbers = #tpu.dot_dimension_numbers<[1], [0], [0], [1], [0, 0, 1, 1], [], []>} : vector<8x32xbf16>, vector<32x32xbf16>, vector<8x32xf32> -> vector<8x32xf32>
    %c0_64 = arith.constant 0 : index
    %c0_65 = arith.constant 0 : index
    %151 = vector.load %arg6[%c0_64, %c0_65] : memref<1x32xf32, #tpu.memory_space<vmem>>, vector<1x32xf32>
    %152 = vector.broadcast %151 : vector<1x32xf32> to vector<8x32xf32>
    %153 = arith.addf %150, %152 : vector<8x32xf32>
    %154 = arith.addf %153, %4 : vector<8x32xf32>
    %cst_66 = arith.constant dense<0.000000e+00> : vector<8xf32>
    %155 = vector.multi_reduction <add>, %154, %cst_66 [1] : vector<8x32xf32> to vector<8xf32>
    %156 = vector.shape_cast %155 : vector<8xf32> to vector<8x1xf32>
    %cst_67 = arith.constant 3.200000e+01 : f32
    %157 = vector.broadcast %cst_67 : f32 to vector<8x1xf32>
    %158 = arith.divf %156, %157 : vector<8x1xf32>
    %159 = vector.broadcast %158 : vector<8x1xf32> to vector<8x32xf32>
    %160 = arith.subf %154, %159 : vector<8x32xf32>
    %161 = arith.mulf %160, %160 : vector<8x32xf32>
    %cst_68 = arith.constant dense<0.000000e+00> : vector<8xf32>
    %162 = vector.multi_reduction <add>, %161, %cst_68 [1] : vector<8x32xf32> to vector<8xf32>
    %163 = vector.shape_cast %162 : vector<8xf32> to vector<8x1xf32>
    %cst_69 = arith.constant 3.200000e+01 : f32
    %164 = vector.broadcast %cst_69 : f32 to vector<8x1xf32>
    %165 = arith.divf %163, %164 : vector<8x1xf32>
    %cst_70 = arith.constant 9.99999974E-6 : f32
    %166 = vector.broadcast %cst_70 : f32 to vector<8x1xf32>
    %167 = arith.addf %165, %166 : vector<8x1xf32>
    %168 = math.rsqrt %167 : vector<8x1xf32>
    %169 = vector.broadcast %168 : vector<8x1xf32> to vector<8x32xf32>
    %170 = arith.mulf %160, %169 : vector<8x32xf32>
    %c0_71 = arith.constant 0 : index
    %c0_72 = arith.constant 0 : index
    %171 = vector.load %arg7[%c0_71, %c0_72] : memref<1x32xf32, #tpu.memory_space<vmem>>, vector<1x32xf32>
    %172 = vector.broadcast %171 : vector<1x32xf32> to vector<8x32xf32>
    %173 = arith.mulf %170, %172 : vector<8x32xf32>
    %c0_73 = arith.constant 0 : index
    %c0_74 = arith.constant 0 : index
    %174 = vector.load %arg8[%c0_73, %c0_74] : memref<1x32xf32, #tpu.memory_space<vmem>>, vector<1x32xf32>
    %175 = vector.broadcast %174 : vector<1x32xf32> to vector<8x32xf32>
    %176 = arith.addf %173, %175 : vector<8x32xf32>
    %c0_75 = arith.constant 0 : index
    %c0_76 = arith.constant 0 : index
    %177 = vector.load %arg9[%c0_75, %c0_76] : memref<8x32xf32, #tpu.memory_space<vmem>>, vector<8x32xf32>
    tpu.vector_store %arg9[%c0_75, %c0_76], %176 {strides = array<i32>} : memref<8x32xf32, #tpu.memory_space<vmem>>, vector<8x32xf32>,
    return
  }
  func.func @transform_0(%arg0: i32) -> (i32, i32) {
    %c0_i32 = arith.constant 0 : i32
    %c0_i32_0 = arith.constant 0 : i32
    %c0_i32_1 = arith.constant 0 : i32
    return %c0_i32, %c0_i32_0 : i32, i32
  }
  func.func @transform_1(%arg0: i32) -> (i32, i32) {
    %c0_i32 = arith.constant 0 : i32
    %c0_i32_0 = arith.constant 0 : i32
    %c0_i32_1 = arith.constant 0 : i32
    return %c0_i32, %c0_i32_0 : i32, i32
  }
  func.func @transform_2(%arg0: i32) -> (i32, i32) {
    %c0_i32 = arith.constant 0 : i32
    %c0_i32_0 = arith.constant 0 : i32
    %c0_i32_1 = arith.constant 0 : i32
    return %c0_i32, %c0_i32_0 : i32, i32
  }
  func.func @transform_3(%arg0: i32) -> (i32, i32) {
    %c0_i32 = arith.constant 0 : i32
    %c0_i32_0 = arith.constant 0 : i32
    %c0_i32_1 = arith.constant 0 : i32
    return %c0_i32, %c0_i32_0 : i32, i32
  }
  func.func @transform_4(%arg0: i32) -> (i32, i32) {
    %c0_i32 = arith.constant 0 : i32
    %c0_i32_0 = arith.constant 0 : i32
    %c0_i32_1 = arith.constant 0 : i32
    return %c0_i32, %c0_i32_0 : i32, i32
  }
  func.func @transform_5(%arg0: i32) -> (i32, i32) {
    %c0_i32 = arith.constant 0 : i32
    %c0_i32_0 = arith.constant 0 : i32
    %c0_i32_1 = arith.constant 0 : i32
    return %c0_i32, %c0_i32_0 : i32, i32
  }
  func.func @transform_6(%arg0: i32) -> (i32, i32) {
    %c0_i32 = arith.constant 0 : i32
    %c0_i32_0 = arith.constant 0 : i32
    %c0_i32_1 = arith.constant 0 : i32
    return %c0_i32, %c0_i32_0 : i32, i32
  }
  func.func @transform_7(%arg0: i32) -> (i32, i32) {
    %c0_i32 = arith.constant 0 : i32
    %c0_i32_0 = arith.constant 0 : i32
    %c0_i32_1 = arith.constant 0 : i32
    return %c0_i32, %c0_i32_0 : i32, i32
  }
  func.func @transform_8(%arg0: i32) -> (i32, i32) {
    %c0_i32 = arith.constant 0 : i32
    %c0_i32_0 = arith.constant 0 : i32
    %c0_i32_1 = arith.constant 0 : i32
    return %c0_i32, %c0_i32_0 : i32, i32
  }
}

module attributes {stable_mosaic.version = 11 : i64} {
  func.func @_mhsa_kernel(%arg0: i32, %arg1: memref<8x32xf32, #tpu.memory_space<vmem>>, %arg2: memref<32x96xbf16, #tpu.memory_space<vmem>>, %arg3: memref<1x96xf32, #tpu.memory_space<vmem>>, %arg4: memref<32x32xbf16, #tpu.memory_space<vmem>>, %arg5: memref<1x32xf32, #tpu.memory_space<vmem>>, %arg6: memref<1x32xf32, #tpu.memory_space<vmem>>, %arg7: memref<1x32xf32, #tpu.memory_space<vmem>>, %arg8: memref<8x32xf32, #tpu.memory_space<vmem>>, %arg9: memref<8x32xf32, #tpu.memory_space<vmem>>) attributes {dimension_semantics = [#tpu.dimension_semantics<arbitrary>], iteration_bounds = array<i64: 1>, scalar_prefetch = 0 : i64, scratch_operands = 1 : i64, tpu.core_type = #tpu.core_type<tc>, window_params = [{pipeline_mode = #tpu.pipeline_mode<synchronous>, transform_indices = @transform_0, window_bounds = array<i64: 8, 32>}, {pipeline_mode = #tpu.pipeline_mode<synchronous>, transform_indices = @transform_1, window_bounds = array<i64: 32, 96>}, {pipeline_mode = #tpu.pipeline_mode<synchronous>, transform_indices = @transform_2, window_bounds = array<i64: 1, 96>}, {pipeline_mode = #tpu.pipeline_mode<synchronous>, transform_indices = @transform_3, window_bounds = array<i64: 32, 32>}, {pipeline_mode = #tpu.pipeline_mode<synchronous>, transform_indices = @transform_4, window_bounds = array<i64: 1, 32>}, {pipeline_mode = #tpu.pipeline_mode<synchronous>, transform_indices = @transform_5, window_bounds = array<i64: 1, 32>}, {pipeline_mode = #tpu.pipeline_mode<synchronous>, transform_indices = @transform_6, window_bounds = array<i64: 1, 32>}, {pipeline_mode = #tpu.pipeline_mode<synchronous>, transform_indices = @transform_7, window_bounds = array<i64: 8, 32>}]} {
    %c0 = arith.constant 0 : index
    %c0_0 = arith.constant 0 : index
    %0 = vector.load %arg1[%c0, %c0_0] : memref<8x32xf32, #tpu.memory_space<vmem>>, vector<8x32xf32>
    %1 = arith.truncf %0 : vector<8x32xf32> to vector<8x32xbf16>
    %c0_1 = arith.constant 0 : index
    %c0_2 = arith.constant 0 : index
    %2 = vector.load %arg2[%c0_1, %c0_2] : memref<32x96xbf16, #tpu.memory_space<vmem>>, vector<32x96xbf16>
    %cst = arith.constant dense<0.000000e+00> : vector<8x96xf32>
    %3 = tpu.matmul %1, %2, %cst {dimension_numbers = #tpu.dot_dimension_numbers<[1], [0], [0], [1], [0, 0, 1, 1], [], []>} : vector<8x32xbf16>, vector<32x96xbf16>, vector<8x96xf32> -> vector<8x96xf32>
    %c0_3 = arith.constant 0 : index
    %c0_4 = arith.constant 0 : index
    %4 = vector.load %arg3[%c0_3, %c0_4] : memref<1x96xf32, #tpu.memory_space<vmem>>, vector<1x96xf32>
    %5 = vector.broadcast %4 : vector<1x96xf32> to vector<8x96xf32>
    %6 = arith.addf %3, %5 : vector<8x96xf32>
    %7 = vector.extract_strided_slice %6 {offsets = [0, 0], sizes = [4, 8], strides = [1, 1]} : vector<8x96xf32> to vector<4x8xf32>
    %8 = vector.extract_strided_slice %6 {offsets = [0, 32], sizes = [4, 8], strides = [1, 1]} : vector<8x96xf32> to vector<4x8xf32>
    %9 = vector.extract_strided_slice %6 {offsets = [0, 64], sizes = [4, 8], strides = [1, 1]} : vector<8x96xf32> to vector<4x8xf32>
    %cst_5 = arith.constant dense<0.000000e+00> : vector<4x4xf32>
    %10 = tpu.matmul %7, %8, %cst_5 {dimension_numbers = #tpu.dot_dimension_numbers<[1], [1], [0], [0], [0, 0, 1, 0], [], []>} : vector<4x8xf32>, vector<4x8xf32>, vector<4x4xf32> -> vector<4x4xf32>
    %cst_6 = arith.constant 0.353553385 : f32
    %11 = vector.broadcast %cst_6 : f32 to vector<4x4xf32>
    %12 = arith.mulf %10, %11 : vector<4x4xf32>
    %cst_7 = arith.constant dense<0xFF800000> : vector<4xf32>
    %13 = vector.multi_reduction <maximumf>, %12, %cst_7 [1] : vector<4x4xf32> to vector<4xf32>
    %14 = vector.shape_cast %13 : vector<4xf32> to vector<4x1xf32>
    %15 = vector.broadcast %14 : vector<4x1xf32> to vector<4x4xf32>
    %16 = arith.subf %12, %15 : vector<4x4xf32>
    %17 = math.exp %16 : vector<4x4xf32>
    %cst_8 = arith.constant dense<0.000000e+00> : vector<4xf32>
    %18 = vector.multi_reduction <add>, %17, %cst_8 [1] : vector<4x4xf32> to vector<4xf32>
    %19 = vector.shape_cast %18 : vector<4xf32> to vector<4x1xf32>
    %20 = vector.broadcast %19 : vector<4x1xf32> to vector<4x4xf32>
    %21 = arith.divf %17, %20 : vector<4x4xf32>
    %cst_9 = arith.constant dense<0.000000e+00> : vector<4x8xf32>
    %22 = tpu.matmul %21, %9, %cst_9 {dimension_numbers = #tpu.dot_dimension_numbers<[1], [0], [0], [1], [0, 0, 1, 1], [], []>} : vector<4x4xf32>, vector<4x8xf32>, vector<4x8xf32> -> vector<4x8xf32>
    %c0_10 = arith.constant 0 : index
    %c0_11 = arith.constant 0 : index
    %23 = vector.load %arg9[%c0_10, %c0_11] : memref<8x32xf32, #tpu.memory_space<vmem>>, vector<4x8xf32>
    tpu.vector_store %arg9[%c0_10, %c0_11], %22 {strides = array<i32>} : memref<8x32xf32, #tpu.memory_space<vmem>>, vector<4x8xf32>,
    %24 = vector.extract_strided_slice %6 {offsets = [0, 8], sizes = [4, 8], strides = [1, 1]} : vector<8x96xf32> to vector<4x8xf32>
    %25 = vector.extract_strided_slice %6 {offsets = [0, 40], sizes = [4, 8], strides = [1, 1]} : vector<8x96xf32> to vector<4x8xf32>
    %26 = vector.extract_strided_slice %6 {offsets = [0, 72], sizes = [4, 8], strides = [1, 1]} : vector<8x96xf32> to vector<4x8xf32>
    %cst_12 = arith.constant dense<0.000000e+00> : vector<4x4xf32>
    %27 = tpu.matmul %24, %25, %cst_12 {dimension_numbers = #tpu.dot_dimension_numbers<[1], [1], [0], [0], [0, 0, 1, 0], [], []>} : vector<4x8xf32>, vector<4x8xf32>, vector<4x4xf32> -> vector<4x4xf32>
    %cst_13 = arith.constant 0.353553385 : f32
    %28 = vector.broadcast %cst_13 : f32 to vector<4x4xf32>
    %29 = arith.mulf %27, %28 : vector<4x4xf32>
    %cst_14 = arith.constant dense<0xFF800000> : vector<4xf32>
    %30 = vector.multi_reduction <maximumf>, %29, %cst_14 [1] : vector<4x4xf32> to vector<4xf32>
    %31 = vector.shape_cast %30 : vector<4xf32> to vector<4x1xf32>
    %32 = vector.broadcast %31 : vector<4x1xf32> to vector<4x4xf32>
    %33 = arith.subf %29, %32 : vector<4x4xf32>
    %34 = math.exp %33 : vector<4x4xf32>
    %cst_15 = arith.constant dense<0.000000e+00> : vector<4xf32>
    %35 = vector.multi_reduction <add>, %34, %cst_15 [1] : vector<4x4xf32> to vector<4xf32>
    %36 = vector.shape_cast %35 : vector<4xf32> to vector<4x1xf32>
    %37 = vector.broadcast %36 : vector<4x1xf32> to vector<4x4xf32>
    %38 = arith.divf %34, %37 : vector<4x4xf32>
    %cst_16 = arith.constant dense<0.000000e+00> : vector<4x8xf32>
    %39 = tpu.matmul %38, %26, %cst_16 {dimension_numbers = #tpu.dot_dimension_numbers<[1], [0], [0], [1], [0, 0, 1, 1], [], []>} : vector<4x4xf32>, vector<4x8xf32>, vector<4x8xf32> -> vector<4x8xf32>
    %c0_17 = arith.constant 0 : index
    %c8 = arith.constant 8 : index
    %40 = vector.load %arg9[%c0_17, %c8] : memref<8x32xf32, #tpu.memory_space<vmem>>, vector<4x8xf32>
    tpu.vector_store %arg9[%c0_17, %c8], %39 {strides = array<i32>} : memref<8x32xf32, #tpu.memory_space<vmem>>, vector<4x8xf32>,
    %41 = vector.extract_strided_slice %6 {offsets = [0, 16], sizes = [4, 8], strides = [1, 1]} : vector<8x96xf32> to vector<4x8xf32>
    %42 = vector.extract_strided_slice %6 {offsets = [0, 48], sizes = [4, 8], strides = [1, 1]} : vector<8x96xf32> to vector<4x8xf32>
    %43 = vector.extract_strided_slice %6 {offsets = [0, 80], sizes = [4, 8], strides = [1, 1]} : vector<8x96xf32> to vector<4x8xf32>
    %cst_18 = arith.constant dense<0.000000e+00> : vector<4x4xf32>
    %44 = tpu.matmul %41, %42, %cst_18 {dimension_numbers = #tpu.dot_dimension_numbers<[1], [1], [0], [0], [0, 0, 1, 0], [], []>} : vector<4x8xf32>, vector<4x8xf32>, vector<4x4xf32> -> vector<4x4xf32>
    %cst_19 = arith.constant 0.353553385 : f32
    %45 = vector.broadcast %cst_19 : f32 to vector<4x4xf32>
    %46 = arith.mulf %44, %45 : vector<4x4xf32>
    %cst_20 = arith.constant dense<0xFF800000> : vector<4xf32>
    %47 = vector.multi_reduction <maximumf>, %46, %cst_20 [1] : vector<4x4xf32> to vector<4xf32>
    %48 = vector.shape_cast %47 : vector<4xf32> to vector<4x1xf32>
    %49 = vector.broadcast %48 : vector<4x1xf32> to vector<4x4xf32>
    %50 = arith.subf %46, %49 : vector<4x4xf32>
    %51 = math.exp %50 : vector<4x4xf32>
    %cst_21 = arith.constant dense<0.000000e+00> : vector<4xf32>
    %52 = vector.multi_reduction <add>, %51, %cst_21 [1] : vector<4x4xf32> to vector<4xf32>
    %53 = vector.shape_cast %52 : vector<4xf32> to vector<4x1xf32>
    %54 = vector.broadcast %53 : vector<4x1xf32> to vector<4x4xf32>
    %55 = arith.divf %51, %54 : vector<4x4xf32>
    %cst_22 = arith.constant dense<0.000000e+00> : vector<4x8xf32>
    %56 = tpu.matmul %55, %43, %cst_22 {dimension_numbers = #tpu.dot_dimension_numbers<[1], [0], [0], [1], [0, 0, 1, 1], [], []>} : vector<4x4xf32>, vector<4x8xf32>, vector<4x8xf32> -> vector<4x8xf32>
    %c0_23 = arith.constant 0 : index
    %c16 = arith.constant 16 : index
    %57 = vector.load %arg9[%c0_23, %c16] : memref<8x32xf32, #tpu.memory_space<vmem>>, vector<4x8xf32>
    tpu.vector_store %arg9[%c0_23, %c16], %56 {strides = array<i32>} : memref<8x32xf32, #tpu.memory_space<vmem>>, vector<4x8xf32>,
    %58 = vector.extract_strided_slice %6 {offsets = [0, 24], sizes = [4, 8], strides = [1, 1]} : vector<8x96xf32> to vector<4x8xf32>
    %59 = vector.extract_strided_slice %6 {offsets = [0, 56], sizes = [4, 8], strides = [1, 1]} : vector<8x96xf32> to vector<4x8xf32>
    %60 = vector.extract_strided_slice %6 {offsets = [0, 88], sizes = [4, 8], strides = [1, 1]} : vector<8x96xf32> to vector<4x8xf32>
    %cst_24 = arith.constant dense<0.000000e+00> : vector<4x4xf32>
    %61 = tpu.matmul %58, %59, %cst_24 {dimension_numbers = #tpu.dot_dimension_numbers<[1], [1], [0], [0], [0, 0, 1, 0], [], []>} : vector<4x8xf32>, vector<4x8xf32>, vector<4x4xf32> -> vector<4x4xf32>
    %cst_25 = arith.constant 0.353553385 : f32
    %62 = vector.broadcast %cst_25 : f32 to vector<4x4xf32>
    %63 = arith.mulf %61, %62 : vector<4x4xf32>
    %cst_26 = arith.constant dense<0xFF800000> : vector<4xf32>
    %64 = vector.multi_reduction <maximumf>, %63, %cst_26 [1] : vector<4x4xf32> to vector<4xf32>
    %65 = vector.shape_cast %64 : vector<4xf32> to vector<4x1xf32>
    %66 = vector.broadcast %65 : vector<4x1xf32> to vector<4x4xf32>
    %67 = arith.subf %63, %66 : vector<4x4xf32>
    %68 = math.exp %67 : vector<4x4xf32>
    %cst_27 = arith.constant dense<0.000000e+00> : vector<4xf32>
    %69 = vector.multi_reduction <add>, %68, %cst_27 [1] : vector<4x4xf32> to vector<4xf32>
    %70 = vector.shape_cast %69 : vector<4xf32> to vector<4x1xf32>
    %71 = vector.broadcast %70 : vector<4x1xf32> to vector<4x4xf32>
    %72 = arith.divf %68, %71 : vector<4x4xf32>
    %cst_28 = arith.constant dense<0.000000e+00> : vector<4x8xf32>
    %73 = tpu.matmul %72, %60, %cst_28 {dimension_numbers = #tpu.dot_dimension_numbers<[1], [0], [0], [1], [0, 0, 1, 1], [], []>} : vector<4x4xf32>, vector<4x8xf32>, vector<4x8xf32> -> vector<4x8xf32>
    %c0_29 = arith.constant 0 : index
    %c24 = arith.constant 24 : index
    %74 = vector.load %arg9[%c0_29, %c24] : memref<8x32xf32, #tpu.memory_space<vmem>>, vector<4x8xf32>
    tpu.vector_store %arg9[%c0_29, %c24], %73 {strides = array<i32>} : memref<8x32xf32, #tpu.memory_space<vmem>>, vector<4x8xf32>,
    %75 = vector.extract_strided_slice %6 {offsets = [4, 0], sizes = [4, 8], strides = [1, 1]} : vector<8x96xf32> to vector<4x8xf32>
    %76 = vector.extract_strided_slice %6 {offsets = [4, 32], sizes = [4, 8], strides = [1, 1]} : vector<8x96xf32> to vector<4x8xf32>
    %77 = vector.extract_strided_slice %6 {offsets = [4, 64], sizes = [4, 8], strides = [1, 1]} : vector<8x96xf32> to vector<4x8xf32>
    %cst_30 = arith.constant dense<0.000000e+00> : vector<4x4xf32>
    %78 = tpu.matmul %75, %76, %cst_30 {dimension_numbers = #tpu.dot_dimension_numbers<[1], [1], [0], [0], [0, 0, 1, 0], [], []>} : vector<4x8xf32>, vector<4x8xf32>, vector<4x4xf32> -> vector<4x4xf32>
    %cst_31 = arith.constant 0.353553385 : f32
    %79 = vector.broadcast %cst_31 : f32 to vector<4x4xf32>
    %80 = arith.mulf %78, %79 : vector<4x4xf32>
    %cst_32 = arith.constant dense<0xFF800000> : vector<4xf32>
    %81 = vector.multi_reduction <maximumf>, %80, %cst_32 [1] : vector<4x4xf32> to vector<4xf32>
    %82 = vector.shape_cast %81 : vector<4xf32> to vector<4x1xf32>
    %83 = vector.broadcast %82 : vector<4x1xf32> to vector<4x4xf32>
    %84 = arith.subf %80, %83 : vector<4x4xf32>
    %85 = math.exp %84 : vector<4x4xf32>
    %cst_33 = arith.constant dense<0.000000e+00> : vector<4xf32>
    %86 = vector.multi_reduction <add>, %85, %cst_33 [1] : vector<4x4xf32> to vector<4xf32>
    %87 = vector.shape_cast %86 : vector<4xf32> to vector<4x1xf32>
    %88 = vector.broadcast %87 : vector<4x1xf32> to vector<4x4xf32>
    %89 = arith.divf %85, %88 : vector<4x4xf32>
    %cst_34 = arith.constant dense<0.000000e+00> : vector<4x8xf32>
    %90 = tpu.matmul %89, %77, %cst_34 {dimension_numbers = #tpu.dot_dimension_numbers<[1], [0], [0], [1], [0, 0, 1, 1], [], []>} : vector<4x4xf32>, vector<4x8xf32>, vector<4x8xf32> -> vector<4x8xf32>
    %c4 = arith.constant 4 : index
    %c0_35 = arith.constant 0 : index
    %91 = vector.load %arg9[%c4, %c0_35] : memref<8x32xf32, #tpu.memory_space<vmem>>, vector<4x8xf32>
    tpu.vector_store %arg9[%c4, %c0_35], %90 {strides = array<i32>} : memref<8x32xf32, #tpu.memory_space<vmem>>, vector<4x8xf32>,
    %92 = vector.extract_strided_slice %6 {offsets = [4, 8], sizes = [4, 8], strides = [1, 1]} : vector<8x96xf32> to vector<4x8xf32>
    %93 = vector.extract_strided_slice %6 {offsets = [4, 40], sizes = [4, 8], strides = [1, 1]} : vector<8x96xf32> to vector<4x8xf32>
    %94 = vector.extract_strided_slice %6 {offsets = [4, 72], sizes = [4, 8], strides = [1, 1]} : vector<8x96xf32> to vector<4x8xf32>
    %cst_36 = arith.constant dense<0.000000e+00> : vector<4x4xf32>
    %95 = tpu.matmul %92, %93, %cst_36 {dimension_numbers = #tpu.dot_dimension_numbers<[1], [1], [0], [0], [0, 0, 1, 0], [], []>} : vector<4x8xf32>, vector<4x8xf32>, vector<4x4xf32> -> vector<4x4xf32>
    %cst_37 = arith.constant 0.353553385 : f32
    %96 = vector.broadcast %cst_37 : f32 to vector<4x4xf32>
    %97 = arith.mulf %95, %96 : vector<4x4xf32>
    %cst_38 = arith.constant dense<0xFF800000> : vector<4xf32>
    %98 = vector.multi_reduction <maximumf>, %97, %cst_38 [1] : vector<4x4xf32> to vector<4xf32>
    %99 = vector.shape_cast %98 : vector<4xf32> to vector<4x1xf32>
    %100 = vector.broadcast %99 : vector<4x1xf32> to vector<4x4xf32>
    %101 = arith.subf %97, %100 : vector<4x4xf32>
    %102 = math.exp %101 : vector<4x4xf32>
    %cst_39 = arith.constant dense<0.000000e+00> : vector<4xf32>
    %103 = vector.multi_reduction <add>, %102, %cst_39 [1] : vector<4x4xf32> to vector<4xf32>
    %104 = vector.shape_cast %103 : vector<4xf32> to vector<4x1xf32>
    %105 = vector.broadcast %104 : vector<4x1xf32> to vector<4x4xf32>
    %106 = arith.divf %102, %105 : vector<4x4xf32>
    %cst_40 = arith.constant dense<0.000000e+00> : vector<4x8xf32>
    %107 = tpu.matmul %106, %94, %cst_40 {dimension_numbers = #tpu.dot_dimension_numbers<[1], [0], [0], [1], [0, 0, 1, 1], [], []>} : vector<4x4xf32>, vector<4x8xf32>, vector<4x8xf32> -> vector<4x8xf32>
    %c4_41 = arith.constant 4 : index
    %c8_42 = arith.constant 8 : index
    %108 = vector.load %arg9[%c4_41, %c8_42] : memref<8x32xf32, #tpu.memory_space<vmem>>, vector<4x8xf32>
    tpu.vector_store %arg9[%c4_41, %c8_42], %107 {strides = array<i32>} : memref<8x32xf32, #tpu.memory_space<vmem>>, vector<4x8xf32>,
    %109 = vector.extract_strided_slice %6 {offsets = [4, 16], sizes = [4, 8], strides = [1, 1]} : vector<8x96xf32> to vector<4x8xf32>
    %110 = vector.extract_strided_slice %6 {offsets = [4, 48], sizes = [4, 8], strides = [1, 1]} : vector<8x96xf32> to vector<4x8xf32>
    %111 = vector.extract_strided_slice %6 {offsets = [4, 80], sizes = [4, 8], strides = [1, 1]} : vector<8x96xf32> to vector<4x8xf32>
    %cst_43 = arith.constant dense<0.000000e+00> : vector<4x4xf32>
    %112 = tpu.matmul %109, %110, %cst_43 {dimension_numbers = #tpu.dot_dimension_numbers<[1], [1], [0], [0], [0, 0, 1, 0], [], []>} : vector<4x8xf32>, vector<4x8xf32>, vector<4x4xf32> -> vector<4x4xf32>
    %cst_44 = arith.constant 0.353553385 : f32
    %113 = vector.broadcast %cst_44 : f32 to vector<4x4xf32>
    %114 = arith.mulf %112, %113 : vector<4x4xf32>
    %cst_45 = arith.constant dense<0xFF800000> : vector<4xf32>
    %115 = vector.multi_reduction <maximumf>, %114, %cst_45 [1] : vector<4x4xf32> to vector<4xf32>
    %116 = vector.shape_cast %115 : vector<4xf32> to vector<4x1xf32>
    %117 = vector.broadcast %116 : vector<4x1xf32> to vector<4x4xf32>
    %118 = arith.subf %114, %117 : vector<4x4xf32>
    %119 = math.exp %118 : vector<4x4xf32>
    %cst_46 = arith.constant dense<0.000000e+00> : vector<4xf32>
    %120 = vector.multi_reduction <add>, %119, %cst_46 [1] : vector<4x4xf32> to vector<4xf32>
    %121 = vector.shape_cast %120 : vector<4xf32> to vector<4x1xf32>
    %122 = vector.broadcast %121 : vector<4x1xf32> to vector<4x4xf32>
    %123 = arith.divf %119, %122 : vector<4x4xf32>
    %cst_47 = arith.constant dense<0.000000e+00> : vector<4x8xf32>
    %124 = tpu.matmul %123, %111, %cst_47 {dimension_numbers = #tpu.dot_dimension_numbers<[1], [0], [0], [1], [0, 0, 1, 1], [], []>} : vector<4x4xf32>, vector<4x8xf32>, vector<4x8xf32> -> vector<4x8xf32>
    %c4_48 = arith.constant 4 : index
    %c16_49 = arith.constant 16 : index
    %125 = vector.load %arg9[%c4_48, %c16_49] : memref<8x32xf32, #tpu.memory_space<vmem>>, vector<4x8xf32>
    tpu.vector_store %arg9[%c4_48, %c16_49], %124 {strides = array<i32>} : memref<8x32xf32, #tpu.memory_space<vmem>>, vector<4x8xf32>,
    %126 = vector.extract_strided_slice %6 {offsets = [4, 24], sizes = [4, 8], strides = [1, 1]} : vector<8x96xf32> to vector<4x8xf32>
    %127 = vector.extract_strided_slice %6 {offsets = [4, 56], sizes = [4, 8], strides = [1, 1]} : vector<8x96xf32> to vector<4x8xf32>
    %128 = vector.extract_strided_slice %6 {offsets = [4, 88], sizes = [4, 8], strides = [1, 1]} : vector<8x96xf32> to vector<4x8xf32>
    %cst_50 = arith.constant dense<0.000000e+00> : vector<4x4xf32>
    %129 = tpu.matmul %126, %127, %cst_50 {dimension_numbers = #tpu.dot_dimension_numbers<[1], [1], [0], [0], [0, 0, 1, 0], [], []>} : vector<4x8xf32>, vector<4x8xf32>, vector<4x4xf32> -> vector<4x4xf32>
    %cst_51 = arith.constant 0.353553385 : f32
    %130 = vector.broadcast %cst_51 : f32 to vector<4x4xf32>
    %131 = arith.mulf %129, %130 : vector<4x4xf32>
    %cst_52 = arith.constant dense<0xFF800000> : vector<4xf32>
    %132 = vector.multi_reduction <maximumf>, %131, %cst_52 [1] : vector<4x4xf32> to vector<4xf32>
    %133 = vector.shape_cast %132 : vector<4xf32> to vector<4x1xf32>
    %134 = vector.broadcast %133 : vector<4x1xf32> to vector<4x4xf32>
    %135 = arith.subf %131, %134 : vector<4x4xf32>
    %136 = math.exp %135 : vector<4x4xf32>
    %cst_53 = arith.constant dense<0.000000e+00> : vector<4xf32>
    %137 = vector.multi_reduction <add>, %136, %cst_53 [1] : vector<4x4xf32> to vector<4xf32>
    %138 = vector.shape_cast %137 : vector<4xf32> to vector<4x1xf32>
    %139 = vector.broadcast %138 : vector<4x1xf32> to vector<4x4xf32>
    %140 = arith.divf %136, %139 : vector<4x4xf32>
    %cst_54 = arith.constant dense<0.000000e+00> : vector<4x8xf32>
    %141 = tpu.matmul %140, %128, %cst_54 {dimension_numbers = #tpu.dot_dimension_numbers<[1], [0], [0], [1], [0, 0, 1, 1], [], []>} : vector<4x4xf32>, vector<4x8xf32>, vector<4x8xf32> -> vector<4x8xf32>
    %c4_55 = arith.constant 4 : index
    %c24_56 = arith.constant 24 : index
    %142 = vector.load %arg9[%c4_55, %c24_56] : memref<8x32xf32, #tpu.memory_space<vmem>>, vector<4x8xf32>
    tpu.vector_store %arg9[%c4_55, %c24_56], %141 {strides = array<i32>} : memref<8x32xf32, #tpu.memory_space<vmem>>, vector<4x8xf32>,
    %c0_57 = arith.constant 0 : index
    %c0_58 = arith.constant 0 : index
    %143 = vector.load %arg9[%c0_57, %c0_58] : memref<8x32xf32, #tpu.memory_space<vmem>>, vector<8x32xf32>
    %144 = arith.truncf %143 : vector<8x32xf32> to vector<8x32xbf16>
    %c0_59 = arith.constant 0 : index
    %c0_60 = arith.constant 0 : index
    %145 = vector.load %arg4[%c0_59, %c0_60] : memref<32x32xbf16, #tpu.memory_space<vmem>>, vector<32x32xbf16>
    %cst_61 = arith.constant dense<0.000000e+00> : vector<8x32xf32>
    %146 = tpu.matmul %144, %145, %cst_61 {dimension_numbers = #tpu.dot_dimension_numbers<[1], [0], [0], [1], [0, 0, 1, 1], [], []>} : vector<8x32xbf16>, vector<32x32xbf16>, vector<8x32xf32> -> vector<8x32xf32>
    %c0_62 = arith.constant 0 : index
    %c0_63 = arith.constant 0 : index
    %147 = vector.load %arg5[%c0_62, %c0_63] : memref<1x32xf32, #tpu.memory_space<vmem>>, vector<1x32xf32>
    %148 = vector.broadcast %147 : vector<1x32xf32> to vector<8x32xf32>
    %149 = arith.addf %146, %148 : vector<8x32xf32>
    %150 = arith.addf %149, %0 : vector<8x32xf32>
    %cst_64 = arith.constant dense<0.000000e+00> : vector<8xf32>
    %151 = vector.multi_reduction <add>, %150, %cst_64 [1] : vector<8x32xf32> to vector<8xf32>
    %152 = vector.shape_cast %151 : vector<8xf32> to vector<8x1xf32>
    %cst_65 = arith.constant 3.200000e+01 : f32
    %153 = vector.broadcast %cst_65 : f32 to vector<8x1xf32>
    %154 = arith.divf %152, %153 : vector<8x1xf32>
    %155 = vector.broadcast %154 : vector<8x1xf32> to vector<8x32xf32>
    %156 = arith.subf %150, %155 : vector<8x32xf32>
    %157 = arith.mulf %156, %156 : vector<8x32xf32>
    %cst_66 = arith.constant dense<0.000000e+00> : vector<8xf32>
    %158 = vector.multi_reduction <add>, %157, %cst_66 [1] : vector<8x32xf32> to vector<8xf32>
    %159 = vector.shape_cast %158 : vector<8xf32> to vector<8x1xf32>
    %cst_67 = arith.constant 3.200000e+01 : f32
    %160 = vector.broadcast %cst_67 : f32 to vector<8x1xf32>
    %161 = arith.divf %159, %160 : vector<8x1xf32>
    %cst_68 = arith.constant 9.99999974E-6 : f32
    %162 = vector.broadcast %cst_68 : f32 to vector<8x1xf32>
    %163 = arith.addf %161, %162 : vector<8x1xf32>
    %164 = math.rsqrt %163 : vector<8x1xf32>
    %165 = vector.broadcast %164 : vector<8x1xf32> to vector<8x32xf32>
    %166 = arith.mulf %156, %165 : vector<8x32xf32>
    %c0_69 = arith.constant 0 : index
    %c0_70 = arith.constant 0 : index
    %167 = vector.load %arg6[%c0_69, %c0_70] : memref<1x32xf32, #tpu.memory_space<vmem>>, vector<1x32xf32>
    %168 = vector.broadcast %167 : vector<1x32xf32> to vector<8x32xf32>
    %169 = arith.mulf %166, %168 : vector<8x32xf32>
    %c0_71 = arith.constant 0 : index
    %c0_72 = arith.constant 0 : index
    %170 = vector.load %arg7[%c0_71, %c0_72] : memref<1x32xf32, #tpu.memory_space<vmem>>, vector<1x32xf32>
    %171 = vector.broadcast %170 : vector<1x32xf32> to vector<8x32xf32>
    %172 = arith.addf %169, %171 : vector<8x32xf32>
    %c0_73 = arith.constant 0 : index
    %c0_74 = arith.constant 0 : index
    %173 = vector.load %arg8[%c0_73, %c0_74] : memref<8x32xf32, #tpu.memory_space<vmem>>, vector<8x32xf32>
    tpu.vector_store %arg8[%c0_73, %c0_74], %172 {strides = array<i32>} : memref<8x32xf32, #tpu.memory_space<vmem>>, vector<8x32xf32>,
    return
  }
  func.func @transform_0(%arg0: i32) -> (i32, i32) {
    %c0_i32 = arith.constant 0 : i32
    %c0_i32_0 = arith.constant 0 : i32
    %c0_i32_1 = arith.constant 0 : i32
    return %c0_i32, %c0_i32_0 : i32, i32
  }
  func.func @transform_1(%arg0: i32) -> (i32, i32) {
    %c0_i32 = arith.constant 0 : i32
    %c0_i32_0 = arith.constant 0 : i32
    %c0_i32_1 = arith.constant 0 : i32
    return %c0_i32, %c0_i32_0 : i32, i32
  }
  func.func @transform_2(%arg0: i32) -> (i32, i32) {
    %c0_i32 = arith.constant 0 : i32
    %c0_i32_0 = arith.constant 0 : i32
    %c0_i32_1 = arith.constant 0 : i32
    return %c0_i32, %c0_i32_0 : i32, i32
  }
  func.func @transform_3(%arg0: i32) -> (i32, i32) {
    %c0_i32 = arith.constant 0 : i32
    %c0_i32_0 = arith.constant 0 : i32
    %c0_i32_1 = arith.constant 0 : i32
    return %c0_i32, %c0_i32_0 : i32, i32
  }
  func.func @transform_4(%arg0: i32) -> (i32, i32) {
    %c0_i32 = arith.constant 0 : i32
    %c0_i32_0 = arith.constant 0 : i32
    %c0_i32_1 = arith.constant 0 : i32
    return %c0_i32, %c0_i32_0 : i32, i32
  }
  func.func @transform_5(%arg0: i32) -> (i32, i32) {
    %c0_i32 = arith.constant 0 : i32
    %c0_i32_0 = arith.constant 0 : i32
    %c0_i32_1 = arith.constant 0 : i32
    return %c0_i32, %c0_i32_0 : i32, i32
  }
  func.func @transform_6(%arg0: i32) -> (i32, i32) {
    %c0_i32 = arith.constant 0 : i32
    %c0_i32_0 = arith.constant 0 : i32
    %c0_i32_1 = arith.constant 0 : i32
    return %c0_i32, %c0_i32_0 : i32, i32
  }
  func.func @transform_7(%arg0: i32) -> (i32, i32) {
    %c0_i32 = arith.constant 0 : i32
    %c0_i32_0 = arith.constant 0 : i32
    %c0_i32_1 = arith.constant 0 : i32
    return %c0_i32, %c0_i32_0 : i32, i32
  }
}

module attributes {stable_mosaic.version = 11 : i64} {
  func.func @_fnn_chain_kernel(%arg0: i32, %arg1: memref<8x32xf32, #tpu.memory_space<vmem>>, %arg2: memref<32x32xbf16, #tpu.memory_space<vmem>>, %arg3: memref<1x32xf32, #tpu.memory_space<vmem>>, %arg4: memref<32x128xbf16, #tpu.memory_space<vmem>>, %arg5: memref<1x128xf32, #tpu.memory_space<vmem>>, %arg6: memref<8x128xf32, #tpu.memory_space<vmem>>) attributes {dimension_semantics = [#tpu.dimension_semantics<arbitrary>], iteration_bounds = array<i64: 1>, scalar_prefetch = 0 : i64, scratch_operands = 0 : i64, tpu.core_type = #tpu.core_type<tc>, window_params = [{pipeline_mode = #tpu.pipeline_mode<synchronous>, transform_indices = @transform_0, window_bounds = array<i64: 8, 32>}, {pipeline_mode = #tpu.pipeline_mode<synchronous>, transform_indices = @transform_1, window_bounds = array<i64: 32, 32>}, {pipeline_mode = #tpu.pipeline_mode<synchronous>, transform_indices = @transform_2, window_bounds = array<i64: 1, 32>}, {pipeline_mode = #tpu.pipeline_mode<synchronous>, transform_indices = @transform_3, window_bounds = array<i64: 32, 128>}, {pipeline_mode = #tpu.pipeline_mode<synchronous>, transform_indices = @transform_4, window_bounds = array<i64: 1, 128>}, {pipeline_mode = #tpu.pipeline_mode<synchronous>, transform_indices = @transform_5, window_bounds = array<i64: 8, 128>}]} {
    %c0 = arith.constant 0 : index
    %c0_0 = arith.constant 0 : index
    %0 = vector.load %arg1[%c0, %c0_0] : memref<8x32xf32, #tpu.memory_space<vmem>>, vector<8x32xf32>
    %1 = arith.truncf %0 : vector<8x32xf32> to vector<8x32xbf16>
    %c0_1 = arith.constant 0 : index
    %c0_2 = arith.constant 0 : index
    %2 = vector.load %arg2[%c0_1, %c0_2] : memref<32x32xbf16, #tpu.memory_space<vmem>>, vector<32x32xbf16>
    %cst = arith.constant dense<0.000000e+00> : vector<8x32xf32>
    %3 = tpu.matmul %1, %2, %cst {dimension_numbers = #tpu.dot_dimension_numbers<[1], [0], [0], [1], [0, 0, 1, 1], [], []>} : vector<8x32xbf16>, vector<32x32xbf16>, vector<8x32xf32> -> vector<8x32xf32>
    %c0_3 = arith.constant 0 : index
    %c0_4 = arith.constant 0 : index
    %4 = vector.load %arg3[%c0_3, %c0_4] : memref<1x32xf32, #tpu.memory_space<vmem>>, vector<1x32xf32>
    %5 = vector.broadcast %4 : vector<1x32xf32> to vector<8x32xf32>
    %6 = arith.addf %3, %5 : vector<8x32xf32>
    %7 = arith.truncf %6 : vector<8x32xf32> to vector<8x32xbf16>
    %c0_5 = arith.constant 0 : index
    %c0_6 = arith.constant 0 : index
    %8 = vector.load %arg4[%c0_5, %c0_6] : memref<32x128xbf16, #tpu.memory_space<vmem>>, vector<32x128xbf16>
    %cst_7 = arith.constant dense<0.000000e+00> : vector<8x128xf32>
    %9 = tpu.matmul %7, %8, %cst_7 {dimension_numbers = #tpu.dot_dimension_numbers<[1], [0], [0], [1], [0, 0, 1, 1], [], []>} : vector<8x32xbf16>, vector<32x128xbf16>, vector<8x128xf32> -> vector<8x128xf32>
    %c0_8 = arith.constant 0 : index
    %c0_9 = arith.constant 0 : index
    %10 = vector.load %arg5[%c0_8, %c0_9] : memref<1x128xf32, #tpu.memory_space<vmem>>, vector<1x128xf32>
    %11 = vector.broadcast %10 : vector<1x128xf32> to vector<8x128xf32>
    %12 = arith.addf %9, %11 : vector<8x128xf32>
    %c0_10 = arith.constant 0 : index
    %c0_11 = arith.constant 0 : index
    %13 = vector.load %arg6[%c0_10, %c0_11] : memref<8x128xf32, #tpu.memory_space<vmem>>, vector<8x128xf32>
    tpu.vector_store %arg6[%c0_10, %c0_11], %12 {strides = array<i32>} : memref<8x128xf32, #tpu.memory_space<vmem>>, vector<8x128xf32>,
    return
  }
  func.func @transform_0(%arg0: i32) -> (i32, i32) {
    %c0_i32 = arith.constant 0 : i32
    %c0_i32_0 = arith.constant 0 : i32
    %c0_i32_1 = arith.constant 0 : i32
    return %c0_i32, %c0_i32_0 : i32, i32
  }
  func.func @transform_1(%arg0: i32) -> (i32, i32) {
    %c0_i32 = arith.constant 0 : i32
    %c0_i32_0 = arith.constant 0 : i32
    %c0_i32_1 = arith.constant 0 : i32
    return %c0_i32, %c0_i32_0 : i32, i32
  }
  func.func @transform_2(%arg0: i32) -> (i32, i32) {
    %c0_i32 = arith.constant 0 : i32
    %c0_i32_0 = arith.constant 0 : i32
    %c0_i32_1 = arith.constant 0 : i32
    return %c0_i32, %c0_i32_0 : i32, i32
  }
  func.func @transform_3(%arg0: i32) -> (i32, i32) {
    %c0_i32 = arith.constant 0 : i32
    %c0_i32_0 = arith.constant 0 : i32
    %c0_i32_1 = arith.constant 0 : i32
    return %c0_i32, %c0_i32_0 : i32, i32
  }
  func.func @transform_4(%arg0: i32) -> (i32, i32) {
    %c0_i32 = arith.constant 0 : i32
    %c0_i32_0 = arith.constant 0 : i32
    %c0_i32_1 = arith.constant 0 : i32
    return %c0_i32, %c0_i32_0 : i32, i32
  }
  func.func @transform_5(%arg0: i32) -> (i32, i32) {
    %c0_i32 = arith.constant 0 : i32
    %c0_i32_0 = arith.constant 0 : i32
    %c0_i32_1 = arith.constant 0 : i32
    return %c0_i32, %c0_i32_0 : i32, i32
  }
}

</mosaic_0001>

<bundles_post_ra>
// kernel: _lambda_.9
= control target key start
LH: loop header
LB: loop body
LE: loop exit
PB: predicated region body
PF: predicated region fallthrough
CT: control target
= control target key end

     0   :  { %s824_s15 = smov 0   ;;  %s1047_s0 = inlined_call_operand.vmem [shape: f32[512,36], index: 0, kind: input, shape index: {}]   ;;  %s1048_s1 = inlined_call_operand.vmem [shape: bf16[36,8], index: 1, kind: input, shape index: {}]   ;;  %s1049_s2 = inlined_call_operand.vmem [shape: f32[1,8], index: 2, kind: input, shape index: {}]   ;;  %s1050_s3 = inlined_call_operand.vmem [shape: f32[1,8], index: 3, kind: input, shape index: {}]   ;;  %s1051_s4 = inlined_call_operand.vmem [shape: f32[512,8], index: 4, kind: output, shape index: {}]  }
   0x1 LB: > { %s683_s16 = sadd.s32 4294967295, %s797_s15   ;;  %p687_p0 = scmp.ge.s32.totalorder %s797_s15, 1  ;;  %s797_s15 = sphi %s824_s15, %s14_s15  }
   0x2   : > { %p163_p1 = scmp.lt.s32.totalorder %s797_s15, 3 }
   0x4   : > { %p164_p2 = pnand %p687_p0, %p163_p1 }
   0x5   : > { %v788_v0 = vld [vmem:[%s1048_s1] sm:$0xff] (!%p164_p2)   ;;  %v789_v1 = vld [vmem:[%s1048_s1 + $0x8] sm:$0xff] (!%p164_p2)   ;;  %s688_s21 = sshll.u32 (!%p164_p2), %s683_s16, 5  ;;  %v790_v2 = vld [vmem:[%s1048_s1 + $0x10] ss:$0 sps:$4 sm:$0x33] (!%p164_p2)  }
   0x6   : > { %167 = sbr.rel (%p164_p2) target bundleno = 267 (0x10b), region = 36  ;;  %734 = vmatprep.subr.bf16.mxu0 (!%p164_p2), %v788_v0  ;;  %772 = vmatprep.subr.bf16.mxu1 (!%p164_p2), %v788_v0  ;;  %p190_p3 = scmp.lt.s32.totalorder (!%p164_p2), %s688_s21, 63  ;;  %vm319_vm0 = vcmask (!%p164_p2), 1041408   ;;  %vm270_vm1 = vcmask (!%p164_p2), 293888   ;;  %v902_v52 = vld [vmem:[%s1049_s2] ss:$0 sm:$0xff] (!%p164_p2) }
   0x7   : > { %735 = vmatpush3.bf16.msra.mxu0 (!%p164_p2), %v788_v0  ;;  %775 = vmatpush3.bf16.msra.mxu1 (!%p164_p2), %v788_v0  ;;  %v321_v3 = vsel (!%p164_p2), %vm319_vm0, %v790_v2, 0  ;;  %v907_v54 = vld [vmem:[%s1050_s3] ss:$0 sm:$0xff] (!%p164_p2)  ;;  %vm594_vm2 = vcmask (!%p164_p2), 64512  }
   0x8   : > { %736 = vmatprep.subr.bf16.mxu0 (!%p164_p2), %v789_v1  ;;  %773 = vmatprep.subr.bf16.mxu1 (!%p164_p2), %v789_v1 }
   0xb   : > { %737 = vmatpush3.bf16.msra.mxu0 (!%p164_p2), %v789_v1  ;;  %776 = vmatpush3.bf16.msra.mxu1 (!%p164_p2), %v789_v1 }
   0xc   : > { %778 = vmatprep.subr.msk.bf16.mxu0 (!%p164_p2), %vm319_vm0, %v790_v2  ;;  %779 = vmatprep.subr.msk.bf16.mxu1 (!%p164_p2), %vm319_vm0, %v790_v2 }
   0xd   : > { %s1053_s21 = smov (!%p190_p3, %s688_s21), 63 }
   0xe   : > { %s689_s24 = sshll.u32 %s1053_s21, 3 }
   0xf   : > { %s849_s27 = scalar_lea.vmem %s1047_s0, %s689_s24  ;;  %739 = vmatpush3.bf16.msra.mxu0 %v321_v3  ;;  %777 = vmatpush3.bf16.msra.mxu1 %v321_v3  ;;  %s922_s8 = scalar_lea.vmem %s1051_s4, %s689_s24 }
  0x10   : > { %v202_v4 = vld [vmem:[%s849_s27] sm:$0xff]  ;;  %v203_v5 = vld [vmem:[%s849_s27 + $0x8] sm:$0xff]  ;;  %v204_v9 = vld [vmem:[%s849_s27 + $0x10] sm:$0xff] }
  0x11   : > { %v218_v6 = vld [vmem:[%s849_s27 + $0x80] sm:$0xff]  ;;  %v234_v7 = vpack.c.bf16 %v203_v5, %v202_v4  ;;  %v219_v8 = vld [vmem:[%s849_s27 + $0x88] sm:$0xff]  ;;  %v205_v10 = vld [vmem:[%s849_s27 + $0x18] sm:$0xff] }
  0x12   : > { %v242_v11 = vpack.c.bf16 %v219_v8, %v218_v6  ;;  %v235_v12 = vpack.c.bf16 %v205_v10, %v204_v9  ;;  %v220_v13 = vld [vmem:[%s849_s27 + $0x90] sm:$0xff]  ;;  %v221_v14 = vld [vmem:[%s849_s27 + $0x98] sm:$0xff]  ;;  %v206_v15 = vld [vmem:[%s849_s27 + $0x20] sm:$0xff] }
  0x13   : > { %v243_v16 = vpack.c.bf16 %v221_v14, %v220_v13  ;;  %v207_v17 = vld [vmem:[%s849_s27 + $0x28] sm:$0xff]  ;;  %v222_v18 = vld [vmem:[%s849_s27 + $0xa0] sm:$0xff]  ;;  %740 = vmatprep.mubr.msk.bf16.mxu0 %vm270_vm1, %v234_v7  ;;  %v208_v22 = vld [vmem:[%s849_s27 + $0x30] sm:$0xff] }
  0x14   : > { %v223_v19 = vld [vmem:[%s849_s27 + $0xa8] sm:$0xff]  ;;  %756 = vmatprep.mubr.msk.bf16.mxu1 %vm270_vm1, %v242_v11  ;;  %v236_v20 = vpack.c.bf16 %v207_v17, %v206_v15  ;;  %741 = vmatmul.mubr.msk.bf16.vlgmr.msra.gmra.mrb[0].mxu0 %vm270_vm1, %v235_v12  ;;  %v209_v23 = vld [vmem:[%s849_s27 + $0x38] sm:$0xff]  ;;  %v224_v24 = vld [vmem:[%s849_s27 + $0xb0] sm:$0xff] }
  0x15   : > { %v244_v21 = vpack.c.bf16 %v223_v19, %v222_v18  ;;  %757 = vmatmul.mubr.msk.bf16.vlgmr.msra.gmra.mrb[0].mxu1 %vm270_vm1, %v243_v16  ;;  %v225_v25 = vld [vmem:[%s849_s27 + $0xb8] sm:$0xff]  ;;  %v210_v26 = vld [vmem:[%s849_s27 + $0x40] sm:$0xff]  ;;  %v211_v27 = vld [vmem:[%s849_s27 + $0x48] sm:$0xff]  ;;  %v237_v30 = vpack.c.bf16 %v209_v23, %v208_v22 }
  0x16   : > { %744 = vmatprep.mubr.msk.bf16.mxu0 %vm270_vm1, %v236_v20  ;;  %v226_v28 = vld [vmem:[%s849_s27 + $0xc0] sm:$0xff]  ;;  %v227_v29 = vld [vmem:[%s849_s27 + $0xc8] sm:$0xff]  ;;  %v245_v31 = vpack.c.bf16 %v225_v25, %v224_v24  ;;  %v238_v32 = vpack.c.bf16 %v211_v27, %v210_v26  ;;  %v212_v34 = vld [vmem:[%s849_s27 + $0x50] sm:$0xff] }
  0x17   : > { %760 = vmatprep.mubr.msk.bf16.mxu1 %vm270_vm1, %v244_v21  ;;  %v246_v33 = vpack.c.bf16 %v227_v29, %v226_v28  ;;  %v213_v35 = vld [vmem:[%s849_s27 + $0x58] sm:$0xff]  ;;  %v228_v36 = vld [vmem:[%s849_s27 + $0xd0] sm:$0xff]  ;;  %v214_v38 = vld [vmem:[%s849_s27 + $0x60] sm:$0xff] }
  0x18   : > { %v229_v37 = vld [vmem:[%s849_s27 + $0xd8] sm:$0xff]  ;;  %v215_v39 = vld [vmem:[%s849_s27 + $0x68] sm:$0xff]  ;;  %v230_v40 = vld [vmem:[%s849_s27 + $0xe0] sm:$0xff]  ;;  %v239_v42 = vpack.c.bf16 %v213_v35, %v212_v34 }
  0x19   : > { %v231_v41 = vld [vmem:[%s849_s27 + $0xe8] sm:$0xff]  ;;  %v247_v43 = vpack.c.bf16 %v229_v37, %v228_v36  ;;  %v240_v44 = vpack.c.bf16 %v215_v39, %v214_v38  ;;  %v216_v46 = vld [vmem:[%s849_s27 + $0x70] sm:$0xff]  ;;  %v217_v47 = vld [vmem:[%s849_s27 + $0x78] sm:$0xff] }
  0x1a   : > { %v248_v45 = vpack.c.bf16 %v231_v41, %v230_v40  ;;  %v232_v48 = vld [vmem:[%s849_s27 + $0xf0] sm:$0xff]  ;;  %v233_v49 = vld [vmem:[%s849_s27 + $0xf8] sm:$0xff]  ;;  %v241_v50 = vpack.c.bf16 %v217_v47, %v216_v46 }
  0x1b   : > { %v249_v51 = vpack.c.bf16 %v233_v49, %v232_v48 }
  0x1c   : > { %745 = vmatmul.mubr.msk.bf16.gmra.mrb[4].mxu0 %vm270_vm1, %v237_v30 }
  0x1d   : > { %761 = vmatmul.mubr.msk.bf16.gmra.mrb[4].mxu1 %vm270_vm1, %v245_v31  ;;  %748 = vmatprep.mubr.msk.bf16.mxu0 %vm270_vm1, %v238_v32 }
  0x1e   : > { %764 = vmatprep.mubr.msk.bf16.mxu1 %vm270_vm1, %v246_v33 }
  0x24   : > { %749 = vmatmul.mubr.msk.bf16.gmra.mrb[8].mxu0 %vm270_vm1, %v239_v42 }
  0x25   : > { %765 = vmatmul.mubr.msk.bf16.gmra.mrb[8].mxu1 %vm270_vm1, %v247_v43  ;;  %752 = vmatprep.mubr.msk.bf16.mxu0 %vm270_vm1, %v240_v44 }
  0x26   : > { %768 = vmatprep.mubr.msk.bf16.mxu1 %vm270_vm1, %v248_v45 }
  0x2c   : > { %753 = vmatmul.mubr.msk.bf16.gmra.mrb[12].mxu0 %vm270_vm1, %v241_v50 }
  0x2d   : > { %769 = vmatmul.mubr.msk.bf16.gmra.mrb[12].mxu1 %vm270_vm1, %v249_v51 }
  0xe7   : > { %v742_v53 = vpop.f32.mrb[0].mxu0 }
  0xe8   : > { %v758_v55 = vpop.f32.mrb[0].mxu1  ;;  %v493_v56 = vmul.f32 %v742_v53, %v902_v52  ;;  %v357_v58 = vpop.f32.mrb[1].mxu0 }
  0xe9   : > { %v509_v57 = vmul.f32 %v758_v55, %v902_v52  ;;  %v421_v59 = vpop.f32.mrb[1].mxu1  ;;  %v491_v60 = vmul.f32 %v902_v52, %v357_v58  ;;  %v743_v62 = vpop.f32.mrb[2].mxu0 }
  0xea   : > { %v507_v61 = vmul.f32 %v902_v52, %v421_v59  ;;  %v759_v63 = vpop.f32.mrb[2].mxu1  ;;  %v532_v0 = vadd.f32 %v907_v54, %v493_v56  ;;  %v494_v2 = vmul.f32 %v743_v62, %v902_v52  ;;  %v360_v4 = vpop.f32.mrb[3].mxu0 }
  0xeb   : > { %v548_v1 = vadd.f32 %v907_v54, %v509_v57  ;;  %v510_v3 = vmul.f32 %v759_v63, %v902_v52  ;;  %v424_v5 = vpop.f32.mrb[3].mxu1  ;;  %v530_v6 = vadd.f32 %v907_v54, %v491_v60  ;;  %v492_v8 = vmul.f32 %v902_v52, %v360_v4 }
  0xec   : > { %v546_v7 = vadd.f32 %v907_v54, %v507_v61  ;;  %v508_v9 = vmul.f32 %v902_v52, %v424_v5  ;;  %v564_v10 = vmax.f32 %v532_v0, 0.0  ;;  %v533_v12 = vadd.f32 %v907_v54, %v494_v2 }
  0xed   : > { %v580_v11 = vmax.f32 %v548_v1, 0.0  ;;  %v549_v13 = vadd.f32 %v907_v54, %v510_v3  ;;  %v562_v14 = vmax.f32 %v530_v6, 0.0  ;;  %v531_v16 = vadd.f32 %v907_v54, %v492_v8 }
  0xee   : > { %v578_v15 = vmax.f32 %v546_v7, 0.0  ;;  %v547_v17 = vadd.f32 %v907_v54, %v508_v9  ;;  %597 = vst.msk [vmem:[%s922_s8 + $0x10] sm:$0xff] %vm594_vm2, %v564_v10  ;;  %v565_v18 = vmax.f32 %v533_v12, 0.0 }
  0xef   : > { %613 = vst.msk [vmem:[%s922_s8 + $0x90] sm:$0xff] %vm594_vm2, %v580_v11  ;;  %v581_v19 = vmax.f32 %v549_v13, 0.0  ;;  %595 = vst.msk [vmem:[%s922_s8] sm:$0xff] %vm594_vm2, %v562_v14  ;;  %v563_v20 = vmax.f32 %v531_v16, 0.0  ;;  %v746_v22 = vpop.f32.mrb[4].mxu0 }
  0xf0   : > { %611 = vst.msk [vmem:[%s922_s8 + $0x80] sm:$0xff] %vm594_vm2, %v578_v15  ;;  %v579_v21 = vmax.f32 %v547_v17, 0.0  ;;  %v762_v23 = vpop.f32.mrb[4].mxu1  ;;  %598 = vst.msk [vmem:[%s922_s8 + $0x18] sm:$0xff] %vm594_vm2, %v565_v18  ;;  %v497_v24 = vmul.f32 %v746_v22, %v902_v52  ;;  %v373_v26 = vpop.f32.mrb[5].mxu0 }
  0xf1   : > { %614 = vst.msk [vmem:[%s922_s8 + $0x98] sm:$0xff] %vm594_vm2, %v581_v19  ;;  %v513_v25 = vmul.f32 %v762_v23, %v902_v52  ;;  %v437_v27 = vpop.f32.mrb[5].mxu1  ;;  %596 = vst.msk [vmem:[%s922_s8 + $0x8] sm:$0xff] %vm594_vm2, %v563_v20  ;;  %v495_v28 = vmul.f32 %v902_v52, %v373_v26  ;;  %v747_v30 = vpop.f32.mrb[6].mxu0 }
  0xf2   : > { %612 = vst.msk [vmem:[%s922_s8 + $0x88] sm:$0xff] %vm594_vm2, %v579_v21  ;;  %v511_v29 = vmul.f32 %v902_v52, %v437_v27  ;;  %v763_v31 = vpop.f32.mrb[6].mxu1  ;;  %v536_v32 = vadd.f32 %v907_v54, %v497_v24  ;;  %v498_v34 = vmul.f32 %v747_v30, %v902_v52  ;;  %v376_v36 = vpop.f32.mrb[7].mxu0 }
  0xf3   : > { %v552_v33 = vadd.f32 %v907_v54, %v513_v25  ;;  %v514_v35 = vmul.f32 %v763_v31, %v902_v52  ;;  %v440_v37 = vpop.f32.mrb[7].mxu1  ;;  %v534_v38 = vadd.f32 %v907_v54, %v495_v28  ;;  %v496_v40 = vmul.f32 %v902_v52, %v376_v36 }
  0xf4   : > { %v550_v39 = vadd.f32 %v907_v54, %v511_v29  ;;  %v512_v41 = vmul.f32 %v902_v52, %v440_v37  ;;  %v568_v42 = vmax.f32 %v536_v32, 0.0  ;;  %v537_v44 = vadd.f32 %v907_v54, %v498_v34 }
  0xf5   : > { %v584_v43 = vmax.f32 %v552_v33, 0.0  ;;  %v553_v45 = vadd.f32 %v907_v54, %v514_v35  ;;  %v566_v46 = vmax.f32 %v534_v38, 0.0  ;;  %v535_v48 = vadd.f32 %v907_v54, %v496_v40 }
  0xf6   : > { %v582_v47 = vmax.f32 %v550_v39, 0.0  ;;  %v551_v49 = vadd.f32 %v907_v54, %v512_v41  ;;  %601 = vst.msk [vmem:[%s922_s8 + $0x30] sm:$0xff] %vm594_vm2, %v568_v42  ;;  %v569_v50 = vmax.f32 %v537_v44, 0.0 }
  0xf7   : > { %617 = vst.msk [vmem:[%s922_s8 + $0xb0] sm:$0xff] %vm594_vm2, %v584_v43  ;;  %v585_v51 = vmax.f32 %v553_v45, 0.0  ;;  %599 = vst.msk [vmem:[%s922_s8 + $0x20] sm:$0xff] %vm594_vm2, %v566_v46  ;;  %v567_v53 = vmax.f32 %v535_v48, 0.0  ;;  %v750_v56 = vpop.f32.mrb[8].mxu0 }
  0xf8   : > { %615 = vst.msk [vmem:[%s922_s8 + $0xa0] sm:$0xff] %vm594_vm2, %v582_v47  ;;  %v583_v55 = vmax.f32 %v551_v49, 0.0  ;;  %v766_v57 = vpop.f32.mrb[8].mxu1  ;;  %602 = vst.msk [vmem:[%s922_s8 + $0x38] sm:$0xff] %vm594_vm2, %v569_v50  ;;  %v501_v58 = vmul.f32 %v750_v56, %v902_v52  ;;  %v389_v60 = vpop.f32.mrb[9].mxu0 }
  0xf9   : > { %618 = vst.msk [vmem:[%s922_s8 + $0xb8] sm:$0xff] %vm594_vm2, %v585_v51  ;;  %v517_v59 = vmul.f32 %v766_v57, %v902_v52  ;;  %v453_v61 = vpop.f32.mrb[9].mxu1  ;;  %600 = vst.msk [vmem:[%s922_s8 + $0x28] sm:$0xff] %vm594_vm2, %v567_v53  ;;  %v499_v62 = vmul.f32 %v902_v52, %v389_v60  ;;  %v751_v0 = vpop.f32.mrb[10].mxu0 }
  0xfa   : > { %616 = vst.msk [vmem:[%s922_s8 + $0xa8] sm:$0xff] %vm594_vm2, %v583_v55  ;;  %v515_v63 = vmul.f32 %v902_v52, %v453_v61  ;;  %v767_v1 = vpop.f32.mrb[10].mxu1  ;;  %v540_v2 = vadd.f32 %v907_v54, %v501_v58  ;;  %v502_v4 = vmul.f32 %v751_v0, %v902_v52  ;;  %v392_v6 = vpop.f32.mrb[11].mxu0 }
  0xfb   : > { %v556_v3 = vadd.f32 %v907_v54, %v517_v59  ;;  %v518_v5 = vmul.f32 %v767_v1, %v902_v52  ;;  %v456_v7 = vpop.f32.mrb[11].mxu1  ;;  %v538_v8 = vadd.f32 %v907_v54, %v499_v62  ;;  %v500_v10 = vmul.f32 %v902_v52, %v392_v6 }
  0xfc   : > { %v554_v9 = vadd.f32 %v907_v54, %v515_v63  ;;  %v516_v11 = vmul.f32 %v902_v52, %v456_v7  ;;  %v572_v12 = vmax.f32 %v540_v2, 0.0  ;;  %v541_v14 = vadd.f32 %v907_v54, %v502_v4 }
  0xfd   : > { %v588_v13 = vmax.f32 %v556_v3, 0.0  ;;  %v557_v15 = vadd.f32 %v907_v54, %v518_v5  ;;  %v570_v16 = vmax.f32 %v538_v8, 0.0  ;;  %v539_v18 = vadd.f32 %v907_v54, %v500_v10 }
  0xfe   : > { %v586_v17 = vmax.f32 %v554_v9, 0.0  ;;  %v555_v19 = vadd.f32 %v907_v54, %v516_v11  ;;  %605 = vst.msk [vmem:[%s922_s8 + $0x50] sm:$0xff] %vm594_vm2, %v572_v12  ;;  %v573_v20 = vmax.f32 %v541_v14, 0.0 }
  0xff   : > { %621 = vst.msk [vmem:[%s922_s8 + $0xd0] sm:$0xff] %vm594_vm2, %v588_v13  ;;  %v589_v21 = vmax.f32 %v557_v15, 0.0  ;;  %603 = vst.msk [vmem:[%s922_s8 + $0x40] sm:$0xff] %vm594_vm2, %v570_v16  ;;  %v571_v22 = vmax.f32 %v539_v18, 0.0  ;;  %v754_v24 = vpop.f32.mrb[12].mxu0 }
 0x100   : > { %619 = vst.msk [vmem:[%s922_s8 + $0xc0] sm:$0xff] %vm594_vm2, %v586_v17  ;;  %v587_v23 = vmax.f32 %v555_v19, 0.0  ;;  %v770_v25 = vpop.f32.mrb[12].mxu1  ;;  %606 = vst.msk [vmem:[%s922_s8 + $0x58] sm:$0xff] %vm594_vm2, %v573_v20  ;;  %v505_v26 = vmul.f32 %v754_v24, %v902_v52  ;;  %v405_v28 = vpop.f32.mrb[13].mxu0 }
 0x101   : > { %622 = vst.msk [vmem:[%s922_s8 + $0xd8] sm:$0xff] %vm594_vm2, %v589_v21  ;;  %v521_v27 = vmul.f32 %v770_v25, %v902_v52  ;;  %v469_v29 = vpop.f32.mrb[13].mxu1  ;;  %604 = vst.msk [vmem:[%s922_s8 + $0x48] sm:$0xff] %vm594_vm2, %v571_v22  ;;  %v503_v30 = vmul.f32 %v902_v52, %v405_v28  ;;  %v755_v32 = vpop.f32.mrb[14].mxu0 }
 0x102   : > { %620 = vst.msk [vmem:[%s922_s8 + $0xc8] sm:$0xff] %vm594_vm2, %v587_v23  ;;  %v519_v31 = vmul.f32 %v902_v52, %v469_v29  ;;  %v771_v33 = vpop.f32.mrb[14].mxu1  ;;  %v544_v34 = vadd.f32 %v907_v54, %v505_v26  ;;  %v506_v36 = vmul.f32 %v755_v32, %v902_v52  ;;  %v408_v38 = vpop.f32.mrb[15].mxu0 }
 0x103   : > { %v560_v35 = vadd.f32 %v907_v54, %v521_v27  ;;  %v522_v37 = vmul.f32 %v771_v33, %v902_v52  ;;  %v472_v39 = vpop.f32.mrb[15].mxu1  ;;  %v542_v40 = vadd.f32 %v907_v54, %v503_v30  ;;  %v504_v42 = vmul.f32 %v902_v52, %v408_v38 }
 0x104   : > { %v558_v41 = vadd.f32 %v907_v54, %v519_v31  ;;  %v520_v43 = vmul.f32 %v902_v52, %v472_v39  ;;  %v576_v44 = vmax.f32 %v544_v34, 0.0  ;;  %v545_v46 = vadd.f32 %v907_v54, %v506_v36 }
 0x105   : > { %v592_v45 = vmax.f32 %v560_v35, 0.0  ;;  %v561_v47 = vadd.f32 %v907_v54, %v522_v37  ;;  %v574_v48 = vmax.f32 %v542_v40, 0.0  ;;  %v543_v50 = vadd.f32 %v907_v54, %v504_v42 }
 0x106   : > { %v590_v49 = vmax.f32 %v558_v41, 0.0  ;;  %v559_v51 = vadd.f32 %v907_v54, %v520_v43  ;;  %609 = vst.msk [vmem:[%s922_s8 + $0x70] sm:$0xff] %vm594_vm2, %v576_v44  ;;  %v577_v52 = vmax.f32 %v545_v46, 0.0 }
 0x107   : > { %625 = vst.msk [vmem:[%s922_s8 + $0xf0] sm:$0xff] %vm594_vm2, %v592_v45  ;;  %v593_v53 = vmax.f32 %v561_v47, 0.0  ;;  %607 = vst.msk [vmem:[%s922_s8 + $0x60] sm:$0xff] %vm594_vm2, %v574_v48  ;;  %v575_v55 = vmax.f32 %v543_v50, 0.0 }
 0x108   : > { %623 = vst.msk [vmem:[%s922_s8 + $0xe0] sm:$0xff] %vm594_vm2, %v590_v49  ;;  %v591_v56 = vmax.f32 %v559_v51, 0.0  ;;  %610 = vst.msk [vmem:[%s922_s8 + $0x78] sm:$0xff] %vm594_vm2, %v577_v52 }
 0x109   : > { %626 = vst.msk [vmem:[%s922_s8 + $0xf8] sm:$0xff] %vm594_vm2, %v593_v53  ;;  %608 = vst.msk [vmem:[%s922_s8 + $0x68] sm:$0xff] %vm594_vm2, %v575_v55 }
 0x10a   : > { %624 = vst.msk [vmem:[%s922_s8 + $0xe8] sm:$0xff] %vm594_vm2, %v591_v56 }
 0x10b PF: > { %s14_s15 = sadd.s32 1, %s797_s15  }
 0x10c   : > { %p11_p4 = scmp.ge.s32.totalorder %s14_s15, 4  }
 0x10e   :  { %13 = sbr.rel (!%p11_p4) target bundleno = 1 (0x1), region = 66 }

// kernel: _lambda_.10
= control target key start
LH: loop header
LB: loop body
LE: loop exit
PB: predicated region body
PF: predicated region fallthrough
CT: control target
= control target key end

     0   :  { %vm78_vm0 = vcmask 588800   ;;  %vm103_vm1 = vcmask 1043456   ;;  %vm266_vm2 = vcmask 64512   ;;  %s560_s1 = inlined_call_operand.vmem [shape: bf16[72,8], index: 1, kind: input, shape index: {}]   ;;  %s561_s0 = inlined_call_operand.vmem [shape: f32[128,72], index: 0, kind: input, shape index: {}]   ;;  %s562_s2 = inlined_call_operand.vmem [shape: f32[1,8], index: 2, kind: input, shape index: {}]   ;;  %s563_s3 = inlined_call_operand.vmem [shape: f32[1,8], index: 3, kind: input, shape index: {}]   ;;  %s564_s4 = inlined_call_operand.vmem [shape: f32[128,8], index: 4, kind: output, shape index: {}]  }
   0x1   :  { %v353_v0 = vld [vmem:[%s560_s1] sm:$0xff]   ;;  %v354_v1 = vld [vmem:[%s560_s1 + $0x8] sm:$0xff]   ;;  %v355_v2 = vld [vmem:[%s560_s1 + $0x10] sm:$0xff]  }
   0x2   :  { %315 = vmatprep.subr.bf16.mxu0 %v353_v0  ;;  %341 = vmatprep.subr.bf16.mxu1 %v353_v0  ;;  %v18_v3 = vld [vmem:[%s561_s0] sm:$0xff]  ;;  %v19_v4 = vld [vmem:[%s561_s0 + $0x8] sm:$0xff]  ;;  %v356_v9 = vld [vmem:[%s560_s1 + $0x18] sm:$0xff]  }
   0x3   :  { %316 = vmatpush3.bf16.msra.mxu0 %v353_v0  ;;  %346 = vmatpush3.bf16.msra.mxu1 %v353_v0  ;;  %v26_v5 = vld [vmem:[%s561_s0 + $0x40] sm:$0xff]  ;;  %v27_v6 = vld [vmem:[%s561_s0 + $0x48] sm:$0xff]  ;;  %v34_v7 = vpack.c.bf16 %v19_v4, %v18_v3  ;;  %v20_v11 = vld [vmem:[%s561_s0 + $0x10] sm:$0xff] }
   0x4   :  { %317 = vmatprep.subr.bf16.mxu0 %v354_v1  ;;  %342 = vmatprep.subr.bf16.mxu1 %v354_v1  ;;  %v38_v8 = vpack.c.bf16 %v27_v6, %v26_v5  ;;  %v357_v10 = vld [vmem:[%s560_s1 + $0x20] ss:$0 sps:$4 sm:$0xff]   ;;  %v21_v12 = vld [vmem:[%s561_s0 + $0x18] sm:$0xff]  ;;  %v28_v13 = vld [vmem:[%s561_s0 + $0x50] sm:$0xff] }
   0x5   :  { %325 = vmatprep.mubr.msk.bf16.mxu0 %vm78_vm0, %v34_v7  ;;  %v29_v14 = vld [vmem:[%s561_s0 + $0x58] sm:$0xff]  ;;  %v22_v15 = vld [vmem:[%s561_s0 + $0x20] sm:$0xff]  ;;  %v105_v16 = vsel %vm103_vm1, %v357_v10, 0  ;;  %v23_v17 = vld [vmem:[%s561_s0 + $0x28] sm:$0xff]  ;;  %v35_v20 = vpack.c.bf16 %v21_v12, %v20_v11 }
   0x6   :  { %333 = vmatprep.mubr.msk.bf16.mxu1 %vm78_vm0, %v38_v8  ;;  %v30_v18 = vld [vmem:[%s561_s0 + $0x60] sm:$0xff]  ;;  %v31_v19 = vld [vmem:[%s561_s0 + $0x68] sm:$0xff]  ;;  %v39_v21 = vpack.c.bf16 %v29_v14, %v28_v13  ;;  %v36_v22 = vpack.c.bf16 %v23_v17, %v22_v15  ;;  %v24_v24 = vld [vmem:[%s561_s0 + $0x30] sm:$0xff] }
   0x7   :  { %318 = vmatpush3.bf16.msra.mxu0 %v354_v1  ;;  %347 = vmatpush3.bf16.msra.mxu1 %v354_v1  ;;  %v40_v23 = vpack.c.bf16 %v31_v19, %v30_v18  ;;  %v25_v25 = vld [vmem:[%s561_s0 + $0x38] sm:$0xff]  ;;  %v32_v26 = vld [vmem:[%s561_s0 + $0x70] sm:$0xff]  ;;  %v457_v30 = vld [vmem:[%s562_s2] ss:$0 sm:$0xff] }
   0x8   :  { %319 = vmatprep.subr.bf16.mxu0 %v355_v2  ;;  %343 = vmatprep.subr.bf16.mxu1 %v355_v2  ;;  %v33_v27 = vld [vmem:[%s561_s0 + $0x78] sm:$0xff]  ;;  %v37_v28 = vpack.c.bf16 %v25_v25, %v24_v24  ;;  %v462_v32 = vld [vmem:[%s563_s3] ss:$0 sm:$0xff] }
   0x9   :  { %v41_v29 = vpack.c.bf16 %v33_v27, %v32_v26 }
   0xb   :  { %320 = vmatpush3.bf16.msra.mxu0 %v355_v2  ;;  %348 = vmatpush3.bf16.msra.mxu1 %v355_v2 }
   0xc   :  { %321 = vmatprep.subr.bf16.mxu0 %v356_v9  ;;  %344 = vmatprep.subr.bf16.mxu1 %v356_v9 }
   0xf   :  { %322 = vmatpush3.bf16.msra.mxu0 %v356_v9  ;;  %349 = vmatpush3.bf16.msra.mxu1 %v356_v9 }
  0x10   :  { %351 = vmatprep.subr.msk.bf16.mxu0 %vm103_vm1, %v357_v10  ;;  %352 = vmatprep.subr.msk.bf16.mxu1 %vm103_vm1, %v357_v10 }
  0x13   :  { %324 = vmatpush3.bf16.msra.mxu0 %v105_v16  ;;  %350 = vmatpush3.bf16.msra.mxu1 %v105_v16 }
  0x16   :  { %326 = vmatmul.mubr.msk.bf16.vlgmr.msra.gmra.mrb[0].mxu0 %vm78_vm0, %v35_v20  ;;  %334 = vmatmul.mubr.msk.bf16.vlgmr.msra.gmra.mrb[0].mxu1 %vm78_vm0, %v39_v21 }
  0x17   :  { %329 = vmatprep.mubr.msk.bf16.mxu0 %vm78_vm0, %v36_v22  ;;  %337 = vmatprep.mubr.msk.bf16.mxu1 %vm78_vm0, %v40_v23 }
  0x1e   :  { %330 = vmatmul.mubr.msk.bf16.gmra.mrb[4].mxu0 %vm78_vm0, %v37_v28  ;;  %338 = vmatmul.mubr.msk.bf16.gmra.mrb[4].mxu1 %vm78_vm0, %v41_v29 }
  0xe9   :  { %v327_v31 = vpop.f32.mrb[0].mxu0  ;;  %v335_v33 = vpop.f32.mrb[0].mxu1 }
  0xea   :  { %v213_v34 = vmul.f32 %v327_v31, %v457_v30  ;;  %v221_v35 = vmul.f32 %v335_v33, %v457_v30  ;;  %v141_v36 = vpop.f32.mrb[1].mxu0  ;;  %v173_v37 = vpop.f32.mrb[1].mxu1 }
  0xeb   :  { %v211_v38 = vmul.f32 %v457_v30, %v141_v36  ;;  %v219_v39 = vmul.f32 %v457_v30, %v173_v37  ;;  %v328_v40 = vpop.f32.mrb[2].mxu0  ;;  %v336_v41 = vpop.f32.mrb[2].mxu1 }
  0xec   :  { %v236_v42 = vadd.f32 %v462_v32, %v213_v34  ;;  %v244_v43 = vadd.f32 %v462_v32, %v221_v35  ;;  %v214_v44 = vmul.f32 %v328_v40, %v457_v30  ;;  %v222_v45 = vmul.f32 %v336_v41, %v457_v30  ;;  %v144_v46 = vpop.f32.mrb[3].mxu0  ;;  %v176_v47 = vpop.f32.mrb[3].mxu1 }
  0xed   :  { %v234_v48 = vadd.f32 %v462_v32, %v211_v38  ;;  %v242_v49 = vadd.f32 %v462_v32, %v219_v39  ;;  %v212_v50 = vmul.f32 %v457_v30, %v144_v46  ;;  %v220_v51 = vmul.f32 %v457_v30, %v176_v47 }
  0xee   :  { %v252_v52 = vmax.f32 %v236_v42, 0.0  ;;  %v260_v53 = vmax.f32 %v244_v43, 0.0  ;;  %v237_v54 = vadd.f32 %v462_v32, %v214_v44  ;;  %v245_v55 = vadd.f32 %v462_v32, %v222_v45 }
  0xef   :  { %v250_v56 = vmax.f32 %v234_v48, 0.0  ;;  %v258_v57 = vmax.f32 %v242_v49, 0.0  ;;  %v235_v58 = vadd.f32 %v462_v32, %v212_v50  ;;  %v243_v59 = vadd.f32 %v462_v32, %v220_v51 }
  0xf0   :  { %269 = vst.msk [vmem:[%s564_s4 + $0x10] sm:$0xff] %vm266_vm2, %v252_v52  ;;  %277 = vst.msk [vmem:[%s564_s4 + $0x50] sm:$0xff] %vm266_vm2, %v260_v53  ;;  %v253_v60 = vmax.f32 %v237_v54, 0.0  ;;  %v261_v61 = vmax.f32 %v245_v55, 0.0 }
  0xf1   :  { %267 = vst.msk [vmem:[%s564_s4] sm:$0xff] %vm266_vm2, %v250_v56  ;;  %275 = vst.msk [vmem:[%s564_s4 + $0x40] sm:$0xff] %vm266_vm2, %v258_v57  ;;  %v251_v62 = vmax.f32 %v235_v58, 0.0  ;;  %v259_v63 = vmax.f32 %v243_v59, 0.0  ;;  %v331_v0 = vpop.f32.mrb[4].mxu0  ;;  %v339_v1 = vpop.f32.mrb[4].mxu1 }
  0xf2   :  { %270 = vst.msk [vmem:[%s564_s4 + $0x18] sm:$0xff] %vm266_vm2, %v253_v60  ;;  %278 = vst.msk [vmem:[%s564_s4 + $0x58] sm:$0xff] %vm266_vm2, %v261_v61  ;;  %v217_v2 = vmul.f32 %v331_v0, %v457_v30  ;;  %v225_v3 = vmul.f32 %v339_v1, %v457_v30  ;;  %v157_v4 = vpop.f32.mrb[5].mxu0  ;;  %v189_v5 = vpop.f32.mrb[5].mxu1 }
  0xf3   :  { %268 = vst.msk [vmem:[%s564_s4 + $0x8] sm:$0xff] %vm266_vm2, %v251_v62  ;;  %276 = vst.msk [vmem:[%s564_s4 + $0x48] sm:$0xff] %vm266_vm2, %v259_v63  ;;  %v215_v6 = vmul.f32 %v457_v30, %v157_v4  ;;  %v223_v7 = vmul.f32 %v457_v30, %v189_v5  ;;  %v332_v8 = vpop.f32.mrb[6].mxu0  ;;  %v340_v9 = vpop.f32.mrb[6].mxu1 }
  0xf4   :  { %v240_v10 = vadd.f32 %v462_v32, %v217_v2  ;;  %v248_v11 = vadd.f32 %v462_v32, %v225_v3  ;;  %v218_v12 = vmul.f32 %v332_v8, %v457_v30  ;;  %v226_v13 = vmul.f32 %v340_v9, %v457_v30  ;;  %v160_v14 = vpop.f32.mrb[7].mxu0  ;;  %v192_v15 = vpop.f32.mrb[7].mxu1 }
  0xf5   :  { %v238_v16 = vadd.f32 %v462_v32, %v215_v6  ;;  %v246_v17 = vadd.f32 %v462_v32, %v223_v7  ;;  %v216_v18 = vmul.f32 %v457_v30, %v160_v14  ;;  %v224_v19 = vmul.f32 %v457_v30, %v192_v15 }
  0xf6   :  { %v256_v20 = vmax.f32 %v240_v10, 0.0  ;;  %v264_v21 = vmax.f32 %v248_v11, 0.0  ;;  %v241_v22 = vadd.f32 %v462_v32, %v218_v12  ;;  %v249_v23 = vadd.f32 %v462_v32, %v226_v13 }
  0xf7   :  { %v254_v24 = vmax.f32 %v238_v16, 0.0  ;;  %v262_v25 = vmax.f32 %v246_v17, 0.0  ;;  %v239_v26 = vadd.f32 %v462_v32, %v216_v18  ;;  %v247_v27 = vadd.f32 %v462_v32, %v224_v19 }
  0xf8   :  { %273 = vst.msk [vmem:[%s564_s4 + $0x30] sm:$0xff] %vm266_vm2, %v256_v20  ;;  %281 = vst.msk [vmem:[%s564_s4 + $0x70] sm:$0xff] %vm266_vm2, %v264_v21  ;;  %v257_v28 = vmax.f32 %v241_v22, 0.0  ;;  %v265_v29 = vmax.f32 %v249_v23, 0.0 }
  0xf9   :  { %271 = vst.msk [vmem:[%s564_s4 + $0x20] sm:$0xff] %vm266_vm2, %v254_v24  ;;  %279 = vst.msk [vmem:[%s564_s4 + $0x60] sm:$0xff] %vm266_vm2, %v262_v25  ;;  %v255_v30 = vmax.f32 %v239_v26, 0.0  ;;  %v263_v31 = vmax.f32 %v247_v27, 0.0 }
  0xfa   :  { %274 = vst.msk [vmem:[%s564_s4 + $0x38] sm:$0xff] %vm266_vm2, %v257_v28  ;;  %282 = vst.msk [vmem:[%s564_s4 + $0x78] sm:$0xff] %vm266_vm2, %v265_v29 }
  0xfb   :  { %272 = vst.msk [vmem:[%s564_s4 + $0x28] sm:$0xff] %vm266_vm2, %v255_v30  ;;  %280 = vst.msk [vmem:[%s564_s4 + $0x68] sm:$0xff] %vm266_vm2, %v263_v31 }

// kernel: reverse
= control target key start
LH: loop header
LB: loop body
LE: loop exit
PB: predicated region body
PF: predicated region fallthrough
CT: control target
= control target key end

     0   :  { %s56_s0 = inlined_call_operand.vmem [shape: f32[2,4,32], index: 0, kind: input, shape index: {}]   ;;  %s57_s1 = inlined_call_operand.vmem [shape: f32[2,4,32], index: 1, kind: output, shape index: {}]  }
   0x1   :  { %v16_v0 = vld [vmem:[%s56_s0 + $0x6] sm:$0x3]  ;;  %v17_v1 = vld [vmem:[%s56_s0 + $0x4] sm:$0x3]  ;;  %v19_v2 = vld [vmem:[%s56_s0 + $0x2] sm:$0x3] }
   0x2   :  { %4 = vst [vmem:[%s57_s1] sm:$0x3] %v16_v0  ;;  %18 = vst [vmem:[%s57_s1 + $0x2] sm:$0x3] %v17_v1  ;;  %v13_v3 = vld [vmem:[%s56_s0] sm:$0x3] }
   0x3   :  { %20 = vst [vmem:[%s57_s1 + $0x4] sm:$0x3] %v19_v2  ;;  %21 = vst [vmem:[%s57_s1 + $0x6] sm:$0x3] %v13_v3 }

// kernel: _lambda_.11
= control target key start
LH: loop header
LB: loop body
LE: loop exit
PB: predicated region body
PF: predicated region fallthrough
CT: control target
= control target key end

     0   :  { %v117_v1 = vmov 0   ;;  %vm53_vm0 = vcmask 261120   ;;  %v23_v7 = vlaneseq  ;;  %vm99_vm1 = vcmask 523264   ;;  %s162_s1 = inlined_call_operand.vmem [shape: bf16[32,192], index: 1, kind: input, shape index: {}]   ;;  %s163_s0 = inlined_call_operand.vmem [shape: f32[8,32], index: 0, kind: input, shape index: {}]   ;;  %s164_s2 = inlined_call_operand.vmem [shape: f32[1,192], index: 2, kind: input, shape index: {}]   ;;  %s165_s3 = inlined_call_operand.vmem [shape: f32[8,192], index: 3, kind: output, shape index: {}]  }
   0x1   :  { %v111_v0 = vld [vmem:[%s162_s1 + $0x4] ss:$8 sps:$4 sm:$0xff]   ;;  %89 = vmatprep.mubr.bf16.mxu0 %v117_v1  ;;  %v113_v2 = vld [vmem:[%s162_s1] ss:$8 sps:$4 sm:$0xff]   ;;  %v114_v3 = vld [vmem:[%s162_s1 + $0x14] ss:$8 sps:$4 sm:$0xff]  }
   0x2   :  { %57 = vmatprep.subr.bf16.mxu0 %v111_v0  ;;  %v116_v4 = vld [vmem:[%s162_s1 + $0x10] ss:$8 sps:$4 sm:$0xff]   ;;  %v15_v5 = vld [vmem:[%s163_s0] sm:$0xff]  ;;  %v24_v8 = vshrl.u32 %v23_v7, 7 }
   0x3   :  { %58 = vmatpush1.bf16.msra.mxu0 %v113_v2  ;;  %v16_v6 = vpack.c.bf16 %v15_v5, %v15_v5  ;;  %v21_v10 = vld [vmem:[%s164_s2] sm:$0x3] }
   0x4   :  { %59 = vmatprep.subr.bf16.mxu0 %v114_v3  ;;  %v25_v9 = vsub.s32 0, %v24_v8  ;;  %v29_v11 = vsub.s32 1, %v24_v8 }
   0x6   :  { %v26_v12 = vrot.slane %v21_v10, %v25_v9  ;;  %v30_v13 = vrot.slane %v21_v10, %v29_v11 }
   0x7   :  { %60 = vmatpush1.bf16.msra.mxu0 %v116_v4 }
   0xa   :  { %109 = vmatmul.mubr.msk.bf16.vlgmr.msra.gmra.mrb[0].mxu0 %vm53_vm0, %v16_v6 }
  0xdd   :  { %v91_v14 = vpop.f32.mrb[0].mxu0 }
  0xde   :  { %v92_v15 = vadd.f32 %v91_v14, %v26_v12  ;;  %v93_v16 = vpop.f32.mrb[1].mxu0 }
  0xdf   :  { %v94_v17 = vadd.f32 %v93_v16, %v30_v13  ;;  %v95_v18 = vpop.f32.mrb[2].mxu0 }
  0xe0   :  { %98 = vst [vmem:[%s165_s3] sm:$0xff] %v92_v15  ;;  %v96_v19 = vpop.f32.mrb[3].mxu0 }
  0xe1   :  { %100 = vst.msk [vmem:[%s165_s3 + $0x8] sm:$0xff] %vm99_vm1, %v94_v17 }

// kernel: _lambda_.13
= control target key start
LH: loop header
LB: loop body
LE: loop exit
PB: predicated region body
PF: predicated region fallthrough
CT: control target
= control target key end

     0   :  { %v150_v1 = vmov 0   ;;  %vm77_vm0 = vcmask 523264   ;;  %v27_v11 = vlaneseq  ;;  %s209_s1 = inlined_call_operand.vmem [shape: bf16[64,192], index: 1, kind: input, shape index: {}]   ;;  %s210_s0 = inlined_call_operand.vmem [shape: f32[8,64], index: 0, kind: input, shape index: {}]   ;;  %s211_s2 = inlined_call_operand.vmem [shape: f32[1,192], index: 2, kind: input, shape index: {}]   ;;  %s212_s3 = inlined_call_operand.vmem [shape: f32[8,192], index: 3, kind: output, shape index: {}]  }
   0x1   :  { %v138_v0 = vld [vmem:[%s209_s1 + $0x4] ss:$8 sps:$4 sm:$0xff]   ;;  %113 = vmatprep.mubr.bf16.mxu0 %v150_v1  ;;  %v140_v2 = vld [vmem:[%s209_s1] ss:$8 sps:$4 sm:$0xff]   ;;  %v141_v3 = vld [vmem:[%s209_s1 + $0x14] ss:$8 sps:$4 sm:$0xff]  }
   0x2   :  { %81 = vmatprep.subr.bf16.mxu0 %v138_v0  ;;  %v143_v4 = vld [vmem:[%s209_s1 + $0x10] ss:$8 sps:$4 sm:$0xff]   ;;  %v144_v5 = vld [vmem:[%s209_s1 + $0x24] ss:$8 sps:$4 sm:$0xff]   ;;  %v146_v6 = vld [vmem:[%s209_s1 + $0x20] ss:$8 sps:$4 sm:$0xff]  }
   0x3   :  { %82 = vmatpush1.bf16.msra.mxu0 %v140_v2  ;;  %v147_v7 = vld [vmem:[%s209_s1 + $0x34] ss:$8 sps:$4 sm:$0xff]   ;;  %v149_v8 = vld [vmem:[%s209_s1 + $0x30] ss:$8 sps:$4 sm:$0xff]   ;;  %v15_v9 = vld [vmem:[%s210_s0] sm:$0xff]  ;;  %v28_v12 = vshrl.u32 %v27_v11, 7 }
   0x4   :  { %83 = vmatprep.subr.bf16.mxu0 %v141_v3  ;;  %v16_v10 = vpack.c.bf16 %v15_v9, %v15_v9  ;;  %v25_v14 = vld [vmem:[%s211_s2] sm:$0x3] }
   0x5   :  { %v29_v13 = vsub.s32 0, %v28_v12  ;;  %v33_v15 = vsub.s32 1, %v28_v12 }
   0x7   :  { %84 = vmatpush1.bf16.msra.mxu0 %v143_v4  ;;  %v30_v16 = vrot.slane %v25_v14, %v29_v13  ;;  %v34_v17 = vrot.slane %v25_v14, %v33_v15 }
   0x8   :  { %85 = vmatprep.subr.bf16.mxu0 %v144_v5 }
   0xb   :  { %86 = vmatpush1.bf16.msra.mxu0 %v146_v6 }
   0xc   :  { %87 = vmatprep.subr.bf16.mxu0 %v147_v7 }
   0xf   :  { %88 = vmatpush1.bf16.msra.mxu0 %v149_v8 }
  0x12   :  { %136 = vmatmul.mubr.msk.bf16.vlgmr.msra.gmra.mrb[0].mxu0 %vm77_vm0, %v16_v10 }
  0xe5   :  { %v115_v18 = vpop.f32.mrb[0].mxu0 }
  0xe6   :  { %v116_v19 = vadd.f32 %v115_v18, %v30_v16  ;;  %v117_v20 = vpop.f32.mrb[1].mxu0 }
  0xe7   :  { %v118_v21 = vadd.f32 %v117_v20, %v34_v17  ;;  %v119_v22 = vpop.f32.mrb[2].mxu0 }
  0xe8   :  { %122 = vst [vmem:[%s212_s3] sm:$0xff] %v116_v19  ;;  %v120_v23 = vpop.f32.mrb[3].mxu0 }
  0xe9   :  { %123 = vst.msk [vmem:[%s212_s3 + $0x8] sm:$0xff] %vm77_vm0, %v118_v21 }

// kernel: _lambda_.12
= control target key start
LH: loop header
LB: loop body
LE: loop exit
PB: predicated region body
PF: predicated region fallthrough
CT: control target
= control target key end

     0   :  { %s432_s12 = smov 0   ;;  %s485_s0 = inlined_call_operand.vmem [shape: f32[4,2,192], index: 0, kind: input, shape index: {}]   ;;  %s486_s1 = inlined_call_operand.vmem [shape: bf16[64,192], index: 1, kind: input, shape index: {}]   ;;  %s487_s2 = inlined_call_operand.vmem [shape: f32[1,192], index: 2, kind: input, shape index: {}]   ;;  %s488_s3 = inlined_call_operand.vmem [shape: f32[4,2,64], index: 3, kind: output, shape index: {}]  }
   0x1 LB: > { %s438_s13 = sadd.s32 4294967295, %s406_s12   ;;  %p352_p0 = scmp.ge.s32.totalorder %s406_s12, 1  ;;  %s406_s12 = sphi %s432_s12, %s13_s12  }
   0x2   : > { %p132_p1 = scmp.lt.s32.totalorder %s406_s12, 5 }
   0x4   : > { %p133_p2 = pnand %p352_p0, %p132_p1 }
   0x5   : > { %p151_p3 = scmp.lt.s32.totalorder (!%p133_p2), %s438_s13, 3  ;;  %p355_p4 = scmp.ne.s32.totalorder (!%p133_p2), %s438_s13, 0 }
   0x6   : > { %136 = sbr.rel (%p133_p2) target bundleno = 536 (0x218), region = 32 }
   0xd   : > { %s152_s14 = scalar_select %p151_p3, %s438_s13, 3 }
   0xe   : > { %160 = sbr.rel (%p355_p4) target bundleno = 21 (0x15), region = 36  ;;  %vm161_vm0 = vcmask (!%p355_p4), 517120   ;;  %v408_v0 = vmov (!%p355_p4), 0.0  }
   0xf   : > { %s369_s15 = sshll.u32 %s152_s14, 2  ;;  %162 = vst.msk [vmem:[#allocation2] sm:$0x3] (!%p355_p4), %vm161_vm0, %v408_v0 }
  0x10   : > { %s447_s18 = scalar_lea.vmem %s485_s0, %s369_s15 }
  0x15 PF: > { %v382_v1 = vld [vmem:[%s486_s1 + $0x4] ss:$8 sps:$4 sm:$0xff]   ;;  %v384_v2 = vld [vmem:[%s486_s1] ss:$8 sps:$4 sm:$0xff]   ;;  %v409_v3 = vmov 0   ;;  %vm225_vm1 = vcmask 523264   ;;  %v175_v12 = vlaneseq }
  0x16   : > { %261 = vmatprep.mubr.bf16.mxu0 %v409_v3  ;;  %229 = vmatprep.subr.bf16.mxu0 %v382_v1  ;;  %v385_v4 = vld [vmem:[%s486_s1 + $0x14] ss:$8 sps:$4 sm:$0xff]   ;;  %v387_v5 = vld [vmem:[%s486_s1 + $0x10] ss:$8 sps:$4 sm:$0xff]   ;;  %v388_v6 = vld [vmem:[%s486_s1 + $0x24] ss:$8 sps:$4 sm:$0xff]  }
  0x17   : > { %230 = vmatpush1.bf16.msra.mxu0 %v384_v2  ;;  %v390_v7 = vld [vmem:[%s486_s1 + $0x20] ss:$8 sps:$4 sm:$0xff]   ;;  %v391_v8 = vld [vmem:[%s486_s1 + $0x34] ss:$8 sps:$4 sm:$0xff]   ;;  %v393_v9 = vld [vmem:[%s486_s1 + $0x30] ss:$8 sps:$4 sm:$0xff]  }
  0x18   : > { %231 = vmatprep.subr.bf16.mxu0 %v385_v4  ;;  %v163_v10 = vld [vmem:[#allocation2] sm:$0x3]  ;;  %v176_v13 = vshrl.u32 %v175_v12, 7  ;;  %v410_v34 = vmov 1983009808   ;;  %s411_s10 = smov 64  }
  0x19   : > { %v164_v11 = vpack.c.bf16 %v163_v10, %v163_v10  ;;  %v173_v15 = vld [vmem:[%s487_s2] sm:$0x3]  ;;  %v292_v35 = vunpack.c.l.s4 %v410_v34  ;;  %s366_s11 = sshll.u32 %s438_s13, 1  ;;  %vm314_vm2 = vcmask 517120  }
  0x1a   : > { %v177_v14 = vsub.s32 0, %v176_v13  ;;  %v270_v18 = vld [vmem:[%s447_s18] sm:$0xf]  ;;  %v181_v27 = vsub.s32 1, %v176_v13  ;;  %s317_s16 = scalar_lea.vmem %s488_s3, %s366_s11 }
  0x1b   : > { %232 = vmatpush1.bf16.msra.mxu0 %v387_v5  ;;  %v280_v29 = vrot.slane %v270_v18, 2  ;;  %v293_v36 = vunpack.c.0.s8 %v292_v35 }
  0x1c   : > { %233 = vmatprep.subr.bf16.mxu0 %v388_v6  ;;  %v178_v16 = vrot.slane %v173_v15, %v177_v14  ;;  %v182_v28 = vrot.slane %v173_v15, %v181_v27 }
  0x1d   : > { %v296_v37 = vsub.s32 %v293_v36, %v176_v13 }
  0x1f   : > { %234 = vmatpush1.bf16.msra.mxu0 %v390_v7  ;;  %v297_v39 = vrot.slane %v163_v10, %v296_v37 }
  0x20   : > { %235 = vmatprep.subr.bf16.mxu0 %v391_v8 }
  0x23   : > { %236 = vmatpush1.bf16.msra.mxu0 %v393_v9 }
  0x26   : > { %364 = vmatmul.mubr.msk.bf16.vlgmr.msra.gmra.mrb[0].mxu0 %vm225_vm1, %v164_v11 }
  0xf9   : > { %v263_v17 = vpop.f32.mrb[0].mxu0 }
  0xfa   : > { %v264_v19 = vadd.f32 %v263_v17, %v178_v16  ;;  %v265_v20 = vpop.f32.mrb[1].mxu0 }
  0xfb   : > { %v267_v21 = vpop.f32.mrb[2].mxu0  ;;  %v266_v30 = vadd.f32 %v265_v20, %v182_v28 }
  0xfc   : > { %v271_v22 = vadd.f32 %v270_v18, %v264_v19  ;;  %v268_v23 = vpop.f32.mrb[3].mxu0 }
  0xfe   : > { %v365_v24 = vmul.f32 -1.442695, %v271_v22 }
 0x100   : > { %394 = vpow2.f32 %v365_v24 }
 0x10a   : > { %v395_v25 = vpop.eup %394 }
 0x10b   : > { %v275_v26 = vadd.f32 1.0, %v395_v25 }
 0x10d   : > { %396 = vrcp.f32 %v275_v26 }
 0x117   : > { %v397_v31 = vpop.eup %396 }
 0x118   : > { %v278_v32 = vmul.f32 %v397_v31, %v266_v30  ;;  %v284_v41 = vsub.f32 1.0, %v397_v31 }
 0x11a   : > { %v282_v33 = vadd.f32 %v280_v29, %v278_v32 }
 0x11c   : > { %398 = vtanh.f32 %v282_v33 }
 0x126   : > { %v399_v38 = vpop.eup %398 }
 0x127   : > { %286 = vrot.lane.b32.xlu0 %v399_v38, %s411_s10 }
 0x12b   : > { %298 = vrot.lane.b32.xlu0 %v297_v39, %s411_s10 }
 0x199   : > { %v287_v40 = vpop.permute.xlu0 %286 }
 0x19a   : > { %v289_v43 = vmul.f32 %v287_v40, %v284_v41 }
 0x19d   : > { %v299_v42 = vpop.permute.xlu0 %298 }
 0x19e   : > { %v301_v44 = vmul.f32 %v397_v31, %v299_v42 }
 0x1a0   : > { %v302_v45 = vadd.f32 %v301_v44, %v289_v43 }
 0x1a2   : > { %v310_v46 = vrot.slane %v302_v45, %v296_v37 }
 0x1a4   : > { %311 = vrot.lane.b32.xlu1 %v310_v46, %s411_s10 }
 0x216   : > { %v312_v47 = vpop.permute.xlu1 %311 }
 0x217   : > { %315 = vst.msk [vmem:[#allocation2] sm:$0x3] %vm314_vm2, %v312_v47  ;;  %318 = vst.msk [vmem:[%s317_s16] sm:$0x3] %vm314_vm2, %v312_v47 }
 0x218 PF: > { %s13_s12 = sadd.s32 1, %s406_s12  }
 0x219   : > { %p10_p5 = scmp.ge.s32.totalorder %s13_s12, 6  }
 0x21b   :  { %12 = sbr.rel (!%p10_p5) target bundleno = 1 (0x1), region = 63 }

// kernel: _lambda_.17
= control target key start
LH: loop header
LB: loop body
LE: loop exit
PB: predicated region body
PF: predicated region fallthrough
CT: control target
= control target key end

     0   :  { %v234_v1 = vmov 0.0   ;;  %vm235_vm0 = vmmov 0   ;;  %s300_s0 = inlined_call_operand.vmem [shape: f32[8,32], index: 0, kind: input, shape index: {}]   ;;  %s301_s1 = inlined_call_operand.vmem [shape: bf16[32,32], index: 1, kind: input, shape index: {}]   ;;  %s302_s2 = inlined_call_operand.vmem [shape: f32[1,32], index: 2, kind: input, shape index: {}]   ;;  %s303_s3 = inlined_call_operand.vmem [shape: bf16[32,128], index: 3, kind: input, shape index: {}]   ;;  %s304_s4 = inlined_call_operand.vmem [shape: f32[1,128], index: 4, kind: input, shape index: {}]   ;;  %s305_s5 = inlined_call_operand.hbm [shape: f32[8,128], index: 5, kind: output, shape index: {}]  }
   0x1   :  { %v206_v0 = vld [vmem:[%s301_s1] sm:$0xff]   ;;  %187 = vmatprep.subr.bf16.mxu0 %v234_v1  ;;  %v207_v2 = vld [vmem:[%s301_s1 + $0x8] sm:$0xff]   ;;  %195 = vmatprep.subr.bf16.mxu1 %v234_v1 }
   0x2   :  { %188 = vmatpush3.bf16.msra.mxu0 %v206_v0  ;;  %191 = vmatprep.mubr.msk.bf16.mxu0 %vm235_vm0, %v234_v1  ;;  %v22_v3 = vld [vmem:[%s300_s0] sm:$0xff] }
   0x3   :  { %189 = vmatprep.subr.bf16.mxu0 %v234_v1  ;;  %v208_v4 = vld [vmem:[%s303_s3] sm:$0xff]   ;;  %199 = vmatprep.mubr.msk.bf16.mxu1 %vm235_vm0, %v234_v1 }
   0x4   :  { %10 = vsyncpa [#allocation3], 0  ;;  %v23_v5 = vpack.c.bf16 %v22_v3, %v22_v3  ;;  %196 = vmatpush3.bf16.msra.mxu1 %v208_v4  ;;  %vm47_vm1 = vcmask 261120   ;;  %v209_v6 = vld [vmem:[%s303_s3 + $0x8] sm:$0xff]   ;;  %v173_v7 = vld [vmem:[%s302_s2] ss:$0 sm:$0xff] }
   0x5   :  { %197 = vmatprep.subr.bf16.mxu1 %v234_v1  ;;  %v177_v14 = vld [vmem:[%s304_s4] ss:$0 sm:$0xff]  ;;  %s236_s30 = smov [#allocation2]  }
   0x6   :  { %190 = vmatpush3.bf16.msra.mxu0 %v207_v2  ;;  %s165_s6 = sshll.u32 %s236_s30, 4  ;;  %s166_s6 = int_to_ptr.vmem [resolvable:$true] %s165_s6 }
   0x7   :  { %s210_s2 = scalar_lea.vmem %s166_s6, 128  ;;  %p215_p1 = scmp.lt.s32.totalorder %s166_s6, %s166_s6 }
   0x8   :  { %198 = vmatpush3.bf16.msra.mxu1 %v209_v6  ;;  %p211_p0 = scmp.ne.s32.totalorder %s166_s6, %s210_s2  ;;  %p216_p2 = scmp.lt.s32.totalorder %s210_s2, %s210_s2 }
   0x9   :  { %192 = vmatmul.mubr.msk.bf16.vlgmr.msra.gmra.mrb[0].mxu0 %vm47_vm1, %v23_v5 }
   0xa   :  { %p217_p3 = por %p216_p2, %p215_p1 }
   0xc   :  { %p218_p4 = pnand %p217_p3, %p211_p0 }
  0xdc   :  { %v85_v8 = vpop.f32.mrb[0].mxu0 }
  0xdd   :  { %v86_v9 = vadd.f32 %v173_v7, %v85_v8  ;;  %v193_v10 = vpop.f32.mrb[1].mxu0 }
  0xde   :  { %v88_v11 = vpop.f32.mrb[2].mxu0 }
  0xdf   :  { %v91_v12 = vpack.c.bf16 %v86_v9, %v86_v9  ;;  %v194_v13 = vpop.f32.mrb[3].mxu0 }
  0xe1   :  { %200 = vmatmul.mubr.msk.bf16.vlgmr.msra.gmra.mrb[0].mxu1 %vm47_vm1, %v91_v12 }
 0x1b4   :  { %v152_v15 = vpop.f32.mrb[0].mxu1 }
 0x1b5   :  { %v153_v16 = vadd.f32 %v177_v14, %v152_v15  ;;  %v201_v17 = vpop.f32.mrb[1].mxu1 }
 0x1b6   :  { %v155_v18 = vpop.f32.mrb[2].mxu1 }
 0x1b7   :  { %158 = vst [vmem:[#allocation2] sm:$0xff] %v153_v16  ;;  %v202_v19 = vpop.f32.mrb[3].mxu1 }
 0x1b8   :  { %221 = shalt.err (!%p218_p4)
}
 0x1b9   :  { %s222_s4 = scalar_lea.hbm %s305_s5, 128 }
 0x1ba   :  { %p223_p5 = scmp.ne.s32.totalorder %s305_s5, %s222_s4  ;;  %p226_p6 = scmp.lt.u32.totalorder %s222_s4, %s305_s5 }
 0x1bc   :  { %p228_p7 = pnand %p226_p6, %p223_p5 }
 0x1be   :  { %231 = shalt.err (!%p228_p7)
}
 0x1bf   :  { %168 = dma.vmem_to_hbm [thread:$0]  %s166_s6, 128, %s305_s5, [#allocation3]  }
 0x1c0   :  { %232 = dma.done.wait [#allocation3], 128  }
 0x1c1   :  { %233 = vsyncadd [#allocation3], 4294967168 }
 0x1c2   :  { %172 = vsyncpa [#allocation3], 1 }

// kernel: _lambda_.15
= control target key start
LH: loop header
LB: loop body
LE: loop exit
PB: predicated region body
PF: predicated region fallthrough
CT: control target
= control target key end

     0   :  { %v1815_v0 = vmov 0.0   ;;  %vm1816_vm0 = vmmov 0   ;;  %vm59_vm1 = vcmask 261120   ;;  %s1818_s13 = smov 96   ;;  %s1819_s14 = smov 88   ;;  %vm106_vm2 = vcmask 64512   ;;  %s2072_s2 = inlined_call_operand.vmem [shape: bf16[32,96], index: 2, kind: input, shape index: {}]   ;;  %s2073_s0 = inlined_call_operand.vmem [shape: f32[8,32], index: 0, kind: input, shape index: {}]   ;;  %s2074_s1 = inlined_call_operand.vmem [shape: f32[8,32], index: 1, kind: input, shape index: {}]   ;;  %s2075_s3 = inlined_call_operand.vmem [shape: f32[1,96], index: 3, kind: input, shape index: {}]   ;;  %s2076_s4 = inlined_call_operand.vmem [shape: bf16[32,32], index: 4, kind: input, shape index: {}]   ;;  %s2077_s5 = inlined_call_operand.vmem [shape: f32[1,32], index: 5, kind: input, shape index: {}]   ;;  %s2078_s6 = inlined_call_operand.vmem [shape: f32[1,32], index: 6, kind: input, shape index: {}]   ;;  %s2079_s7 = inlined_call_operand.vmem [shape: f32[1,32], index: 7, kind: input, shape index: {}]   ;;  %s2080_s8 = inlined_call_operand.vmem [shape: f32[8,32], index: 8, kind: output, shape index: {}]  }
   0x1   :  { %1661 = vmatprep.subr.bf16.mxu0 %v1815_v0  ;;  %v1773_v1 = vld [vmem:[%s2072_s2] sm:$0xff]   ;;  %1665 = vmatprep.mubr.msk.bf16.mxu0 %vm1816_vm0, %v1815_v0  ;;  %v1774_v2 = vld [vmem:[%s2072_s2 + $0x8] sm:$0xff]   ;;  %s1817_s2 = smov 64   ;;  %s1820_s15 = smov 120   ;;  %vm200_vm3 = vcmask 1043456   ;;  %vm182_vm4 = vcmask 27648  }
   0x2   :  { %1674 = vmatprep.subr.mxu1 %v1815_v0  ;;  %1676 = vmatprep.mubr.msk.f32.mxu1 %vm1816_vm0, %v1815_v0  ;;  %v30_v3 = vld [vmem:[%s2074_s1] sm:$0xff]  ;;  %s1822_s16 = smov 112   ;;  %s1823_s17 = smov 104   ;;  %vm196_vm5 = vcmask 31744   ;;  %vm273_vm6 = vcmask 60416   ;;  %vm446_vm7 = vcmask 126016  }
   0x3   :  { %1662 = vmatpush3.bf16.msra.mxu0 %v1773_v1  ;;  %v32_v4 = vld [vmem:[%s2073_s0] sm:$0xff]  ;;  %1777 = vtanh.f32 %v30_v3  ;;  %s1824_s18 = smov 72   ;;  %s1825_s19 = smov 48   ;;  %vm619_vm8 = vcmask 191616   ;;  %vm792_vm9 = vcmask 257216  }
   0x4   :  { %1663 = vmatprep.subr.bf16.mxu0 %v1815_v0  ;;  %1779 = vtanh.f32 %v32_v4  ;;  %v1581_v9 = vld [vmem:[%s2075_s3] ss:$0 sm:$0xff]  ;;  %s1821_s3 = smov 80   ;;  %s1826_s20 = smov 40  }
   0x5   :  { %s1827_s21 = smov 56   ;;  %s1828_s22 = smov 8  }
   0x6   :  { %s1829_s23 = smov 16   ;;  %s1830_s24 = smov 24  }
   0x7   :  { %1664 = vmatpush3.bf16.msra.mxu0 %v1774_v2 }
   0x8   :  { %1669 = vmatprep.subr.mxu0 %v1815_v0 }
   0xd   :  { %v1778_v5 = vpop.eup %1777 }
   0xe   :  { %v1780_v6 = vpop.eup %1779 }
   0xf   :  { %v1896_v7 = vmul.f32 %v1780_v6, %v1778_v5 }
  0x11   :  { %v35_v8 = vpack.c.bf16 %v1896_v7, %v1896_v7 }
  0x13   :  { %1666 = vmatmul.mubr.msk.bf16.vlgmr.msra.gmra.mrb[0].mxu0 %vm59_vm1, %v35_v8 }
  0x14   :  { %1671 = vmatprep.mubr.msk.f32.mxu0 %vm1816_vm0, %v1815_v0 }
  0xe6   :  { %v97_v10 = vpop.f32.mrb[0].mxu0 }
  0xe7   :  { %v1906_v11 = vadd.f32 %v1581_v9, %v97_v10  ;;  %v1667_v12 = vpop.f32.mrb[1].mxu0 }
  0xe8   :  { %v100_v13 = vpop.f32.mrb[2].mxu0 }
  0xe9   :  { %194 = vrot.lane.b32.xlu1 %v1906_v11, %s1817_s2  ;;  %104 = vrot.lane.b32.xlu0 %v1906_v11, %s1818_s13  ;;  %v1668_v14 = vpop.f32.mrb[3].mxu0  ;;  %v1931_v21 = vrot.slane %v1906_v11, 4 }
  0xed   :  { %277 = vrot.lane.b32.xlu1 %v1906_v11, %s1819_s14 }
  0xf1   :  { %275 = vrot.lane.b32.xlu1 %v1906_v11, %s1820_s15 }
  0xf5   :  { %450 = vrot.lane.b32.xlu1 %v1906_v11, %s1821_s3 }
  0xf9   :  { %448 = vrot.lane.b32.xlu1 %v1906_v11, %s1822_s16 }
  0xfd   :  { %621 = vrot.lane.b32.xlu1 %v1906_v11, %s1823_s17 }
 0x15b   :  { %v195_v15 = vpop.permute.xlu1 %194  ;;  %v105_v16 = vpop.permute.xlu0 %104 }
 0x15c   :  { %1670 = vmatpush3.xpose.msk.msra.mxu0 %vm106_vm2, %v105_v16  ;;  %1675 = vmatpush3.msk.msra.mxu1 %vm200_vm3, %v195_v15 }
 0x15d   :  { %1679 = vmatprep.subr.mxu1 %v1815_v0  ;;  %1684 = vmatprep.subr.mxu0 %v1815_v0 }
 0x15f   :  { %1672 = vmatmul.mubr.msk.f32.vlgmr.msra.gmra.mrb[4].mxu0 %vm106_vm2, %v1906_v11  ;;  %v278_v27 = vpop.permute.xlu1 %277 }
 0x160   :  { %1686 = vmatprep.mubr.msk.f32.mxu0 %vm1816_vm0, %v1815_v0 }
 0x163   :  { %v276_v28 = vpop.permute.xlu1 %275 }
 0x167   :  { %v451_v29 = vpop.permute.xlu1 %450 }
 0x16b   :  { %v449_v30 = vpop.permute.xlu1 %448 }
 0x16f   :  { %v622_v31 = vpop.permute.xlu1 %621 }
 0x232   :  { %v177_v17 = vpop.f32.mrb[4].mxu0 }
 0x233   :  { %v181_v18 = vmul.f32 0.35355338, %v177_v17  ;;  %v1673_v19 = vpop.f32.mrb[5].mxu0 }
 0x235   :  { %v183_v20 = vsel %vm182_vm4, %v181_v18, -inf }
 0x236   :  { %184 = vmax.xlane.f32.xlu0 %v183_v20 }
 0x24c   :  { %623 = vrot.lane.b32.xlu0 %v1906_v11, %s1824_s18 }
 0x250   :  { %1133 = vrot.lane.b32.xlu0 %v1931_v21, %s1822_s16 }
 0x254   :  { %1305 = vrot.lane.b32.xlu0 %v1931_v21, %s1823_s17 }
 0x2c3   :  { %v185_v22 = vpop.xlane.xlu0 %184 }
 0x2c4   :  { %v186_v23 = vsub.f32 %v181_v18, %v185_v22 }
 0x2c6   :  { %v187_v24 = vmul.f32 1.442695, %v186_v23 }
 0x2c7   :  { %v624_v37 = vpop.permute.xlu0 %623 }
 0x2c8   :  { %1781 = vpow2.f32 %v187_v24 }
 0x2cb   :  { %v1134_v40 = vpop.permute.xlu0 %1133 }
 0x2cf   :  { %v1306_v42 = vpop.permute.xlu0 %1305 }
 0x2d2   :  { %v1782_v25 = vpop.eup %1781 }
 0x2d3   :  { %v189_v26 = vsel %vm182_vm4, %v1782_v25, 0.0 }
 0x2d4   :  { %190 = vadd.xlane.f32.xlu1 %v189_v26 }
 0x2e5   :  { %795 = vrot.lane.b32.xlu1 %v1931_v21, %s1818_s13 }
 0x2e9   :  { %963 = vrot.lane.b32.xlu1 %v1931_v21, %s1819_s14 }
 0x2ed   :  { %961 = vrot.lane.b32.xlu1 %v1931_v21, %s1820_s15 }
 0x2f1   :  { %1135 = vrot.lane.b32.xlu1 %v1931_v21, %s1821_s3 }
 0x2f5   :  { %1307 = vrot.lane.b32.xlu1 %v1931_v21, %s1824_s18 }
 0x361   :  { %v191_v32 = vpop.xlane.xlu1 %190 }
 0x362   :  { %1783 = vrcp.f32 %v191_v32 }
 0x365   :  { %v796_v35 = vpop.permute.xlu1 %795 }
 0x369   :  { %v964_v36 = vpop.permute.xlu1 %963 }
 0x36c   :  { %v1784_v33 = vpop.eup %1783 }
 0x36d   :  { %v193_v34 = vmul.f32 %v1784_v33, %v1782_v25  ;;  %v962_v38 = vpop.permute.xlu1 %961 }
 0x36f   :  { %1677 = vmatmul.mubr.msk.f32.vlgmr.msra.gmra.mrb[0].mxu1 %vm196_vm5, %v193_v34 }
 0x370   :  { %1680 = vmatpush3.xpose.msk.msra.mxu1 %vm106_vm2, %v278_v27  ;;  %1681 = vmatprep.mubr.msk.f32.mxu1 %vm1816_vm0, %v1815_v0 }
 0x371   :  { %1689 = vmatprep.subr.mxu1 %v1815_v0  ;;  %v1136_v39 = vpop.permute.xlu1 %1135 }
 0x373   :  { %1682 = vmatmul.mubr.msk.f32.vlgmr.msra.gmra.mrb[2].mxu1 %vm106_vm2, %v276_v28 }
 0x374   :  { %1690 = vmatpush3.xpose.msk.msra.mxu1 %vm106_vm2, %v451_v29  ;;  %1691 = vmatprep.mubr.msk.f32.mxu1 %vm1816_vm0, %v1815_v0 }
 0x375   :  { %1699 = vmatprep.subr.mxu1 %v1815_v0  ;;  %v1308_v41 = vpop.permute.xlu1 %1307 }
 0x377   :  { %1692 = vmatmul.mubr.msk.f32.vlgmr.msra.gmra.mrb[4].mxu1 %vm106_vm2, %v449_v30 }
 0x378   :  { %1700 = vmatpush3.xpose.msk.msra.mxu1 %vm106_vm2, %v624_v37  ;;  %1701 = vmatprep.mubr.msk.f32.mxu1 %vm1816_vm0, %v1815_v0 }
 0x379   :  { %1709 = vmatprep.subr.mxu1 %v1815_v0 }
 0x37b   :  { %1702 = vmatmul.mubr.msk.f32.vlgmr.msra.gmra.mrb[6].mxu1 %vm106_vm2, %v622_v31 }
 0x37c   :  { %1710 = vmatpush3.xpose.msk.msra.mxu1 %vm106_vm2, %v796_v35  ;;  %1711 = vmatprep.mubr.msk.f32.mxu1 %vm1816_vm0, %v1815_v0 }
 0x37d   :  { %1719 = vmatprep.subr.mxu1 %v1815_v0 }
 0x37f   :  { %1712 = vmatmul.mubr.msk.f32.vlgmr.msra.gmra.mrb[8].mxu1 %vm106_vm2, %v1931_v21 }
 0x380   :  { %1720 = vmatpush3.xpose.msk.msra.mxu1 %vm106_vm2, %v964_v36  ;;  %1721 = vmatprep.mubr.msk.f32.mxu1 %vm1816_vm0, %v1815_v0 }
 0x381   :  { %1729 = vmatprep.subr.mxu1 %v1815_v0 }
 0x383   :  { %1722 = vmatmul.mubr.msk.f32.vlgmr.msra.gmra.mrb[10].mxu1 %vm106_vm2, %v962_v38 }
 0x384   :  { %1730 = vmatpush3.xpose.msk.msra.mxu1 %vm106_vm2, %v1136_v39  ;;  %1731 = vmatprep.mubr.msk.f32.mxu1 %vm1816_vm0, %v1815_v0 }
 0x385   :  { %1739 = vmatprep.subr.mxu1 %v1815_v0 }
 0x387   :  { %1732 = vmatmul.mubr.msk.f32.vlgmr.msra.gmra.mrb[12].mxu1 %vm106_vm2, %v1134_v40 }
 0x388   :  { %1740 = vmatpush3.xpose.msk.msra.mxu1 %vm106_vm2, %v1308_v41  ;;  %1741 = vmatprep.mubr.msk.f32.mxu1 %vm1816_vm0, %v1815_v0 }
 0x389   :  { %1749 = vmatprep.subr.bf16.mxu1 %v1815_v0 }
 0x38b   :  { %1742 = vmatmul.mubr.msk.f32.vlgmr.msra.gmra.mrb[14].mxu1 %vm106_vm2, %v1306_v42 }
 0x38c   :  { %1753 = vmatprep.mubr.msk.bf16.mxu1 %vm1816_vm0, %v1815_v0 }
 0x442   :  { %v269_v43 = vpop.f32.mrb[0].mxu1 }
 0x443   :  { %274 = vst.msk [vmem:[#allocation2] sm:$0xf] %vm273_vm6, %v269_v43  ;;  %v1678_v44 = vpop.f32.mrb[1].mxu1 }
 0x446   :  { %v349_v45 = vpop.f32.mrb[2].mxu1 }
 0x447   :  { %v353_v46 = vmul.f32 0.35355338, %v349_v45  ;;  %v1683_v47 = vpop.f32.mrb[3].mxu1 }
 0x449   :  { %v354_v48 = vsel %vm182_vm4, %v353_v46, -inf }
 0x44a   :  { %355 = vmax.xlane.f32.xlu1 %v354_v48  ;;  %v522_v49 = vpop.f32.mrb[4].mxu1 }
 0x44b   :  { %v526_v50 = vmul.f32 0.35355338, %v522_v49  ;;  %v1693_v51 = vpop.f32.mrb[5].mxu1 }
 0x44d   :  { %v527_v52 = vsel %vm182_vm4, %v526_v50, -inf }
 0x44e   :  { %528 = vmax.xlane.f32.xlu0 %v527_v52  ;;  %v695_v53 = vpop.f32.mrb[6].mxu1 }
 0x44f   :  { %v699_v54 = vmul.f32 0.35355338, %v695_v53  ;;  %v1703_v55 = vpop.f32.mrb[7].mxu1 }
 0x451   :  { %v700_v56 = vsel %vm182_vm4, %v699_v54, -inf }
 0x452   :  { %701 = vmax.xlane.f32.xlu0 %v700_v56  ;;  %v867_v57 = vpop.f32.mrb[8].mxu1 }
 0x453   :  { %v871_v58 = vmul.f32 0.35355338, %v867_v57  ;;  %v1713_v59 = vpop.f32.mrb[9].mxu1 }
 0x455   :  { %v872_v60 = vsel %vm182_vm4, %v871_v58, -inf }
 0x456   :  { %873 = vmax.xlane.f32.xlu1 %v872_v60  ;;  %v1035_v61 = vpop.f32.mrb[10].mxu1 }
 0x457   :  { %v1039_v62 = vmul.f32 0.35355338, %v1035_v61  ;;  %v1723_v63 = vpop.f32.mrb[11].mxu1 }
 0x459   :  { %v1040_v1 = vsel %vm182_vm4, %v1039_v62, -inf }
 0x45a   :  { %1041 = vmax.xlane.f32.xlu0 %v1040_v1  ;;  %v1207_v2 = vpop.f32.mrb[12].mxu1 }
 0x45b   :  { %v1211_v3 = vmul.f32 0.35355338, %v1207_v2  ;;  %v1733_v4 = vpop.f32.mrb[13].mxu1 }
 0x45d   :  { %v1212_v5 = vsel %vm182_vm4, %v1211_v3, -inf }
 0x45e   :  { %1213 = vmax.xlane.f32.xlu1 %v1212_v5  ;;  %v1379_v6 = vpop.f32.mrb[14].mxu1 }
 0x45f   :  { %v1383_v8 = vmul.f32 0.35355338, %v1379_v6  ;;  %v1743_v9 = vpop.f32.mrb[15].mxu1 }
 0x461   :  { %v1384_v10 = vsel %vm182_vm4, %v1383_v8, -inf }
 0x462   :  { %1385 = vmax.xlane.f32.xlu0 %v1384_v10 }
 0x46f   :  { %538 = vrot.lane.b32.xlu1 %v1906_v11, %s1825_s19 }
 0x473   :  { %711 = vrot.lane.b32.xlu1 %v1906_v11, %s1826_s20 }
 0x478   :  { %365 = vrot.lane.b32.xlu0 %v1906_v11, %s1827_s21 }
 0x4d7   :  { %v356_v12 = vpop.xlane.xlu1 %355 }
 0x4d8   :  { %v357_v13 = vsub.f32 %v353_v46, %v356_v12 }
 0x4da   :  { %v358_v14 = vmul.f32 1.442695, %v357_v13 }
 0x4db   :  { %v529_v15 = vpop.xlane.xlu0 %528 }
 0x4dc   :  { %1785 = vpow2.f32 %v358_v14  ;;  %v530_v16 = vsub.f32 %v526_v50, %v529_v15 }
 0x4de   :  { %v531_v17 = vmul.f32 1.442695, %v530_v16 }
 0x4df   :  { %v702_v19 = vpop.xlane.xlu0 %701 }
 0x4e0   :  { %1787 = vpow2.f32 %v531_v17  ;;  %v703_v26 = vsub.f32 %v699_v54, %v702_v19 }
 0x4e2   :  { %v704_v29 = vmul.f32 1.442695, %v703_v26 }
 0x4e3   :  { %v874_v27 = vpop.xlane.xlu1 %873 }
 0x4e4   :  { %v875_v28 = vsub.f32 %v871_v58, %v874_v27  ;;  %1789 = vpow2.f32 %v704_v29 }
 0x4e6   :  { %v1786_v18 = vpop.eup %1785  ;;  %v876_v32 = vmul.f32 1.442695, %v875_v28 }
 0x4e7   :  { %v360_v20 = vsel %vm182_vm4, %v1786_v18, 0.0  ;;  %v1042_v23 = vpop.xlane.xlu0 %1041 }
 0x4e8   :  { %361 = vadd.xlane.f32.xlu1 %v360_v20  ;;  %v1043_v30 = vsub.f32 %v1039_v62, %v1042_v23  ;;  %1791 = vpow2.f32 %v876_v32  ;;  %v1776_v23 = vld [vmem:[%s2076_s4 + $0x8] sm:$0xff]  }
 0x4ea   :  { %v1788_v22 = vpop.eup %1787  ;;  %v1044_v34 = vmul.f32 1.442695, %v1043_v30 }
 0x4eb   :  { %v533_v24 = vsel %vm182_vm4, %v1788_v22, 0.0  ;;  %v1214_v31 = vpop.xlane.xlu1 %1213 }
 0x4ec   :  { %534 = vadd.xlane.f32.xlu0 %v533_v24  ;;  %v1215_v33 = vsub.f32 %v1211_v3, %v1214_v31  ;;  %1793 = vpow2.f32 %v1044_v34 }
 0x4ee   :  { %v1216_v36 = vmul.f32 1.442695, %v1215_v33  ;;  %v1790_v38 = vpop.eup %1789 }
 0x4ef   :  { %v1386_v25 = vpop.xlane.xlu0 %1385  ;;  %v706_v40 = vsel %vm182_vm4, %v1790_v38, 0.0  ;;  %v539_v48 = vpop.permute.xlu1 %538 }
 0x4f0   :  { %v1387_v35 = vsub.f32 %v1383_v8, %v1386_v25  ;;  %1795 = vpow2.f32 %v1216_v36  ;;  %v1617_v36 = vld [vmem:[%s2077_s5] ss:$0 sm:$0xff] }
 0x4f2   :  { %v1388_v37 = vmul.f32 1.442695, %v1387_v35  ;;  %v1792_v39 = vpop.eup %1791 }
 0x4f3   :  { %v366_v11 = vpop.permute.xlu0 %365  ;;  %v878_v43 = vsel %vm182_vm4, %v1792_v39, 0.0  ;;  %v712_v49 = vpop.permute.xlu1 %711 }
 0x4f4   :  { %1685 = vmatpush3.msk.msra.mxu0 %vm200_vm3, %v366_v11  ;;  %1797 = vpow2.f32 %v1388_v37 }
 0x4f5   :  { %1694 = vmatprep.subr.mxu0 %v1815_v0 }
 0x4f6   :  { %v1794_v41 = vpop.eup %1793 }
 0x4f7   :  { %v1046_v44 = vsel %vm182_vm4, %v1794_v41, 0.0 }
 0x4f9   :  { %1051 = vrot.lane.b32.xlu1 %v1931_v21, %s1827_s21 }
 0x4fa   :  { %v1796_v42 = vpop.eup %1795 }
 0x4fb   :  { %v1218_v46 = vsel %vm182_vm4, %v1796_v42, 0.0 }
 0x4fe   :  { %v2007_v45 = vpop.eup %1797 }
 0x4ff   :  { %v1390_v47 = vsel %vm182_vm4, %v2007_v45, 0.0 }
 0x502   :  { %883 = vrot.lane.b32.xlu0 %v1931_v21, %s1817_s2 }
 0x51d   :  { %707 = vadd.xlane.f32.xlu1 %v706_v40 }
 0x521   :  { %879 = vadd.xlane.f32.xlu0 %v878_v43  ;;  %1047 = vadd.xlane.f32.xlu1 %v1046_v44 }
 0x525   :  { %1219 = vadd.xlane.f32.xlu0 %v1218_v46  ;;  %1391 = vadd.xlane.f32.xlu1 %v1390_v47 }
 0x536   :  { %1395 = vrot.lane.b32.xlu1 %v1931_v21, %s1826_s20 }
 0x53b   :  { %1223 = vrot.lane.b32.xlu0 %v1931_v21, %s1825_s19 }
 0x575   :  { %v362_v50 = vpop.xlane.xlu1 %361 }
 0x576   :  { %1799 = vrcp.f32 %v362_v50 }
 0x579   :  { %v535_v51 = vpop.xlane.xlu0 %534  ;;  %v1052_v21 = vpop.permute.xlu1 %1051 }
 0x57a   :  { %1801 = vrcp.f32 %v535_v51 }
 0x57d   :  { %v884_v56 = vpop.permute.xlu0 %883 }
 0x580   :  { %v1800_v52 = vpop.eup %1799 }
 0x581   :  { %v364_v53 = vmul.f32 %v1800_v52, %v1786_v18 }
 0x583   :  { %1687 = vmatmul.mubr.msk.f32.vlgmr.msra.gmra.mrb[6].mxu0 %vm196_vm5, %v364_v53  ;;  %v1621_v53 = vld [vmem:[%s2078_s6] ss:$0 sm:$0xff] }
 0x584   :  { %v1802_v54 = vpop.eup %1801  ;;  %1695 = vmatpush3.msk.msra.mxu0 %vm200_vm3, %v539_v48  ;;  %1696 = vmatprep.mubr.msk.f32.mxu0 %vm1816_vm0, %v1815_v0 }
 0x585   :  { %v537_v55 = vmul.f32 %v1802_v54, %v1788_v22  ;;  %1704 = vmatprep.subr.mxu0 %v1815_v0  ;;  %v1775_v22 = vld [vmem:[%s2076_s4] sm:$0xff]  }
 0x586   :  { %1750 = vmatpush3.bf16.msra.mxu1 %v1775_v22  ;;  %v1622_v54 = vld [vmem:[%s2079_s7] ss:$0 sm:$0xff] }
 0x587   :  { %1697 = vmatmul.mubr.msk.f32.vlgmr.msra.gmra.mrb[8].mxu0 %vm196_vm5, %v537_v55  ;;  %1751 = vmatprep.subr.bf16.mxu1 %v1815_v0 }
 0x588   :  { %1705 = vmatpush3.msk.msra.mxu0 %vm200_vm3, %v712_v49  ;;  %1706 = vmatprep.mubr.msk.f32.mxu0 %vm1816_vm0, %v1815_v0 }
 0x589   :  { %1714 = vmatprep.subr.mxu0 %v1815_v0 }
 0x58a   :  { %1752 = vmatpush3.bf16.msra.mxu1 %v1776_v23 }
 0x5aa   :  { %v708_v57 = vpop.xlane.xlu1 %707 }
 0x5ab   :  { %1803 = vrcp.f32 %v708_v57 }
 0x5ae   :  { %v880_v58 = vpop.xlane.xlu0 %879  ;;  %v1048_v59 = vpop.xlane.xlu1 %1047 }
 0x5af   :  { %1805 = vrcp.f32 %v880_v58 }
 0x5b0   :  { %1807 = vrcp.f32 %v1048_v59 }
 0x5b2   :  { %v1220_v60 = vpop.xlane.xlu0 %1219  ;;  %v1392_v63 = vpop.xlane.xlu1 %1391 }
 0x5b3   :  { %1809 = vrcp.f32 %v1220_v60 }
 0x5b4   :  { %1811 = vrcp.f32 %v1392_v63 }
 0x5b5   :  { %v1804_v61 = vpop.eup %1803 }
 0x5b6   :  { %v710_v62 = vmul.f32 %v1804_v61, %v1790_v38  ;;  %v1224_v6 = vpop.permute.xlu0 %1223  ;;  %v1396_v10 = vpop.permute.xlu1 %1395 }
 0x5b8   :  { %1707 = vmatmul.mubr.msk.f32.vlgmr.msra.gmra.mrb[10].mxu0 %vm196_vm5, %v710_v62 }
 0x5b9   :  { %1715 = vmatpush3.msk.msra.mxu0 %vm200_vm3, %v884_v56  ;;  %1716 = vmatprep.mubr.msk.f32.mxu0 %vm1816_vm0, %v1815_v0  ;;  %v1806_v1 = vpop.eup %1805 }
 0x5ba   :  { %1724 = vmatprep.subr.mxu0 %v1815_v0  ;;  %v882_v2 = vmul.f32 %v1806_v1, %v1792_v39  ;;  %v1808_v3 = vpop.eup %1807 }
 0x5bb   :  { %v1050_v4 = vmul.f32 %v1808_v3, %v1794_v41 }
 0x5bc   :  { %1717 = vmatmul.mubr.msk.f32.vlgmr.msra.gmra.mrb[12].mxu0 %vm196_vm5, %v882_v2 }
 0x5bd   :  { %1725 = vmatpush3.msk.msra.mxu0 %vm200_vm3, %v1052_v21  ;;  %1726 = vmatprep.mubr.msk.f32.mxu0 %vm1816_vm0, %v1815_v0  ;;  %v1810_v5 = vpop.eup %1809 }
 0x5be   :  { %1734 = vmatprep.subr.mxu0 %v1815_v0  ;;  %v1222_v8 = vmul.f32 %v1810_v5, %v1796_v42  ;;  %v1812_v9 = vpop.eup %1811 }
 0x5bf   :  { %v1394_v12 = vmul.f32 %v1812_v9, %v2007_v45 }
 0x5c0   :  { %1727 = vmatmul.mubr.msk.f32.vlgmr.msra.gmra.mrb[14].mxu0 %vm196_vm5, %v1050_v4 }
 0x5c1   :  { %1735 = vmatpush3.msk.msra.mxu0 %vm200_vm3, %v1224_v6  ;;  %1736 = vmatprep.mubr.msk.f32.mxu0 %vm1816_vm0, %v1815_v0 }
 0x5c2   :  { %1744 = vmatprep.subr.mxu0 %v1815_v0 }
 0x5c4   :  { %1737 = vmatmul.mubr.msk.f32.vlgmr.msra.gmra.mrb[16].mxu0 %vm196_vm5, %v1222_v8 }
 0x5c5   :  { %1745 = vmatpush3.msk.msra.mxu0 %vm200_vm3, %v1396_v10  ;;  %1746 = vmatprep.mubr.msk.f32.mxu0 %vm1816_vm0, %v1815_v0 }
 0x5c8   :  { %1747 = vmatmul.mubr.msk.f32.vlgmr.msra.gmra.mrb[18].mxu0 %vm196_vm5, %v1394_v12 }
 0x656   :  { %v438_v13 = vpop.f32.mrb[6].mxu0 }
 0x657   :  { %443 = vrot.lane.b32.xlu0 %v438_v13, %s1828_s22  ;;  %v1688_v14 = vpop.f32.mrb[7].mxu0 }
 0x65a   :  { %v611_v15 = vpop.f32.mrb[8].mxu0 }
 0x65b   :  { %616 = vrot.lane.b32.xlu0 %v611_v15, %s1829_s23  ;;  %v1698_v16 = vpop.f32.mrb[9].mxu0 }
 0x68b   :  { %v784_v17 = vpop.f32.mrb[10].mxu0 }
 0x68c   :  { %789 = vrot.lane.b32.xlu0 %v784_v17, %s1830_s24  ;;  %v1708_v18 = vpop.f32.mrb[11].mxu0 }
 0x68f   :  { %v956_v19 = vpop.f32.mrb[12].mxu0 }
 0x690   :  { %960 = vst.msk [vmem:[#allocation2 + $0x4] sm:$0xf] %vm273_vm6, %v956_v19  ;;  %v1718_v20 = vpop.f32.mrb[13].mxu0 }
 0x693   :  { %v1124_v24 = vpop.f32.mrb[14].mxu0 }
 0x694   :  { %1129 = vrot.lane.b32.xlu1 %v1124_v24, %s1828_s22  ;;  %v1728_v25 = vpop.f32.mrb[15].mxu0 }
 0x697   :  { %v1296_v11 = vpop.f32.mrb[16].mxu0 }
 0x698   :  { %1301 = vrot.lane.b32.xlu1 %v1296_v11, %s1829_s23  ;;  %v1738_v26 = vpop.f32.mrb[17].mxu0 }
 0x69b   :  { %v1468_v27 = vpop.f32.mrb[18].mxu0 }
 0x69c   :  { %1473 = vrot.lane.b32.xlu1 %v1468_v27, %s1830_s24  ;;  %v1748_v28 = vpop.f32.mrb[19].mxu0 }
 0x6c9   :  { %v444_v29 = vpop.permute.xlu0 %443 }
 0x6ca   :  { %447 = vst.msk [vmem:[#allocation2] sm:$0xf] %vm446_vm7, %v444_v29 }
 0x6cd   :  { %v617_v30 = vpop.permute.xlu0 %616 }
 0x6ce   :  { %620 = vst.msk [vmem:[#allocation2] sm:$0xf] %vm619_vm8, %v617_v30 }
 0x6fe   :  { %v790_v31 = vpop.permute.xlu0 %789 }
 0x6ff   :  { %793 = vst.msk [vmem:[#allocation2] sm:$0xf] %vm792_vm9, %v790_v31 }
 0x706   :  { %v1130_v32 = vpop.permute.xlu1 %1129 }
 0x707   :  { %1132 = vst.msk [vmem:[#allocation2 + $0x4] sm:$0xf] %vm446_vm7, %v1130_v32 }
 0x70a   :  { %v1302_v0 = vpop.permute.xlu1 %1301 }
 0x70b   :  { %1304 = vst.msk [vmem:[#allocation2 + $0x4] sm:$0xf] %vm619_vm8, %v1302_v0 }
 0x70e   :  { %v1474_v33 = vpop.permute.xlu1 %1473 }
 0x70f   :  { %1476 = vst.msk [vmem:[#allocation2 + $0x4] sm:$0xf] %vm792_vm9, %v1474_v33 }
 0x716   :  { %v1477_v34 = vld [vmem:[#allocation2] sm:$0xff] }
 0x717   :  { %v1478_v35 = vpack.c.bf16 %v1477_v34, %v1477_v34 }
 0x719   :  { %1754 = vmatmul.mubr.msk.bf16.vlgmr.msra.gmra.mrb[16].mxu1 %vm59_vm1, %v1478_v35 }
 0x7ec   :  { %v1539_v37 = vpop.f32.mrb[16].mxu1 }
 0x7ed   :  { %v1540_v38 = vadd.f32 %v1617_v36, %v1539_v37  ;;  %v1755_v39 = vpop.f32.mrb[17].mxu1 }
 0x7ee   :  { %v1542_v40 = vpop.f32.mrb[18].mxu1 }
 0x7ef   :  { %v1756_v41 = vpop.f32.mrb[19].mxu1  ;;  %v1545_v42 = vadd.f32 %v1540_v38, %v1896_v7 }
 0x7f1   :  { %v1546_v43 = vsel %vm59_vm1, %v1545_v42, 0.0 }
 0x7f2   :  { %1547 = vadd.xlane.f32.xlu0 %v1546_v43 }
 0x87f   :  { %v1548_v44 = vpop.xlane.xlu0 %1547 }
 0x880   :  { %v1550_v45 = vmul.f32 0.03125, %v1548_v44 }
 0x882   :  { %v1551_v46 = vsub.f32 %v1545_v42, %v1550_v45 }
 0x884   :  { %v1552_v47 = vmul.f32 %v1551_v46, %v1551_v46 }
 0x886   :  { %v1553_v48 = vsel %vm59_vm1, %v1552_v47, 0.0 }
 0x887   :  { %1554 = vadd.xlane.f32.xlu1 %v1553_v48 }
 0x914   :  { %v1555_v49 = vpop.xlane.xlu1 %1554 }
 0x915   :  { %v1556_v50 = vmul.f32 0.03125, %v1555_v49 }
 0x917   :  { %v1557_v51 = vadd.f32 1e-05, %v1556_v50 }
 0x919   :  { %1813 = vrsqrt.f32 %v1557_v51 }
 0x923   :  { %v1814_v52 = vpop.eup %1813 }
 0x924   :  { %v1559_v7 = vmul.f32 %v1814_v52, %v1551_v46 }
 0x926   :  { %v1567_v55 = vmul.f32 %v1621_v53, %v1559_v7 }
 0x928   :  { %v1575_v21 = vadd.f32 %v1622_v54, %v1567_v55 }
 0x92a   :  { %1576 = vst.msk [vmem:[%s2080_s8] sm:$0xff] %vm59_vm1, %v1575_v21 }

// kernel: _lambda_.16
= control target key start
LH: loop header
LB: loop body
LE: loop exit
PB: predicated region body
PF: predicated region fallthrough
CT: control target
= control target key end

     0   :  { %v1804_v0 = vmov 0.0   ;;  %vm1805_vm0 = vmmov 0   ;;  %vm52_vm1 = vcmask 261120   ;;  %s1807_s8 = smov 96   ;;  %s1808_s9 = smov 88   ;;  %vm99_vm2 = vcmask 64512   ;;  %s2053_s1 = inlined_call_operand.vmem [shape: bf16[32,96], index: 1, kind: input, shape index: {}]   ;;  %s2054_s0 = inlined_call_operand.vmem [shape: f32[8,32], index: 0, kind: input, shape index: {}]   ;;  %s2055_s2 = inlined_call_operand.vmem [shape: f32[1,96], index: 2, kind: input, shape index: {}]   ;;  %s2056_s3 = inlined_call_operand.vmem [shape: bf16[32,32], index: 3, kind: input, shape index: {}]   ;;  %s2057_s4 = inlined_call_operand.vmem [shape: f32[1,32], index: 4, kind: input, shape index: {}]   ;;  %s2058_s5 = inlined_call_operand.vmem [shape: f32[1,32], index: 5, kind: input, shape index: {}]   ;;  %s2059_s6 = inlined_call_operand.vmem [shape: f32[1,32], index: 6, kind: input, shape index: {}]   ;;  %s2060_s7 = inlined_call_operand.vmem [shape: f32[8,32], index: 7, kind: output, shape index: {}]  }
   0x1   :  { %1654 = vmatprep.subr.bf16.mxu0 %v1804_v0  ;;  %v1766_v1 = vld [vmem:[%s2053_s1] sm:$0xff]   ;;  %1658 = vmatprep.mubr.msk.bf16.mxu0 %vm1805_vm0, %v1804_v0  ;;  %v1767_v2 = vld [vmem:[%s2053_s1 + $0x8] sm:$0xff]   ;;  %s1809_s10 = smov 120   ;;  %s1811_s11 = smov 112   ;;  %vm193_vm3 = vcmask 1043456   ;;  %vm175_vm4 = vcmask 27648  }
   0x2   :  { %1667 = vmatprep.subr.mxu1 %v1804_v0  ;;  %1669 = vmatprep.mubr.msk.f32.mxu1 %vm1805_vm0, %v1804_v0  ;;  %v1875_v3 = vld [vmem:[%s2054_s0] sm:$0xff]  ;;  %s1806_s0 = smov 64   ;;  %s1812_s12 = smov 104   ;;  %vm189_vm5 = vcmask 31744   ;;  %vm266_vm6 = vcmask 60416   ;;  %vm439_vm7 = vcmask 126016  }
   0x3   :  { %1655 = vmatpush3.bf16.msra.mxu0 %v1766_v1  ;;  %v28_v4 = vpack.c.bf16 %v1875_v3, %v1875_v3  ;;  %v1574_v5 = vld [vmem:[%s2055_s2] ss:$0 sm:$0xff]  ;;  %s1810_s2 = smov 80   ;;  %s1813_s13 = smov 72   ;;  %vm612_vm8 = vcmask 191616   ;;  %vm785_vm9 = vcmask 257216  }
   0x4   :  { %1656 = vmatprep.subr.bf16.mxu0 %v1804_v0  ;;  %s1814_s14 = smov 48   ;;  %s1815_s15 = smov 40  }
   0x5   :  { %s1816_s16 = smov 56   ;;  %s1817_s17 = smov 8  }
   0x6   :  { %s1818_s18 = smov 16   ;;  %s1819_s19 = smov 24  }
   0x7   :  { %1657 = vmatpush3.bf16.msra.mxu0 %v1767_v2 }
   0x8   :  { %1662 = vmatprep.subr.mxu0 %v1804_v0 }
   0xa   :  { %1659 = vmatmul.mubr.msk.bf16.vlgmr.msra.gmra.mrb[0].mxu0 %vm52_vm1, %v28_v4 }
   0xb   :  { %1664 = vmatprep.mubr.msk.f32.mxu0 %vm1805_vm0, %v1804_v0 }
  0xdd   :  { %v90_v6 = vpop.f32.mrb[0].mxu0 }
  0xde   :  { %v1887_v7 = vadd.f32 %v1574_v5, %v90_v6  ;;  %v1660_v8 = vpop.f32.mrb[1].mxu0 }
  0xdf   :  { %v93_v9 = vpop.f32.mrb[2].mxu0 }
  0xe0   :  { %187 = vrot.lane.b32.xlu1 %v1887_v7, %s1806_s0  ;;  %97 = vrot.lane.b32.xlu0 %v1887_v7, %s1807_s8  ;;  %v1661_v10 = vpop.f32.mrb[3].mxu0  ;;  %v1912_v17 = vrot.slane %v1887_v7, 4 }
  0xe4   :  { %270 = vrot.lane.b32.xlu1 %v1887_v7, %s1808_s9 }
  0xe8   :  { %268 = vrot.lane.b32.xlu1 %v1887_v7, %s1809_s10 }
  0xec   :  { %443 = vrot.lane.b32.xlu1 %v1887_v7, %s1810_s2 }
  0xf0   :  { %441 = vrot.lane.b32.xlu1 %v1887_v7, %s1811_s11 }
  0xf4   :  { %614 = vrot.lane.b32.xlu1 %v1887_v7, %s1812_s12 }
 0x152   :  { %v188_v11 = vpop.permute.xlu1 %187  ;;  %v98_v12 = vpop.permute.xlu0 %97 }
 0x153   :  { %1663 = vmatpush3.xpose.msk.msra.mxu0 %vm99_vm2, %v98_v12  ;;  %1668 = vmatpush3.msk.msra.mxu1 %vm193_vm3, %v188_v11 }
 0x154   :  { %1672 = vmatprep.subr.mxu1 %v1804_v0  ;;  %1677 = vmatprep.subr.mxu0 %v1804_v0 }
 0x156   :  { %1665 = vmatmul.mubr.msk.f32.vlgmr.msra.gmra.mrb[4].mxu0 %vm99_vm2, %v1887_v7  ;;  %v271_v23 = vpop.permute.xlu1 %270 }
 0x157   :  { %1679 = vmatprep.mubr.msk.f32.mxu0 %vm1805_vm0, %v1804_v0 }
 0x15a   :  { %v269_v24 = vpop.permute.xlu1 %268 }
 0x15e   :  { %v444_v25 = vpop.permute.xlu1 %443 }
 0x162   :  { %v442_v26 = vpop.permute.xlu1 %441 }
 0x166   :  { %v615_v27 = vpop.permute.xlu1 %614 }
 0x229   :  { %v170_v13 = vpop.f32.mrb[4].mxu0 }
 0x22a   :  { %v174_v14 = vmul.f32 0.35355338, %v170_v13  ;;  %v1666_v15 = vpop.f32.mrb[5].mxu0 }
 0x22c   :  { %v176_v16 = vsel %vm175_vm4, %v174_v14, -inf }
 0x22d   :  { %177 = vmax.xlane.f32.xlu0 %v176_v16 }
 0x243   :  { %616 = vrot.lane.b32.xlu0 %v1887_v7, %s1813_s13 }
 0x247   :  { %1126 = vrot.lane.b32.xlu0 %v1912_v17, %s1811_s11 }
 0x24b   :  { %1298 = vrot.lane.b32.xlu0 %v1912_v17, %s1812_s12 }
 0x2ba   :  { %v178_v18 = vpop.xlane.xlu0 %177 }
 0x2bb   :  { %v179_v19 = vsub.f32 %v174_v14, %v178_v18 }
 0x2bd   :  { %v180_v20 = vmul.f32 1.442695, %v179_v19 }
 0x2be   :  { %v617_v33 = vpop.permute.xlu0 %616 }
 0x2bf   :  { %1770 = vpow2.f32 %v180_v20 }
 0x2c2   :  { %v1127_v36 = vpop.permute.xlu0 %1126 }
 0x2c6   :  { %v1299_v38 = vpop.permute.xlu0 %1298 }
 0x2c9   :  { %v1771_v21 = vpop.eup %1770 }
 0x2ca   :  { %v182_v22 = vsel %vm175_vm4, %v1771_v21, 0.0 }
 0x2cb   :  { %183 = vadd.xlane.f32.xlu1 %v182_v22 }
 0x2dc   :  { %788 = vrot.lane.b32.xlu1 %v1912_v17, %s1807_s8 }
 0x2e0   :  { %956 = vrot.lane.b32.xlu1 %v1912_v17, %s1808_s9 }
 0x2e4   :  { %954 = vrot.lane.b32.xlu1 %v1912_v17, %s1809_s10 }
 0x2e8   :  { %1128 = vrot.lane.b32.xlu1 %v1912_v17, %s1810_s2 }
 0x2ec   :  { %1300 = vrot.lane.b32.xlu1 %v1912_v17, %s1813_s13 }
 0x358   :  { %v184_v28 = vpop.xlane.xlu1 %183 }
 0x359   :  { %1772 = vrcp.f32 %v184_v28 }
 0x35c   :  { %v789_v31 = vpop.permute.xlu1 %788 }
 0x360   :  { %v957_v32 = vpop.permute.xlu1 %956 }
 0x363   :  { %v1773_v29 = vpop.eup %1772 }
 0x364   :  { %v186_v30 = vmul.f32 %v1773_v29, %v1771_v21  ;;  %v955_v34 = vpop.permute.xlu1 %954 }
 0x366   :  { %1670 = vmatmul.mubr.msk.f32.vlgmr.msra.gmra.mrb[0].mxu1 %vm189_vm5, %v186_v30 }
 0x367   :  { %1673 = vmatpush3.xpose.msk.msra.mxu1 %vm99_vm2, %v271_v23  ;;  %1674 = vmatprep.mubr.msk.f32.mxu1 %vm1805_vm0, %v1804_v0 }
 0x368   :  { %1682 = vmatprep.subr.mxu1 %v1804_v0  ;;  %v1129_v35 = vpop.permute.xlu1 %1128 }
 0x36a   :  { %1675 = vmatmul.mubr.msk.f32.vlgmr.msra.gmra.mrb[2].mxu1 %vm99_vm2, %v269_v24 }
 0x36b   :  { %1683 = vmatpush3.xpose.msk.msra.mxu1 %vm99_vm2, %v444_v25  ;;  %1684 = vmatprep.mubr.msk.f32.mxu1 %vm1805_vm0, %v1804_v0 }
 0x36c   :  { %1692 = vmatprep.subr.mxu1 %v1804_v0  ;;  %v1301_v37 = vpop.permute.xlu1 %1300 }
 0x36e   :  { %1685 = vmatmul.mubr.msk.f32.vlgmr.msra.gmra.mrb[4].mxu1 %vm99_vm2, %v442_v26 }
 0x36f   :  { %1693 = vmatpush3.xpose.msk.msra.mxu1 %vm99_vm2, %v617_v33  ;;  %1694 = vmatprep.mubr.msk.f32.mxu1 %vm1805_vm0, %v1804_v0 }
 0x370   :  { %1702 = vmatprep.subr.mxu1 %v1804_v0 }
 0x372   :  { %1695 = vmatmul.mubr.msk.f32.vlgmr.msra.gmra.mrb[6].mxu1 %vm99_vm2, %v615_v27 }
 0x373   :  { %1703 = vmatpush3.xpose.msk.msra.mxu1 %vm99_vm2, %v789_v31  ;;  %1704 = vmatprep.mubr.msk.f32.mxu1 %vm1805_vm0, %v1804_v0 }
 0x374   :  { %1712 = vmatprep.subr.mxu1 %v1804_v0 }
 0x376   :  { %1705 = vmatmul.mubr.msk.f32.vlgmr.msra.gmra.mrb[8].mxu1 %vm99_vm2, %v1912_v17 }
 0x377   :  { %1713 = vmatpush3.xpose.msk.msra.mxu1 %vm99_vm2, %v957_v32  ;;  %1714 = vmatprep.mubr.msk.f32.mxu1 %vm1805_vm0, %v1804_v0 }
 0x378   :  { %1722 = vmatprep.subr.mxu1 %v1804_v0 }
 0x37a   :  { %1715 = vmatmul.mubr.msk.f32.vlgmr.msra.gmra.mrb[10].mxu1 %vm99_vm2, %v955_v34 }
 0x37b   :  { %1723 = vmatpush3.xpose.msk.msra.mxu1 %vm99_vm2, %v1129_v35  ;;  %1724 = vmatprep.mubr.msk.f32.mxu1 %vm1805_vm0, %v1804_v0 }
 0x37c   :  { %1732 = vmatprep.subr.mxu1 %v1804_v0 }
 0x37e   :  { %1725 = vmatmul.mubr.msk.f32.vlgmr.msra.gmra.mrb[12].mxu1 %vm99_vm2, %v1127_v36 }
 0x37f   :  { %1733 = vmatpush3.xpose.msk.msra.mxu1 %vm99_vm2, %v1301_v37  ;;  %1734 = vmatprep.mubr.msk.f32.mxu1 %vm1805_vm0, %v1804_v0 }
 0x380   :  { %1742 = vmatprep.subr.bf16.mxu1 %v1804_v0 }
 0x382   :  { %1735 = vmatmul.mubr.msk.f32.vlgmr.msra.gmra.mrb[14].mxu1 %vm99_vm2, %v1299_v38 }
 0x383   :  { %1746 = vmatprep.mubr.msk.bf16.mxu1 %vm1805_vm0, %v1804_v0 }
 0x439   :  { %v262_v39 = vpop.f32.mrb[0].mxu1 }
 0x43a   :  { %267 = vst.msk [vmem:[#allocation2] sm:$0xf] %vm266_vm6, %v262_v39  ;;  %v1671_v40 = vpop.f32.mrb[1].mxu1 }
 0x43d   :  { %v342_v41 = vpop.f32.mrb[2].mxu1 }
 0x43e   :  { %v346_v42 = vmul.f32 0.35355338, %v342_v41  ;;  %v1676_v43 = vpop.f32.mrb[3].mxu1 }
 0x440   :  { %v347_v44 = vsel %vm175_vm4, %v346_v42, -inf }
 0x441   :  { %348 = vmax.xlane.f32.xlu1 %v347_v44  ;;  %v515_v45 = vpop.f32.mrb[4].mxu1 }
 0x442   :  { %v519_v46 = vmul.f32 0.35355338, %v515_v45  ;;  %v1686_v47 = vpop.f32.mrb[5].mxu1 }
 0x444   :  { %v520_v48 = vsel %vm175_vm4, %v519_v46, -inf }
 0x445   :  { %521 = vmax.xlane.f32.xlu0 %v520_v48  ;;  %v688_v49 = vpop.f32.mrb[6].mxu1 }
 0x446   :  { %v692_v50 = vmul.f32 0.35355338, %v688_v49  ;;  %v1696_v51 = vpop.f32.mrb[7].mxu1 }
 0x448   :  { %v693_v52 = vsel %vm175_vm4, %v692_v50, -inf }
 0x449   :  { %694 = vmax.xlane.f32.xlu0 %v693_v52  ;;  %v860_v53 = vpop.f32.mrb[8].mxu1 }
 0x44a   :  { %v864_v54 = vmul.f32 0.35355338, %v860_v53  ;;  %v1706_v55 = vpop.f32.mrb[9].mxu1 }
 0x44c   :  { %v865_v56 = vsel %vm175_vm4, %v864_v54, -inf }
 0x44d   :  { %866 = vmax.xlane.f32.xlu1 %v865_v56  ;;  %v1028_v57 = vpop.f32.mrb[10].mxu1 }
 0x44e   :  { %v1032_v58 = vmul.f32 0.35355338, %v1028_v57  ;;  %v1716_v59 = vpop.f32.mrb[11].mxu1 }
 0x450   :  { %v1033_v60 = vsel %vm175_vm4, %v1032_v58, -inf }
 0x451   :  { %1034 = vmax.xlane.f32.xlu0 %v1033_v60  ;;  %v1200_v61 = vpop.f32.mrb[12].mxu1 }
 0x452   :  { %v1204_v62 = vmul.f32 0.35355338, %v1200_v61  ;;  %v1726_v63 = vpop.f32.mrb[13].mxu1 }
 0x454   :  { %v1205_v1 = vsel %vm175_vm4, %v1204_v62, -inf }
 0x455   :  { %1206 = vmax.xlane.f32.xlu1 %v1205_v1  ;;  %v1372_v2 = vpop.f32.mrb[14].mxu1 }
 0x456   :  { %v1376_v4 = vmul.f32 0.35355338, %v1372_v2  ;;  %v1736_v5 = vpop.f32.mrb[15].mxu1 }
 0x458   :  { %v1377_v6 = vsel %vm175_vm4, %v1376_v4, -inf }
 0x459   :  { %1378 = vmax.xlane.f32.xlu0 %v1377_v6 }
 0x466   :  { %531 = vrot.lane.b32.xlu1 %v1887_v7, %s1814_s14 }
 0x46a   :  { %704 = vrot.lane.b32.xlu1 %v1887_v7, %s1815_s15 }
 0x46f   :  { %358 = vrot.lane.b32.xlu0 %v1887_v7, %s1816_s16 }
 0x4ce   :  { %v349_v8 = vpop.xlane.xlu1 %348 }
 0x4cf   :  { %v350_v9 = vsub.f32 %v346_v42, %v349_v8 }
 0x4d1   :  { %v351_v10 = vmul.f32 1.442695, %v350_v9 }
 0x4d2   :  { %v522_v11 = vpop.xlane.xlu0 %521 }
 0x4d3   :  { %1774 = vpow2.f32 %v351_v10  ;;  %v523_v12 = vsub.f32 %v519_v46, %v522_v11 }
 0x4d5   :  { %v524_v13 = vmul.f32 1.442695, %v523_v12 }
 0x4d6   :  { %v695_v15 = vpop.xlane.xlu0 %694 }
 0x4d7   :  { %1776 = vpow2.f32 %v524_v13  ;;  %v696_v22 = vsub.f32 %v692_v50, %v695_v15 }
 0x4d9   :  { %v697_v25 = vmul.f32 1.442695, %v696_v22 }
 0x4da   :  { %v867_v23 = vpop.xlane.xlu1 %866 }
 0x4db   :  { %v868_v24 = vsub.f32 %v864_v54, %v867_v23  ;;  %1778 = vpow2.f32 %v697_v25 }
 0x4dd   :  { %v1775_v14 = vpop.eup %1774  ;;  %v869_v28 = vmul.f32 1.442695, %v868_v24 }
 0x4de   :  { %v353_v16 = vsel %vm175_vm4, %v1775_v14, 0.0  ;;  %v1035_v19 = vpop.xlane.xlu0 %1034 }
 0x4df   :  { %354 = vadd.xlane.f32.xlu1 %v353_v16  ;;  %v1036_v26 = vsub.f32 %v1032_v58, %v1035_v19  ;;  %1780 = vpow2.f32 %v869_v28  ;;  %v1769_v19 = vld [vmem:[%s2056_s3 + $0x8] sm:$0xff]  }
 0x4e1   :  { %v1777_v18 = vpop.eup %1776  ;;  %v1037_v30 = vmul.f32 1.442695, %v1036_v26 }
 0x4e2   :  { %v526_v20 = vsel %vm175_vm4, %v1777_v18, 0.0  ;;  %v1207_v27 = vpop.xlane.xlu1 %1206 }
 0x4e3   :  { %527 = vadd.xlane.f32.xlu0 %v526_v20  ;;  %v1208_v29 = vsub.f32 %v1204_v62, %v1207_v27  ;;  %1782 = vpow2.f32 %v1037_v30 }
 0x4e5   :  { %v1209_v32 = vmul.f32 1.442695, %v1208_v29  ;;  %v1779_v34 = vpop.eup %1778 }
 0x4e6   :  { %v1379_v21 = vpop.xlane.xlu0 %1378  ;;  %v699_v36 = vsel %vm175_vm4, %v1779_v34, 0.0  ;;  %v532_v44 = vpop.permute.xlu1 %531 }
 0x4e7   :  { %v1380_v31 = vsub.f32 %v1376_v4, %v1379_v21  ;;  %1784 = vpow2.f32 %v1209_v32  ;;  %v1610_v32 = vld [vmem:[%s2057_s4] ss:$0 sm:$0xff] }
 0x4e9   :  { %v1381_v33 = vmul.f32 1.442695, %v1380_v31  ;;  %v1781_v35 = vpop.eup %1780 }
 0x4ea   :  { %v359_v7 = vpop.permute.xlu0 %358  ;;  %v871_v39 = vsel %vm175_vm4, %v1781_v35, 0.0  ;;  %v705_v45 = vpop.permute.xlu1 %704 }
 0x4eb   :  { %1678 = vmatpush3.msk.msra.mxu0 %vm193_vm3, %v359_v7  ;;  %1786 = vpow2.f32 %v1381_v33 }
 0x4ec   :  { %1687 = vmatprep.subr.mxu0 %v1804_v0 }
 0x4ed   :  { %v1783_v37 = vpop.eup %1782 }
 0x4ee   :  { %v1039_v40 = vsel %vm175_vm4, %v1783_v37, 0.0 }
 0x4f0   :  { %1044 = vrot.lane.b32.xlu1 %v1912_v17, %s1816_s16 }
 0x4f1   :  { %v1785_v38 = vpop.eup %1784 }
 0x4f2   :  { %v1211_v42 = vsel %vm175_vm4, %v1785_v38, 0.0 }
 0x4f5   :  { %v1988_v41 = vpop.eup %1786 }
 0x4f6   :  { %v1383_v43 = vsel %vm175_vm4, %v1988_v41, 0.0 }
 0x4f9   :  { %876 = vrot.lane.b32.xlu0 %v1912_v17, %s1806_s0 }
 0x514   :  { %700 = vadd.xlane.f32.xlu1 %v699_v36 }
 0x518   :  { %872 = vadd.xlane.f32.xlu0 %v871_v39  ;;  %1040 = vadd.xlane.f32.xlu1 %v1039_v40 }
 0x51c   :  { %1212 = vadd.xlane.f32.xlu0 %v1211_v42  ;;  %1384 = vadd.xlane.f32.xlu1 %v1383_v43 }
 0x52d   :  { %1388 = vrot.lane.b32.xlu1 %v1912_v17, %s1815_s15 }
 0x532   :  { %1216 = vrot.lane.b32.xlu0 %v1912_v17, %s1814_s14 }
 0x56c   :  { %v355_v46 = vpop.xlane.xlu1 %354 }
 0x56d   :  { %1788 = vrcp.f32 %v355_v46 }
 0x570   :  { %v528_v47 = vpop.xlane.xlu0 %527  ;;  %v1045_v17 = vpop.permute.xlu1 %1044 }
 0x571   :  { %1790 = vrcp.f32 %v528_v47 }
 0x574   :  { %v877_v52 = vpop.permute.xlu0 %876 }
 0x577   :  { %v1789_v48 = vpop.eup %1788 }
 0x578   :  { %v357_v49 = vmul.f32 %v1789_v48, %v1775_v14 }
 0x57a   :  { %1680 = vmatmul.mubr.msk.f32.vlgmr.msra.gmra.mrb[6].mxu0 %vm189_vm5, %v357_v49  ;;  %v1614_v49 = vld [vmem:[%s2058_s5] ss:$0 sm:$0xff] }
 0x57b   :  { %v1791_v50 = vpop.eup %1790  ;;  %1688 = vmatpush3.msk.msra.mxu0 %vm193_vm3, %v532_v44  ;;  %1689 = vmatprep.mubr.msk.f32.mxu0 %vm1805_vm0, %v1804_v0 }
 0x57c   :  { %v530_v51 = vmul.f32 %v1791_v50, %v1777_v18  ;;  %1697 = vmatprep.subr.mxu0 %v1804_v0  ;;  %v1768_v18 = vld [vmem:[%s2056_s3] sm:$0xff]  }
 0x57d   :  { %1743 = vmatpush3.bf16.msra.mxu1 %v1768_v18  ;;  %v1615_v50 = vld [vmem:[%s2059_s6] ss:$0 sm:$0xff] }
 0x57e   :  { %1690 = vmatmul.mubr.msk.f32.vlgmr.msra.gmra.mrb[8].mxu0 %vm189_vm5, %v530_v51  ;;  %1744 = vmatprep.subr.bf16.mxu1 %v1804_v0 }
 0x57f   :  { %1698 = vmatpush3.msk.msra.mxu0 %vm193_vm3, %v705_v45  ;;  %1699 = vmatprep.mubr.msk.f32.mxu0 %vm1805_vm0, %v1804_v0 }
 0x580   :  { %1707 = vmatprep.subr.mxu0 %v1804_v0 }
 0x581   :  { %1745 = vmatpush3.bf16.msra.mxu1 %v1769_v19 }
 0x5a1   :  { %v701_v53 = vpop.xlane.xlu1 %700 }
 0x5a2   :  { %1792 = vrcp.f32 %v701_v53 }
 0x5a5   :  { %v873_v54 = vpop.xlane.xlu0 %872  ;;  %v1041_v55 = vpop.xlane.xlu1 %1040 }
 0x5a6   :  { %1794 = vrcp.f32 %v873_v54 }
 0x5a7   :  { %1796 = vrcp.f32 %v1041_v55 }
 0x5a9   :  { %v1213_v56 = vpop.xlane.xlu0 %1212  ;;  %v1385_v59 = vpop.xlane.xlu1 %1384 }
 0x5aa   :  { %1798 = vrcp.f32 %v1213_v56 }
 0x5ab   :  { %1800 = vrcp.f32 %v1385_v59 }
 0x5ac   :  { %v1793_v57 = vpop.eup %1792 }
 0x5ad   :  { %v703_v58 = vmul.f32 %v1793_v57, %v1779_v34  ;;  %v1217_v2 = vpop.permute.xlu0 %1216  ;;  %v1389_v6 = vpop.permute.xlu1 %1388 }
 0x5af   :  { %1700 = vmatmul.mubr.msk.f32.vlgmr.msra.gmra.mrb[10].mxu0 %vm189_vm5, %v703_v58 }
 0x5b0   :  { %1708 = vmatpush3.msk.msra.mxu0 %vm193_vm3, %v877_v52  ;;  %1709 = vmatprep.mubr.msk.f32.mxu0 %vm1805_vm0, %v1804_v0  ;;  %v1795_v60 = vpop.eup %1794 }
 0x5b1   :  { %1717 = vmatprep.subr.mxu0 %v1804_v0  ;;  %v875_v61 = vmul.f32 %v1795_v60, %v1781_v35  ;;  %v1797_v62 = vpop.eup %1796 }
 0x5b2   :  { %v1043_v63 = vmul.f32 %v1797_v62, %v1783_v37 }
 0x5b3   :  { %1710 = vmatmul.mubr.msk.f32.vlgmr.msra.gmra.mrb[12].mxu0 %vm189_vm5, %v875_v61 }
 0x5b4   :  { %1718 = vmatpush3.msk.msra.mxu0 %vm193_vm3, %v1045_v17  ;;  %1719 = vmatprep.mubr.msk.f32.mxu0 %vm1805_vm0, %v1804_v0  ;;  %v1799_v1 = vpop.eup %1798 }
 0x5b5   :  { %1727 = vmatprep.subr.mxu0 %v1804_v0  ;;  %v1215_v4 = vmul.f32 %v1799_v1, %v1785_v38  ;;  %v1801_v5 = vpop.eup %1800 }
 0x5b6   :  { %v1387_v8 = vmul.f32 %v1801_v5, %v1988_v41 }
 0x5b7   :  { %1720 = vmatmul.mubr.msk.f32.vlgmr.msra.gmra.mrb[14].mxu0 %vm189_vm5, %v1043_v63 }
 0x5b8   :  { %1728 = vmatpush3.msk.msra.mxu0 %vm193_vm3, %v1217_v2  ;;  %1729 = vmatprep.mubr.msk.f32.mxu0 %vm1805_vm0, %v1804_v0 }
 0x5b9   :  { %1737 = vmatprep.subr.mxu0 %v1804_v0 }
 0x5bb   :  { %1730 = vmatmul.mubr.msk.f32.vlgmr.msra.gmra.mrb[16].mxu0 %vm189_vm5, %v1215_v4 }
 0x5bc   :  { %1738 = vmatpush3.msk.msra.mxu0 %vm193_vm3, %v1389_v6  ;;  %1739 = vmatprep.mubr.msk.f32.mxu0 %vm1805_vm0, %v1804_v0 }
 0x5bf   :  { %1740 = vmatmul.mubr.msk.f32.vlgmr.msra.gmra.mrb[18].mxu0 %vm189_vm5, %v1387_v8 }
 0x64d   :  { %v431_v9 = vpop.f32.mrb[6].mxu0 }
 0x64e   :  { %436 = vrot.lane.b32.xlu0 %v431_v9, %s1817_s17  ;;  %v1681_v10 = vpop.f32.mrb[7].mxu0 }
 0x651   :  { %v604_v11 = vpop.f32.mrb[8].mxu0 }
 0x652   :  { %609 = vrot.lane.b32.xlu0 %v604_v11, %s1818_s18  ;;  %v1691_v12 = vpop.f32.mrb[9].mxu0 }
 0x682   :  { %v777_v13 = vpop.f32.mrb[10].mxu0 }
 0x683   :  { %782 = vrot.lane.b32.xlu0 %v777_v13, %s1819_s19  ;;  %v1701_v14 = vpop.f32.mrb[11].mxu0 }
 0x686   :  { %v949_v15 = vpop.f32.mrb[12].mxu0 }
 0x687   :  { %953 = vst.msk [vmem:[#allocation2 + $0x4] sm:$0xf] %vm266_vm6, %v949_v15  ;;  %v1711_v16 = vpop.f32.mrb[13].mxu0 }
 0x68a   :  { %v1117_v20 = vpop.f32.mrb[14].mxu0 }
 0x68b   :  { %1122 = vrot.lane.b32.xlu1 %v1117_v20, %s1817_s17  ;;  %v1721_v21 = vpop.f32.mrb[15].mxu0 }
 0x68e   :  { %v1289_v7 = vpop.f32.mrb[16].mxu0 }
 0x68f   :  { %1294 = vrot.lane.b32.xlu1 %v1289_v7, %s1818_s18  ;;  %v1731_v22 = vpop.f32.mrb[17].mxu0 }
 0x692   :  { %v1461_v23 = vpop.f32.mrb[18].mxu0 }
 0x693   :  { %1466 = vrot.lane.b32.xlu1 %v1461_v23, %s1819_s19  ;;  %v1741_v24 = vpop.f32.mrb[19].mxu0 }
 0x6c0   :  { %v437_v25 = vpop.permute.xlu0 %436 }
 0x6c1   :  { %440 = vst.msk [vmem:[#allocation2] sm:$0xf] %vm439_vm7, %v437_v25 }
 0x6c4   :  { %v610_v26 = vpop.permute.xlu0 %609 }
 0x6c5   :  { %613 = vst.msk [vmem:[#allocation2] sm:$0xf] %vm612_vm8, %v610_v26 }
 0x6f5   :  { %v783_v27 = vpop.permute.xlu0 %782 }
 0x6f6   :  { %786 = vst.msk [vmem:[#allocation2] sm:$0xf] %vm785_vm9, %v783_v27 }
 0x6fd   :  { %v1123_v28 = vpop.permute.xlu1 %1122 }
 0x6fe   :  { %1125 = vst.msk [vmem:[#allocation2 + $0x4] sm:$0xf] %vm439_vm7, %v1123_v28 }
 0x701   :  { %v1295_v0 = vpop.permute.xlu1 %1294 }
 0x702   :  { %1297 = vst.msk [vmem:[#allocation2 + $0x4] sm:$0xf] %vm612_vm8, %v1295_v0 }
 0x705   :  { %v1467_v29 = vpop.permute.xlu1 %1466 }
 0x706   :  { %1469 = vst.msk [vmem:[#allocation2 + $0x4] sm:$0xf] %vm785_vm9, %v1467_v29 }
 0x70d   :  { %v1470_v30 = vld [vmem:[#allocation2] sm:$0xff] }
 0x70e   :  { %v1471_v31 = vpack.c.bf16 %v1470_v30, %v1470_v30 }
 0x710   :  { %1747 = vmatmul.mubr.msk.bf16.vlgmr.msra.gmra.mrb[16].mxu1 %vm52_vm1, %v1471_v31 }
 0x7e3   :  { %v1532_v33 = vpop.f32.mrb[16].mxu1 }
 0x7e4   :  { %v1533_v34 = vadd.f32 %v1610_v32, %v1532_v33  ;;  %v1748_v35 = vpop.f32.mrb[17].mxu1 }
 0x7e5   :  { %v1535_v36 = vpop.f32.mrb[18].mxu1 }
 0x7e6   :  { %v1749_v37 = vpop.f32.mrb[19].mxu1  ;;  %v1538_v38 = vadd.f32 %v1533_v34, %v1875_v3 }
 0x7e8   :  { %v1539_v39 = vsel %vm52_vm1, %v1538_v38, 0.0 }
 0x7e9   :  { %1540 = vadd.xlane.f32.xlu0 %v1539_v39 }
 0x876   :  { %v1541_v40 = vpop.xlane.xlu0 %1540 }
 0x877   :  { %v1543_v41 = vmul.f32 0.03125, %v1541_v40 }
 0x879   :  { %v1544_v42 = vsub.f32 %v1538_v38, %v1543_v41 }
 0x87b   :  { %v1545_v43 = vmul.f32 %v1544_v42, %v1544_v42 }
 0x87d   :  { %v1546_v44 = vsel %vm52_vm1, %v1545_v43, 0.0 }
 0x87e   :  { %1547 = vadd.xlane.f32.xlu1 %v1546_v44 }
 0x90b   :  { %v1548_v45 = vpop.xlane.xlu1 %1547 }
 0x90c   :  { %v1549_v46 = vmul.f32 0.03125, %v1548_v45 }
 0x90e   :  { %v1550_v47 = vadd.f32 1e-05, %v1549_v46 }
 0x910   :  { %1802 = vrsqrt.f32 %v1550_v47 }
 0x91a   :  { %v1803_v48 = vpop.eup %1802 }
 0x91b   :  { %v1552_v3 = vmul.f32 %v1803_v48, %v1544_v42 }
 0x91d   :  { %v1560_v51 = vmul.f32 %v1614_v49, %v1552_v3 }
 0x91f   :  { %v1568_v17 = vadd.f32 %v1615_v50, %v1560_v51 }
 0x921   :  { %1569 = vst.msk [vmem:[%s2060_s7] sm:$0xff] %vm52_vm1, %v1568_v17 }

</bundles_post_ra>
